<compile_context>
chip_gen: v7x
topology: tpu7x:2x2x1
jax: 0.10.0
libtpu: 0.0.40
codegen_flags: <defaults>
</compile_context>

<pallas_src>
import functools
import jax
import jax.numpy as jnp
from jax import lax
from jax.experimental import pallas as pl
from jax.experimental.pallas import tpu as pltpu

F32 = jnp.float32

# ----------------------------- configuration -------------------------------
B = 2
CHANNELS = 4            # channels (C)
PATCH_LEN = 16          # patch_len (P)
NUM_PATCHES = 8         # N ; seq_len = N*P = 128, 128 % (4*patch_len) == 0
SEQ_LEN = NUM_PATCHES * PATCH_LEN
DIM = 32                # dim (D)
DEPTH = 2
HEADS = 4
DIM_HEAD = 8
MLP_DIM = 32
CONV_K, CONV_PAD = 3, 1
LN_EPS = 1e-5           # nn.LayerNorm default


# ------------------------------ fused kernel --------------------------------

def _erf(x):
    # Abramowitz & Stegun 7.1.26 (|err| < 1.5e-7): matches exact nn.GELU closely.
    a1, a2, a3, a4, a5 = 0.254829592, -0.284496736, 1.421413741, -1.453152027, 1.061405429
    p = 0.3275911
    sgn = jnp.where(x >= 0.0, 1.0, -1.0)
    ax = jnp.abs(x)
    t = 1.0 / (1.0 + p * ax)
    poly = ((((a5 * t + a4) * t + a3) * t + a2) * t + a1) * t
    return sgn * (1.0 - poly * jnp.exp(-ax * ax))


def _layernorm(x, g, b):
    mu = jnp.mean(x, axis=-1, keepdims=True)
    xc = x - mu
    var = jnp.mean(xc * xc, axis=-1, keepdims=True)
    return xc * lax.rsqrt(var + LN_EPS) * g + b


def _tfr_kernel(xp_ref, cw_ref, tb_ref, mb_ref,
                ln1g_ref, ln1b_ref, wq_ref, wk_ref, wv_ref, wo_ref, bo_ref,
                ln2g_ref, ln2b_ref, w1_ref, b1_ref, w2_ref, b2_ref,
                o_ref, *, depth, heads, dim_head):
    scale = dim_head ** (-0.5)

    # Patch embedding for ALL batch elements at once: (B*(N+1), C*P) @ (C*P, D).
    # The cls rows of xp are zero, so their product is zero and token_bias
    # supplies cls + pos there; patch rows get conv bias + pos via token_bias.
    t = (jnp.dot(xp_ref[...], cw_ref[...], preferred_element_type=jnp.float32)
         + tb_ref[...])                                               # (R, D)
    mb = mb_ref[...]                                                  # (R, R) block mask bias

    for l in range(depth):                                            # static unroll
        # ----------------- attention (pre-norm) -----------------
        xn = _layernorm(t, ln1g_ref[l], ln1b_ref[l])
        attn = jnp.zeros_like(t)
        for h in range(heads):                                        # static unroll
            q = jnp.dot(xn, wq_ref[l, h], preferred_element_type=jnp.float32)  # (R, Dh)
            k = jnp.dot(xn, wk_ref[l, h], preferred_element_type=jnp.float32)
            v = jnp.dot(xn, wv_ref[l, h], preferred_element_type=jnp.float32)
            # scores for every (row, row) pair; cross-batch pairs are killed by mb.
            s = lax.dot_general(q, k, (((1,), (1,)), ((), ())),
                                preferred_element_type=jnp.float32) * scale + mb
            s = s - jnp.max(s, axis=-1, keepdims=True)
            e = jnp.exp(s)
            p = e * pl.reciprocal(jnp.sum(e, axis=-1, keepdims=True), approx=True)
            o_h = jnp.dot(p, v, preferred_element_type=jnp.float32)             # (R, Dh)
            # fold head-concat into the out-projection: concat_h(o_h) @ W == sum_h o_h @ W_h
            attn = attn + jnp.dot(o_h, wo_ref[l, h], preferred_element_type=jnp.float32)
        t = t + attn + bo_ref[l]
        # ----------------- feed forward (pre-norm) -----------------
        xn = _layernorm(t, ln2g_ref[l], ln2b_ref[l])
        h1 = jnp.dot(xn, w1_ref[l], preferred_element_type=jnp.float32) + b1_ref[l]
        g = 0.5 * h1 * (1.0 + _erf(h1 * 0.7071067811865476))          # exact nn.GELU
        t = t + jnp.dot(g, w2_ref[l], preferred_element_type=jnp.float32) + b2_ref[l]

    o_ref[...] = t                                                    # (R, D); host picks cls rows


# ------------------------------ host-side prep -------------------------------

def fold_conv_meanpool(cnn_w, P, pad):
    """Fold Conv1d(stride=1, padding=pad) + AdaptiveAvgPool1d(1) into (C*P, D)."""
    K, C, D = cnn_w.shape
    Pout = P + 2 * pad - K + 1
    A = jnp.zeros((C, P, D), F32)
    for k in range(K):
        valid = jnp.asarray([1.0 if 0 <= p + pad - k < Pout else 0.0 for p in range(P)], F32)
        A = A + valid[None, :, None] * cnn_w[k][:, None, :]
    return (A / float(Pout)).reshape(C * P, D)


def tfr_forward(x, params):
    Bx, C, _ = x.shape
    P, N, D, H, Dh = PATCH_LEN, NUM_PATCHES, DIM, HEADS, DIM_HEAD
    N1 = N + 1
    R = Bx * N1
    inner = H * Dh

    # to_patch: 'b c (n p) -> b n c p' -> flattened (B, N, C*P); prepend a zero
    # row per batch element as the cls-token slot; stack batches along rows.
    patches = x.reshape(Bx, C, N, P).transpose(0, 2, 1, 3).reshape(Bx, N, C * P)
    patches = jnp.pad(patches, ((0, 0), (1, 0), (0, 0))).reshape(R, C * P)   # (R, C*P)

    conv_w = fold_conv_meanpool(params['cnn_w'], P, CONV_PAD)         # (C*P, D)
    token_bias = (jnp.concatenate(
        [params['cls_token'][0],
         jnp.broadcast_to(params['cnn_b'], (N, D))], axis=0)
        + params['pos_embedding'][0])                                 # (N+1, D)
    token_bias = jnp.tile(token_bias, (Bx, 1))                        # (R, D)

    # Additive attention bias: 0 inside a batch's token block, -1e30 across batches.
    tok_batch = jnp.arange(R, dtype=jnp.int32) // N1
    mask_bias = jnp.where(tok_batch[:, None] == tok_batch[None, :], 0.0, -1e30).astype(F32)

    # Pre-split QKV / out-proj weights per head (parameter-only reshapes).
    wqkv = params['w_qkv']                                            # (DEPTH, D, 3*inner)
    def split_heads(w):                                               # (DEPTH, D, inner) -> (DEPTH, H, D, Dh)
        return w.reshape(DEPTH, D, H, Dh).transpose(0, 2, 1, 3)
    w_q = split_heads(wqkv[:, :, :inner])
    w_k = split_heads(wqkv[:, :, inner:2 * inner])
    w_v = split_heads(wqkv[:, :, 2 * inner:])
    w_o = params['w_out'].reshape(DEPTH, H, Dh, D)

    inputs = (patches, conv_w, token_bias, mask_bias,
              params['ln1_g'], params['ln1_b'], w_q, w_k, w_v, w_o, params['b_out'],
              params['ln2_g'], params['ln2_b'],
              params['w1'], params['b1'], params['w2'], params['b2'])

    def full_spec(a):
        return pl.BlockSpec(a.shape, lambda i, _nd=a.ndim: (0,) * _nd)

    out = pl.pallas_call(
        functools.partial(_tfr_kernel, depth=DEPTH, heads=H, dim_head=Dh),
        out_shape=jax.ShapeDtypeStruct((R, D), F32),
        grid=(1,),                                                    # single fused step: whole batch
        in_specs=[full_spec(a) for a in inputs],
        out_specs=pl.BlockSpec((R, D), lambda i: (0, 0)),
        compiler_params=pltpu.CompilerParams(
            dimension_semantics=("arbitrary",)),
    )(*inputs)
    return out.reshape(Bx, N1, D)[:, 0, :]                            # == x[:, 0]  (B, D)


# ------------------------------- parameters ---------------------------------

def init_params(key):
    keys = jax.random.split(key, 8)
    inner = HEADS * DIM_HEAD
    D = DIM
    return {
        # synthesized cnn1 (resnet1d18 body not provided)
        'cnn_w': 0.1 * jax.random.normal(keys[0], (CONV_K, CHANNELS, D), F32),   # [tap, Cin, Dout]
        'cnn_b': 0.1 * jax.random.normal(keys[1], (1, D), F32),
        'cls_token': 0.05 * jax.random.normal(keys[2], (1, 1, D), F32),
        'pos_embedding': 0.05 * jax.random.normal(keys[3], (1, NUM_PATCHES + 1, D), F32),
        # transformer, stacked over depth
        'ln1_g': jnp.ones((DEPTH, 1, D), F32),
        'ln1_b': jnp.zeros((DEPTH, 1, D), F32),
        'w_qkv': 0.05 * jax.random.normal(keys[4], (DEPTH, D, 3 * inner), F32),  # to_qkv (no bias)
        'w_out': 0.05 * jax.random.normal(keys[5], (DEPTH, inner, D), F32),
        'b_out': jnp.zeros((DEPTH, 1, D), F32),
        'ln2_g': jnp.ones((DEPTH, 1, D), F32),
        'ln2_b': jnp.zeros((DEPTH, 1, D), F32),
        'w1': 0.05 * jax.random.normal(keys[6], (DEPTH, D, MLP_DIM), F32),
        'b1': jnp.zeros((DEPTH, 1, MLP_DIM), F32),
        'w2': 0.05 * jax.random.normal(keys[7], (DEPTH, MLP_DIM, D), F32),
        'b2': jnp.zeros((DEPTH, 1, D), F32),
    }


# ---------------------------------- main -------------------------------------
if __name__ == "__main__":
    key = jax.random.PRNGKey(0)
    kx, kp = jax.random.split(key)
    x = jax.random.normal(kx, (B, CHANNELS, SEQ_LEN), F32)
    params = init_params(kp)

    fwd = jax.jit(lambda inp: tfr_forward(inp, params))
    out = jax.block_until_ready(fwd(x))
    assert out.shape == (B, DIM) and bool(jnp.all(jnp.isfinite(out)))
    print("KERNEL_OK")
</pallas_src>

<mosaic_0001>
module attributes {stable_mosaic.version = 11 : i64} {
  func.func @_tfr_kernel(%arg0: i32, %arg1: memref<18x64xf32, #tpu.memory_space<vmem>>, %arg2: memref<64x32xf32, #tpu.memory_space<vmem>>, %arg3: memref<18x32xf32, #tpu.memory_space<vmem>>, %arg4: memref<18x18xf32, #tpu.memory_space<vmem>>, %arg5: memref<2x1x32xf32, #tpu.memory_space<vmem>>, %arg6: memref<2x1x32xf32, #tpu.memory_space<vmem>>, %arg7: memref<2x4x32x8xf32, #tpu.memory_space<vmem>>, %arg8: memref<2x4x32x8xf32, #tpu.memory_space<vmem>>, %arg9: memref<2x4x32x8xf32, #tpu.memory_space<vmem>>, %arg10: memref<2x4x8x32xf32, #tpu.memory_space<vmem>>, %arg11: memref<2x1x32xf32, #tpu.memory_space<vmem>>, %arg12: memref<2x1x32xf32, #tpu.memory_space<vmem>>, %arg13: memref<2x1x32xf32, #tpu.memory_space<vmem>>, %arg14: memref<2x32x32xf32, #tpu.memory_space<vmem>>, %arg15: memref<2x1x32xf32, #tpu.memory_space<vmem>>, %arg16: memref<2x32x32xf32, #tpu.memory_space<vmem>>, %arg17: memref<2x1x32xf32, #tpu.memory_space<vmem>>, %arg18: memref<18x32xf32, #tpu.memory_space<vmem>>) attributes {dimension_semantics = [#tpu.dimension_semantics<arbitrary>], iteration_bounds = array<i64: 1>, scalar_prefetch = 0 : i64, scratch_operands = 0 : i64, tpu.core_type = #tpu.core_type<tc>, window_params = [{pipeline_mode = #tpu.pipeline_mode<synchronous>, transform_indices = @transform_0, window_bounds = array<i64: 18, 64>}, {pipeline_mode = #tpu.pipeline_mode<synchronous>, transform_indices = @transform_1, window_bounds = array<i64: 64, 32>}, {pipeline_mode = #tpu.pipeline_mode<synchronous>, transform_indices = @transform_2, window_bounds = array<i64: 18, 32>}, {pipeline_mode = #tpu.pipeline_mode<synchronous>, transform_indices = @transform_3, window_bounds = array<i64: 18, 18>}, {pipeline_mode = #tpu.pipeline_mode<synchronous>, transform_indices = @transform_4, window_bounds = array<i64: 2, 1, 32>}, {pipeline_mode = #tpu.pipeline_mode<synchronous>, transform_indices = @transform_5, window_bounds = array<i64: 2, 1, 32>}, {pipeline_mode = #tpu.pipeline_mode<synchronous>, transform_indices = @transform_6, window_bounds = array<i64: 2, 4, 32, 8>}, {pipeline_mode = #tpu.pipeline_mode<synchronous>, transform_indices = @transform_7, window_bounds = array<i64: 2, 4, 32, 8>}, {pipeline_mode = #tpu.pipeline_mode<synchronous>, transform_indices = @transform_8, window_bounds = array<i64: 2, 4, 32, 8>}, {pipeline_mode = #tpu.pipeline_mode<synchronous>, transform_indices = @transform_9, window_bounds = array<i64: 2, 4, 8, 32>}, {pipeline_mode = #tpu.pipeline_mode<synchronous>, transform_indices = @transform_10, window_bounds = array<i64: 2, 1, 32>}, {pipeline_mode = #tpu.pipeline_mode<synchronous>, transform_indices = @transform_11, window_bounds = array<i64: 2, 1, 32>}, {pipeline_mode = #tpu.pipeline_mode<synchronous>, transform_indices = @transform_12, window_bounds = array<i64: 2, 1, 32>}, {pipeline_mode = #tpu.pipeline_mode<synchronous>, transform_indices = @transform_13, window_bounds = array<i64: 2, 32, 32>}, {pipeline_mode = #tpu.pipeline_mode<synchronous>, transform_indices = @transform_14, window_bounds = array<i64: 2, 1, 32>}, {pipeline_mode = #tpu.pipeline_mode<synchronous>, transform_indices = @transform_15, window_bounds = array<i64: 2, 32, 32>}, {pipeline_mode = #tpu.pipeline_mode<synchronous>, transform_indices = @transform_16, window_bounds = array<i64: 2, 1, 32>}, {pipeline_mode = #tpu.pipeline_mode<synchronous>, transform_indices = @transform_17, window_bounds = array<i64: 18, 32>}]} {
    %c0 = arith.constant 0 : index
    %c0_0 = arith.constant 0 : index
    %0 = vector.load %arg1[%c0, %c0_0] : memref<18x64xf32, #tpu.memory_space<vmem>>, vector<18x64xf32>
    %c0_1 = arith.constant 0 : index
    %c0_2 = arith.constant 0 : index
    %1 = vector.load %arg2[%c0_1, %c0_2] : memref<64x32xf32, #tpu.memory_space<vmem>>, vector<64x32xf32>
    %cst = arith.constant dense<0.000000e+00> : vector<18x32xf32>
    %2 = tpu.matmul %0, %1, %cst {dimension_numbers = #tpu.dot_dimension_numbers<[1], [0], [0], [1], [0, 0, 1, 1], [], []>} : vector<18x64xf32>, vector<64x32xf32>, vector<18x32xf32> -> vector<18x32xf32>
    %c0_3 = arith.constant 0 : index
    %c0_4 = arith.constant 0 : index
    %3 = vector.load %arg3[%c0_3, %c0_4] : memref<18x32xf32, #tpu.memory_space<vmem>>, vector<18x32xf32>
    %4 = arith.addf %2, %3 : vector<18x32xf32>
    %c0_5 = arith.constant 0 : index
    %c0_6 = arith.constant 0 : index
    %5 = vector.load %arg4[%c0_5, %c0_6] : memref<18x18xf32, #tpu.memory_space<vmem>>, vector<18x18xf32>
    %c0_7 = arith.constant 0 : index
    %c0_8 = arith.constant 0 : index
    %c0_9 = arith.constant 0 : index
    %6 = vector.load %arg5[%c0_7, %c0_8, %c0_9] : memref<2x1x32xf32, #tpu.memory_space<vmem>>, vector<1x1x32xf32>
    %7 = vector.shape_cast %6 : vector<1x1x32xf32> to vector<1x32xf32>
    %c0_10 = arith.constant 0 : index
    %c0_11 = arith.constant 0 : index
    %c0_12 = arith.constant 0 : index
    %8 = vector.load %arg6[%c0_10, %c0_11, %c0_12] : memref<2x1x32xf32, #tpu.memory_space<vmem>>, vector<1x1x32xf32>
    %9 = vector.shape_cast %8 : vector<1x1x32xf32> to vector<1x32xf32>
    %cst_13 = arith.constant dense<0.000000e+00> : vector<18xf32>
    %10 = vector.multi_reduction <add>, %4, %cst_13 [1] : vector<18x32xf32> to vector<18xf32>
    %11 = vector.shape_cast %10 : vector<18xf32> to vector<18x1xf32>
    %cst_14 = arith.constant 3.200000e+01 : f32
    %12 = vector.broadcast %cst_14 : f32 to vector<18x1xf32>
    %13 = arith.divf %11, %12 : vector<18x1xf32>
    %14 = vector.broadcast %13 : vector<18x1xf32> to vector<18x32xf32>
    %15 = arith.subf %4, %14 : vector<18x32xf32>
    %16 = arith.mulf %15, %15 : vector<18x32xf32>
    %cst_15 = arith.constant dense<0.000000e+00> : vector<18xf32>
    %17 = vector.multi_reduction <add>, %16, %cst_15 [1] : vector<18x32xf32> to vector<18xf32>
    %18 = vector.shape_cast %17 : vector<18xf32> to vector<18x1xf32>
    %cst_16 = arith.constant 3.200000e+01 : f32
    %19 = vector.broadcast %cst_16 : f32 to vector<18x1xf32>
    %20 = arith.divf %18, %19 : vector<18x1xf32>
    %cst_17 = arith.constant 9.99999974E-6 : f32
    %21 = vector.broadcast %cst_17 : f32 to vector<18x1xf32>
    %22 = arith.addf %20, %21 : vector<18x1xf32>
    %23 = math.rsqrt %22 : vector<18x1xf32>
    %24 = vector.broadcast %23 : vector<18x1xf32> to vector<18x32xf32>
    %25 = arith.mulf %15, %24 : vector<18x32xf32>
    %26 = vector.broadcast %7 : vector<1x32xf32> to vector<18x32xf32>
    %27 = arith.mulf %25, %26 : vector<18x32xf32>
    %28 = vector.broadcast %9 : vector<1x32xf32> to vector<18x32xf32>
    %29 = arith.addf %27, %28 : vector<18x32xf32>
    %cst_18 = arith.constant 0.000000e+00 : f32
    %30 = vector.broadcast %cst_18 : f32 to vector<18x32xf32>
    %c0_19 = arith.constant 0 : index
    %c0_20 = arith.constant 0 : index
    %c0_21 = arith.constant 0 : index
    %c0_22 = arith.constant 0 : index
    %31 = vector.load %arg7[%c0_19, %c0_20, %c0_21, %c0_22] : memref<2x4x32x8xf32, #tpu.memory_space<vmem>>, vector<1x1x32x8xf32>
    %32 = vector.shape_cast %31 : vector<1x1x32x8xf32> to vector<32x8xf32>
    %cst_23 = arith.constant dense<0.000000e+00> : vector<18x8xf32>
    %33 = tpu.matmul %29, %32, %cst_23 {dimension_numbers = #tpu.dot_dimension_numbers<[1], [0], [0], [1], [0, 0, 1, 1], [], []>} : vector<18x32xf32>, vector<32x8xf32>, vector<18x8xf32> -> vector<18x8xf32>
    %c0_24 = arith.constant 0 : index
    %c0_25 = arith.constant 0 : index
    %c0_26 = arith.constant 0 : index
    %c0_27 = arith.constant 0 : index
    %34 = vector.load %arg8[%c0_24, %c0_25, %c0_26, %c0_27] : memref<2x4x32x8xf32, #tpu.memory_space<vmem>>, vector<1x1x32x8xf32>
    %35 = vector.shape_cast %34 : vector<1x1x32x8xf32> to vector<32x8xf32>
    %cst_28 = arith.constant dense<0.000000e+00> : vector<18x8xf32>
    %36 = tpu.matmul %29, %35, %cst_28 {dimension_numbers = #tpu.dot_dimension_numbers<[1], [0], [0], [1], [0, 0, 1, 1], [], []>} : vector<18x32xf32>, vector<32x8xf32>, vector<18x8xf32> -> vector<18x8xf32>
    %c0_29 = arith.constant 0 : index
    %c0_30 = arith.constant 0 : index
    %c0_31 = arith.constant 0 : index
    %c0_32 = arith.constant 0 : index
    %37 = vector.load %arg9[%c0_29, %c0_30, %c0_31, %c0_32] : memref<2x4x32x8xf32, #tpu.memory_space<vmem>>, vector<1x1x32x8xf32>
    %38 = vector.shape_cast %37 : vector<1x1x32x8xf32> to vector<32x8xf32>
    %cst_33 = arith.constant dense<0.000000e+00> : vector<18x8xf32>
    %39 = tpu.matmul %29, %38, %cst_33 {dimension_numbers = #tpu.dot_dimension_numbers<[1], [0], [0], [1], [0, 0, 1, 1], [], []>} : vector<18x32xf32>, vector<32x8xf32>, vector<18x8xf32> -> vector<18x8xf32>
    %cst_34 = arith.constant dense<0.000000e+00> : vector<18x18xf32>
    %40 = tpu.matmul %33, %36, %cst_34 {dimension_numbers = #tpu.dot_dimension_numbers<[1], [1], [0], [0], [0, 0, 1, 0], [], []>} : vector<18x8xf32>, vector<18x8xf32>, vector<18x18xf32> -> vector<18x18xf32>
    %cst_35 = arith.constant 0.353553385 : f32
    %41 = vector.broadcast %cst_35 : f32 to vector<18x18xf32>
    %42 = arith.mulf %40, %41 : vector<18x18xf32>
    %43 = arith.addf %42, %5 : vector<18x18xf32>
    %cst_36 = arith.constant dense<0xFF800000> : vector<18xf32>
    %44 = vector.multi_reduction <maximumf>, %43, %cst_36 [1] : vector<18x18xf32> to vector<18xf32>
    %45 = vector.shape_cast %44 : vector<18xf32> to vector<18x1xf32>
    %46 = vector.broadcast %45 : vector<18x1xf32> to vector<18x18xf32>
    %47 = arith.subf %43, %46 : vector<18x18xf32>
    %48 = math.exp %47 : vector<18x18xf32>
    %cst_37 = arith.constant dense<0.000000e+00> : vector<18xf32>
    %49 = vector.multi_reduction <add>, %48, %cst_37 [1] : vector<18x18xf32> to vector<18xf32>
    %50 = vector.shape_cast %49 : vector<18xf32> to vector<18x1xf32>
    %51 = tpu.reciprocal %50 {approx = true} : vector<18x1xf32> -> vector<18x1xf32>
    %52 = vector.broadcast %51 : vector<18x1xf32> to vector<18x18xf32>
    %53 = arith.mulf %48, %52 : vector<18x18xf32>
    %cst_38 = arith.constant dense<0.000000e+00> : vector<18x8xf32>
    %54 = tpu.matmul %53, %39, %cst_38 {dimension_numbers = #tpu.dot_dimension_numbers<[1], [0], [0], [1], [0, 0, 1, 1], [], []>} : vector<18x18xf32>, vector<18x8xf32>, vector<18x8xf32> -> vector<18x8xf32>
    %c0_39 = arith.constant 0 : index
    %c0_40 = arith.constant 0 : index
    %c0_41 = arith.constant 0 : index
    %c0_42 = arith.constant 0 : index
    %55 = vector.load %arg10[%c0_39, %c0_40, %c0_41, %c0_42] : memref<2x4x8x32xf32, #tpu.memory_space<vmem>>, vector<1x1x8x32xf32>
    %56 = vector.shape_cast %55 : vector<1x1x8x32xf32> to vector<8x32xf32>
    %cst_43 = arith.constant dense<0.000000e+00> : vector<18x32xf32>
    %57 = tpu.matmul %54, %56, %cst_43 {dimension_numbers = #tpu.dot_dimension_numbers<[1], [0], [0], [1], [0, 0, 1, 1], [], []>} : vector<18x8xf32>, vector<8x32xf32>, vector<18x32xf32> -> vector<18x32xf32>
    %58 = arith.addf %30, %57 : vector<18x32xf32>
    %c0_44 = arith.constant 0 : index
    %c1 = arith.constant 1 : index
    %c0_45 = arith.constant 0 : index
    %c0_46 = arith.constant 0 : index
    %59 = vector.load %arg7[%c0_44, %c1, %c0_45, %c0_46] : memref<2x4x32x8xf32, #tpu.memory_space<vmem>>, vector<1x1x32x8xf32>
    %60 = vector.shape_cast %59 : vector<1x1x32x8xf32> to vector<32x8xf32>
    %cst_47 = arith.constant dense<0.000000e+00> : vector<18x8xf32>
    %61 = tpu.matmul %29, %60, %cst_47 {dimension_numbers = #tpu.dot_dimension_numbers<[1], [0], [0], [1], [0, 0, 1, 1], [], []>} : vector<18x32xf32>, vector<32x8xf32>, vector<18x8xf32> -> vector<18x8xf32>
    %c0_48 = arith.constant 0 : index
    %c1_49 = arith.constant 1 : index
    %c0_50 = arith.constant 0 : index
    %c0_51 = arith.constant 0 : index
    %62 = vector.load %arg8[%c0_48, %c1_49, %c0_50, %c0_51] : memref<2x4x32x8xf32, #tpu.memory_space<vmem>>, vector<1x1x32x8xf32>
    %63 = vector.shape_cast %62 : vector<1x1x32x8xf32> to vector<32x8xf32>
    %cst_52 = arith.constant dense<0.000000e+00> : vector<18x8xf32>
    %64 = tpu.matmul %29, %63, %cst_52 {dimension_numbers = #tpu.dot_dimension_numbers<[1], [0], [0], [1], [0, 0, 1, 1], [], []>} : vector<18x32xf32>, vector<32x8xf32>, vector<18x8xf32> -> vector<18x8xf32>
    %c0_53 = arith.constant 0 : index
    %c1_54 = arith.constant 1 : index
    %c0_55 = arith.constant 0 : index
    %c0_56 = arith.constant 0 : index
    %65 = vector.load %arg9[%c0_53, %c1_54, %c0_55, %c0_56] : memref<2x4x32x8xf32, #tpu.memory_space<vmem>>, vector<1x1x32x8xf32>
    %66 = vector.shape_cast %65 : vector<1x1x32x8xf32> to vector<32x8xf32>
    %cst_57 = arith.constant dense<0.000000e+00> : vector<18x8xf32>
    %67 = tpu.matmul %29, %66, %cst_57 {dimension_numbers = #tpu.dot_dimension_numbers<[1], [0], [0], [1], [0, 0, 1, 1], [], []>} : vector<18x32xf32>, vector<32x8xf32>, vector<18x8xf32> -> vector<18x8xf32>
    %cst_58 = arith.constant dense<0.000000e+00> : vector<18x18xf32>
    %68 = tpu.matmul %61, %64, %cst_58 {dimension_numbers = #tpu.dot_dimension_numbers<[1], [1], [0], [0], [0, 0, 1, 0], [], []>} : vector<18x8xf32>, vector<18x8xf32>, vector<18x18xf32> -> vector<18x18xf32>
    %cst_59 = arith.constant 0.353553385 : f32
    %69 = vector.broadcast %cst_59 : f32 to vector<18x18xf32>
    %70 = arith.mulf %68, %69 : vector<18x18xf32>
    %71 = arith.addf %70, %5 : vector<18x18xf32>
    %cst_60 = arith.constant dense<0xFF800000> : vector<18xf32>
    %72 = vector.multi_reduction <maximumf>, %71, %cst_60 [1] : vector<18x18xf32> to vector<18xf32>
    %73 = vector.shape_cast %72 : vector<18xf32> to vector<18x1xf32>
    %74 = vector.broadcast %73 : vector<18x1xf32> to vector<18x18xf32>
    %75 = arith.subf %71, %74 : vector<18x18xf32>
    %76 = math.exp %75 : vector<18x18xf32>
    %cst_61 = arith.constant dense<0.000000e+00> : vector<18xf32>
    %77 = vector.multi_reduction <add>, %76, %cst_61 [1] : vector<18x18xf32> to vector<18xf32>
    %78 = vector.shape_cast %77 : vector<18xf32> to vector<18x1xf32>
    %79 = tpu.reciprocal %78 {approx = true} : vector<18x1xf32> -> vector<18x1xf32>
    %80 = vector.broadcast %79 : vector<18x1xf32> to vector<18x18xf32>
    %81 = arith.mulf %76, %80 : vector<18x18xf32>
    %cst_62 = arith.constant dense<0.000000e+00> : vector<18x8xf32>
    %82 = tpu.matmul %81, %67, %cst_62 {dimension_numbers = #tpu.dot_dimension_numbers<[1], [0], [0], [1], [0, 0, 1, 1], [], []>} : vector<18x18xf32>, vector<18x8xf32>, vector<18x8xf32> -> vector<18x8xf32>
    %c0_63 = arith.constant 0 : index
    %c1_64 = arith.constant 1 : index
    %c0_65 = arith.constant 0 : index
    %c0_66 = arith.constant 0 : index
    %83 = vector.load %arg10[%c0_63, %c1_64, %c0_65, %c0_66] : memref<2x4x8x32xf32, #tpu.memory_space<vmem>>, vector<1x1x8x32xf32>
    %84 = vector.shape_cast %83 : vector<1x1x8x32xf32> to vector<8x32xf32>
    %cst_67 = arith.constant dense<0.000000e+00> : vector<18x32xf32>
    %85 = tpu.matmul %82, %84, %cst_67 {dimension_numbers = #tpu.dot_dimension_numbers<[1], [0], [0], [1], [0, 0, 1, 1], [], []>} : vector<18x8xf32>, vector<8x32xf32>, vector<18x32xf32> -> vector<18x32xf32>
    %86 = arith.addf %58, %85 : vector<18x32xf32>
    %c0_68 = arith.constant 0 : index
    %c2 = arith.constant 2 : index
    %c0_69 = arith.constant 0 : index
    %c0_70 = arith.constant 0 : index
    %87 = vector.load %arg7[%c0_68, %c2, %c0_69, %c0_70] : memref<2x4x32x8xf32, #tpu.memory_space<vmem>>, vector<1x1x32x8xf32>
    %88 = vector.shape_cast %87 : vector<1x1x32x8xf32> to vector<32x8xf32>
    %cst_71 = arith.constant dense<0.000000e+00> : vector<18x8xf32>
    %89 = tpu.matmul %29, %88, %cst_71 {dimension_numbers = #tpu.dot_dimension_numbers<[1], [0], [0], [1], [0, 0, 1, 1], [], []>} : vector<18x32xf32>, vector<32x8xf32>, vector<18x8xf32> -> vector<18x8xf32>
    %c0_72 = arith.constant 0 : index
    %c2_73 = arith.constant 2 : index
    %c0_74 = arith.constant 0 : index
    %c0_75 = arith.constant 0 : index
    %90 = vector.load %arg8[%c0_72, %c2_73, %c0_74, %c0_75] : memref<2x4x32x8xf32, #tpu.memory_space<vmem>>, vector<1x1x32x8xf32>
    %91 = vector.shape_cast %90 : vector<1x1x32x8xf32> to vector<32x8xf32>
    %cst_76 = arith.constant dense<0.000000e+00> : vector<18x8xf32>
    %92 = tpu.matmul %29, %91, %cst_76 {dimension_numbers = #tpu.dot_dimension_numbers<[1], [0], [0], [1], [0, 0, 1, 1], [], []>} : vector<18x32xf32>, vector<32x8xf32>, vector<18x8xf32> -> vector<18x8xf32>
    %c0_77 = arith.constant 0 : index
    %c2_78 = arith.constant 2 : index
    %c0_79 = arith.constant 0 : index
    %c0_80 = arith.constant 0 : index
    %93 = vector.load %arg9[%c0_77, %c2_78, %c0_79, %c0_80] : memref<2x4x32x8xf32, #tpu.memory_space<vmem>>, vector<1x1x32x8xf32>
    %94 = vector.shape_cast %93 : vector<1x1x32x8xf32> to vector<32x8xf32>
    %cst_81 = arith.constant dense<0.000000e+00> : vector<18x8xf32>
    %95 = tpu.matmul %29, %94, %cst_81 {dimension_numbers = #tpu.dot_dimension_numbers<[1], [0], [0], [1], [0, 0, 1, 1], [], []>} : vector<18x32xf32>, vector<32x8xf32>, vector<18x8xf32> -> vector<18x8xf32>
    %cst_82 = arith.constant dense<0.000000e+00> : vector<18x18xf32>
    %96 = tpu.matmul %89, %92, %cst_82 {dimension_numbers = #tpu.dot_dimension_numbers<[1], [1], [0], [0], [0, 0, 1, 0], [], []>} : vector<18x8xf32>, vector<18x8xf32>, vector<18x18xf32> -> vector<18x18xf32>
    %cst_83 = arith.constant 0.353553385 : f32
    %97 = vector.broadcast %cst_83 : f32 to vector<18x18xf32>
    %98 = arith.mulf %96, %97 : vector<18x18xf32>
    %99 = arith.addf %98, %5 : vector<18x18xf32>
    %cst_84 = arith.constant dense<0xFF800000> : vector<18xf32>
    %100 = vector.multi_reduction <maximumf>, %99, %cst_84 [1] : vector<18x18xf32> to vector<18xf32>
    %101 = vector.shape_cast %100 : vector<18xf32> to vector<18x1xf32>
    %102 = vector.broadcast %101 : vector<18x1xf32> to vector<18x18xf32>
    %103 = arith.subf %99, %102 : vector<18x18xf32>
    %104 = math.exp %103 : vector<18x18xf32>
    %cst_85 = arith.constant dense<0.000000e+00> : vector<18xf32>
    %105 = vector.multi_reduction <add>, %104, %cst_85 [1] : vector<18x18xf32> to vector<18xf32>
    %106 = vector.shape_cast %105 : vector<18xf32> to vector<18x1xf32>
    %107 = tpu.reciprocal %106 {approx = true} : vector<18x1xf32> -> vector<18x1xf32>
    %108 = vector.broadcast %107 : vector<18x1xf32> to vector<18x18xf32>
    %109 = arith.mulf %104, %108 : vector<18x18xf32>
    %cst_86 = arith.constant dense<0.000000e+00> : vector<18x8xf32>
    %110 = tpu.matmul %109, %95, %cst_86 {dimension_numbers = #tpu.dot_dimension_numbers<[1], [0], [0], [1], [0, 0, 1, 1], [], []>} : vector<18x18xf32>, vector<18x8xf32>, vector<18x8xf32> -> vector<18x8xf32>
    %c0_87 = arith.constant 0 : index
    %c2_88 = arith.constant 2 : index
    %c0_89 = arith.constant 0 : index
    %c0_90 = arith.constant 0 : index
    %111 = vector.load %arg10[%c0_87, %c2_88, %c0_89, %c0_90] : memref<2x4x8x32xf32, #tpu.memory_space<vmem>>, vector<1x1x8x32xf32>
    %112 = vector.shape_cast %111 : vector<1x1x8x32xf32> to vector<8x32xf32>
    %cst_91 = arith.constant dense<0.000000e+00> : vector<18x32xf32>
    %113 = tpu.matmul %110, %112, %cst_91 {dimension_numbers = #tpu.dot_dimension_numbers<[1], [0], [0], [1], [0, 0, 1, 1], [], []>} : vector<18x8xf32>, vector<8x32xf32>, vector<18x32xf32> -> vector<18x32xf32>
    %114 = arith.addf %86, %113 : vector<18x32xf32>
    %c0_92 = arith.constant 0 : index
    %c3 = arith.constant 3 : index
    %c0_93 = arith.constant 0 : index
    %c0_94 = arith.constant 0 : index
    %115 = vector.load %arg7[%c0_92, %c3, %c0_93, %c0_94] : memref<2x4x32x8xf32, #tpu.memory_space<vmem>>, vector<1x1x32x8xf32>
    %116 = vector.shape_cast %115 : vector<1x1x32x8xf32> to vector<32x8xf32>
    %cst_95 = arith.constant dense<0.000000e+00> : vector<18x8xf32>
    %117 = tpu.matmul %29, %116, %cst_95 {dimension_numbers = #tpu.dot_dimension_numbers<[1], [0], [0], [1], [0, 0, 1, 1], [], []>} : vector<18x32xf32>, vector<32x8xf32>, vector<18x8xf32> -> vector<18x8xf32>
    %c0_96 = arith.constant 0 : index
    %c3_97 = arith.constant 3 : index
    %c0_98 = arith.constant 0 : index
    %c0_99 = arith.constant 0 : index
    %118 = vector.load %arg8[%c0_96, %c3_97, %c0_98, %c0_99] : memref<2x4x32x8xf32, #tpu.memory_space<vmem>>, vector<1x1x32x8xf32>
    %119 = vector.shape_cast %118 : vector<1x1x32x8xf32> to vector<32x8xf32>
    %cst_100 = arith.constant dense<0.000000e+00> : vector<18x8xf32>
    %120 = tpu.matmul %29, %119, %cst_100 {dimension_numbers = #tpu.dot_dimension_numbers<[1], [0], [0], [1], [0, 0, 1, 1], [], []>} : vector<18x32xf32>, vector<32x8xf32>, vector<18x8xf32> -> vector<18x8xf32>
    %c0_101 = arith.constant 0 : index
    %c3_102 = arith.constant 3 : index
    %c0_103 = arith.constant 0 : index
    %c0_104 = arith.constant 0 : index
    %121 = vector.load %arg9[%c0_101, %c3_102, %c0_103, %c0_104] : memref<2x4x32x8xf32, #tpu.memory_space<vmem>>, vector<1x1x32x8xf32>
    %122 = vector.shape_cast %121 : vector<1x1x32x8xf32> to vector<32x8xf32>
    %cst_105 = arith.constant dense<0.000000e+00> : vector<18x8xf32>
    %123 = tpu.matmul %29, %122, %cst_105 {dimension_numbers = #tpu.dot_dimension_numbers<[1], [0], [0], [1], [0, 0, 1, 1], [], []>} : vector<18x32xf32>, vector<32x8xf32>, vector<18x8xf32> -> vector<18x8xf32>
    %cst_106 = arith.constant dense<0.000000e+00> : vector<18x18xf32>
    %124 = tpu.matmul %117, %120, %cst_106 {dimension_numbers = #tpu.dot_dimension_numbers<[1], [1], [0], [0], [0, 0, 1, 0], [], []>} : vector<18x8xf32>, vector<18x8xf32>, vector<18x18xf32> -> vector<18x18xf32>
    %cst_107 = arith.constant 0.353553385 : f32
    %125 = vector.broadcast %cst_107 : f32 to vector<18x18xf32>
    %126 = arith.mulf %124, %125 : vector<18x18xf32>
    %127 = arith.addf %126, %5 : vector<18x18xf32>
    %cst_108 = arith.constant dense<0xFF800000> : vector<18xf32>
    %128 = vector.multi_reduction <maximumf>, %127, %cst_108 [1] : vector<18x18xf32> to vector<18xf32>
    %129 = vector.shape_cast %128 : vector<18xf32> to vector<18x1xf32>
    %130 = vector.broadcast %129 : vector<18x1xf32> to vector<18x18xf32>
    %131 = arith.subf %127, %130 : vector<18x18xf32>
    %132 = math.exp %131 : vector<18x18xf32>
    %cst_109 = arith.constant dense<0.000000e+00> : vector<18xf32>
    %133 = vector.multi_reduction <add>, %132, %cst_109 [1] : vector<18x18xf32> to vector<18xf32>
    %134 = vector.shape_cast %133 : vector<18xf32> to vector<18x1xf32>
    %135 = tpu.reciprocal %134 {approx = true} : vector<18x1xf32> -> vector<18x1xf32>
    %136 = vector.broadcast %135 : vector<18x1xf32> to vector<18x18xf32>
    %137 = arith.mulf %132, %136 : vector<18x18xf32>
    %cst_110 = arith.constant dense<0.000000e+00> : vector<18x8xf32>
    %138 = tpu.matmul %137, %123, %cst_110 {dimension_numbers = #tpu.dot_dimension_numbers<[1], [0], [0], [1], [0, 0, 1, 1], [], []>} : vector<18x18xf32>, vector<18x8xf32>, vector<18x8xf32> -> vector<18x8xf32>
    %c0_111 = arith.constant 0 : index
    %c3_112 = arith.constant 3 : index
    %c0_113 = arith.constant 0 : index
    %c0_114 = arith.constant 0 : index
    %139 = vector.load %arg10[%c0_111, %c3_112, %c0_113, %c0_114] : memref<2x4x8x32xf32, #tpu.memory_space<vmem>>, vector<1x1x8x32xf32>
    %140 = vector.shape_cast %139 : vector<1x1x8x32xf32> to vector<8x32xf32>
    %cst_115 = arith.constant dense<0.000000e+00> : vector<18x32xf32>
    %141 = tpu.matmul %138, %140, %cst_115 {dimension_numbers = #tpu.dot_dimension_numbers<[1], [0], [0], [1], [0, 0, 1, 1], [], []>} : vector<18x8xf32>, vector<8x32xf32>, vector<18x32xf32> -> vector<18x32xf32>
    %142 = arith.addf %114, %141 : vector<18x32xf32>
    %143 = arith.addf %4, %142 : vector<18x32xf32>
    %c0_116 = arith.constant 0 : index
    %c0_117 = arith.constant 0 : index
    %c0_118 = arith.constant 0 : index
    %144 = vector.load %arg11[%c0_116, %c0_117, %c0_118] : memref<2x1x32xf32, #tpu.memory_space<vmem>>, vector<1x1x32xf32>
    %145 = vector.shape_cast %144 : vector<1x1x32xf32> to vector<1x32xf32>
    %146 = vector.broadcast %145 : vector<1x32xf32> to vector<18x32xf32>
    %147 = arith.addf %143, %146 : vector<18x32xf32>
    %c0_119 = arith.constant 0 : index
    %c0_120 = arith.constant 0 : index
    %c0_121 = arith.constant 0 : index
    %148 = vector.load %arg12[%c0_119, %c0_120, %c0_121] : memref<2x1x32xf32, #tpu.memory_space<vmem>>, vector<1x1x32xf32>
    %149 = vector.shape_cast %148 : vector<1x1x32xf32> to vector<1x32xf32>
    %c0_122 = arith.constant 0 : index
    %c0_123 = arith.constant 0 : index
    %c0_124 = arith.constant 0 : index
    %150 = vector.load %arg13[%c0_122, %c0_123, %c0_124] : memref<2x1x32xf32, #tpu.memory_space<vmem>>, vector<1x1x32xf32>
    %151 = vector.shape_cast %150 : vector<1x1x32xf32> to vector<1x32xf32>
    %cst_125 = arith.constant dense<0.000000e+00> : vector<18xf32>
    %152 = vector.multi_reduction <add>, %147, %cst_125 [1] : vector<18x32xf32> to vector<18xf32>
    %153 = vector.shape_cast %152 : vector<18xf32> to vector<18x1xf32>
    %cst_126 = arith.constant 3.200000e+01 : f32
    %154 = vector.broadcast %cst_126 : f32 to vector<18x1xf32>
    %155 = arith.divf %153, %154 : vector<18x1xf32>
    %156 = vector.broadcast %155 : vector<18x1xf32> to vector<18x32xf32>
    %157 = arith.subf %147, %156 : vector<18x32xf32>
    %158 = arith.mulf %157, %157 : vector<18x32xf32>
    %cst_127 = arith.constant dense<0.000000e+00> : vector<18xf32>
    %159 = vector.multi_reduction <add>, %158, %cst_127 [1] : vector<18x32xf32> to vector<18xf32>
    %160 = vector.shape_cast %159 : vector<18xf32> to vector<18x1xf32>
    %cst_128 = arith.constant 3.200000e+01 : f32
    %161 = vector.broadcast %cst_128 : f32 to vector<18x1xf32>
    %162 = arith.divf %160, %161 : vector<18x1xf32>
    %cst_129 = arith.constant 9.99999974E-6 : f32
    %163 = vector.broadcast %cst_129 : f32 to vector<18x1xf32>
    %164 = arith.addf %162, %163 : vector<18x1xf32>
    %165 = math.rsqrt %164 : vector<18x1xf32>
    %166 = vector.broadcast %165 : vector<18x1xf32> to vector<18x32xf32>
    %167 = arith.mulf %157, %166 : vector<18x32xf32>
    %168 = vector.broadcast %149 : vector<1x32xf32> to vector<18x32xf32>
    %169 = arith.mulf %167, %168 : vector<18x32xf32>
    %170 = vector.broadcast %151 : vector<1x32xf32> to vector<18x32xf32>
    %171 = arith.addf %169, %170 : vector<18x32xf32>
    %c0_130 = arith.constant 0 : index
    %c0_131 = arith.constant 0 : index
    %c0_132 = arith.constant 0 : index
    %172 = vector.load %arg14[%c0_130, %c0_131, %c0_132] : memref<2x32x32xf32, #tpu.memory_space<vmem>>, vector<1x32x32xf32>
    %173 = vector.shape_cast %172 : vector<1x32x32xf32> to vector<32x32xf32>
    %cst_133 = arith.constant dense<0.000000e+00> : vector<18x32xf32>
    %174 = tpu.matmul %171, %173, %cst_133 {dimension_numbers = #tpu.dot_dimension_numbers<[1], [0], [0], [1], [0, 0, 1, 1], [], []>} : vector<18x32xf32>, vector<32x32xf32>, vector<18x32xf32> -> vector<18x32xf32>
    %c0_134 = arith.constant 0 : index
    %c0_135 = arith.constant 0 : index
    %c0_136 = arith.constant 0 : index
    %175 = vector.load %arg15[%c0_134, %c0_135, %c0_136] : memref<2x1x32xf32, #tpu.memory_space<vmem>>, vector<1x1x32xf32>
    %176 = vector.shape_cast %175 : vector<1x1x32xf32> to vector<1x32xf32>
    %177 = vector.broadcast %176 : vector<1x32xf32> to vector<18x32xf32>
    %178 = arith.addf %174, %177 : vector<18x32xf32>
    %cst_137 = arith.constant 5.000000e-01 : f32
    %179 = vector.broadcast %cst_137 : f32 to vector<18x32xf32>
    %180 = arith.mulf %179, %178 : vector<18x32xf32>
    %cst_138 = arith.constant 0.707106769 : f32
    %181 = vector.broadcast %cst_138 : f32 to vector<18x32xf32>
    %182 = arith.mulf %178, %181 : vector<18x32xf32>
    %cst_139 = arith.constant 0.000000e+00 : f32
    %183 = vector.broadcast %cst_139 : f32 to vector<18x32xf32>
    %184 = arith.cmpf oge, %182, %183 : vector<18x32xf32>
    %cst_140 = arith.constant 1.000000e+00 : f32
    %cst_141 = arith.constant -1.000000e+00 : f32
    %185 = vector.broadcast %cst_140 : f32 to vector<18x32xf32>
    %186 = vector.broadcast %cst_141 : f32 to vector<18x32xf32>
    %187 = arith.select %184, %185, %186 : vector<18x32xi1>, vector<18x32xf32>
    %188 = math.absf %182 : vector<18x32xf32>
    %cst_142 = arith.constant 0.327591091 : f32
    %189 = vector.broadcast %cst_142 : f32 to vector<18x32xf32>
    %190 = arith.mulf %189, %188 : vector<18x32xf32>
    %cst_143 = arith.constant 1.000000e+00 : f32
    %191 = vector.broadcast %cst_143 : f32 to vector<18x32xf32>
    %192 = arith.addf %191, %190 : vector<18x32xf32>
    %cst_144 = arith.constant 1.000000e+00 : f32
    %193 = vector.broadcast %cst_144 : f32 to vector<18x32xf32>
    %194 = arith.divf %193, %192 : vector<18x32xf32>
    %cst_145 = arith.constant 1.06140542 : f32
    %195 = vector.broadcast %cst_145 : f32 to vector<18x32xf32>
    %196 = arith.mulf %195, %194 : vector<18x32xf32>
    %cst_146 = arith.constant -1.45315206 : f32
    %197 = vector.broadcast %cst_146 : f32 to vector<18x32xf32>
    %198 = arith.addf %196, %197 : vector<18x32xf32>
    %199 = arith.mulf %198, %194 : vector<18x32xf32>
    %cst_147 = arith.constant 1.42141378 : f32
    %200 = vector.broadcast %cst_147 : f32 to vector<18x32xf32>
    %201 = arith.addf %199, %200 : vector<18x32xf32>
    %202 = arith.mulf %201, %194 : vector<18x32xf32>
    %cst_148 = arith.constant -0.284496725 : f32
    %203 = vector.broadcast %cst_148 : f32 to vector<18x32xf32>
    %204 = arith.addf %202, %203 : vector<18x32xf32>
    %205 = arith.mulf %204, %194 : vector<18x32xf32>
    %cst_149 = arith.constant 0.254829586 : f32
    %206 = vector.broadcast %cst_149 : f32 to vector<18x32xf32>
    %207 = arith.addf %205, %206 : vector<18x32xf32>
    %208 = arith.mulf %207, %194 : vector<18x32xf32>
    %cst_150 = arith.constant 0.000000e+00 : f32
    %209 = vector.broadcast %cst_150 : f32 to vector<18x32xf32>
    %210 = arith.subf %209, %188 : vector<18x32xf32>
    %211 = arith.mulf %210, %188 : vector<18x32xf32>
    %212 = math.exp %211 : vector<18x32xf32>
    %213 = arith.mulf %208, %212 : vector<18x32xf32>
    %cst_151 = arith.constant 1.000000e+00 : f32
    %214 = vector.broadcast %cst_151 : f32 to vector<18x32xf32>
    %215 = arith.subf %214, %213 : vector<18x32xf32>
    %216 = arith.mulf %187, %215 : vector<18x32xf32>
    %cst_152 = arith.constant 1.000000e+00 : f32
    %217 = vector.broadcast %cst_152 : f32 to vector<18x32xf32>
    %218 = arith.addf %217, %216 : vector<18x32xf32>
    %219 = arith.mulf %180, %218 : vector<18x32xf32>
    %c0_153 = arith.constant 0 : index
    %c0_154 = arith.constant 0 : index
    %c0_155 = arith.constant 0 : index
    %220 = vector.load %arg16[%c0_153, %c0_154, %c0_155] : memref<2x32x32xf32, #tpu.memory_space<vmem>>, vector<1x32x32xf32>
    %221 = vector.shape_cast %220 : vector<1x32x32xf32> to vector<32x32xf32>
    %cst_156 = arith.constant dense<0.000000e+00> : vector<18x32xf32>
    %222 = tpu.matmul %219, %221, %cst_156 {dimension_numbers = #tpu.dot_dimension_numbers<[1], [0], [0], [1], [0, 0, 1, 1], [], []>} : vector<18x32xf32>, vector<32x32xf32>, vector<18x32xf32> -> vector<18x32xf32>
    %223 = arith.addf %147, %222 : vector<18x32xf32>
    %c0_157 = arith.constant 0 : index
    %c0_158 = arith.constant 0 : index
    %c0_159 = arith.constant 0 : index
    %224 = vector.load %arg17[%c0_157, %c0_158, %c0_159] : memref<2x1x32xf32, #tpu.memory_space<vmem>>, vector<1x1x32xf32>
    %225 = vector.shape_cast %224 : vector<1x1x32xf32> to vector<1x32xf32>
    %226 = vector.broadcast %225 : vector<1x32xf32> to vector<18x32xf32>
    %227 = arith.addf %223, %226 : vector<18x32xf32>
    %c1_160 = arith.constant 1 : index
    %c0_161 = arith.constant 0 : index
    %c0_162 = arith.constant 0 : index
    %228 = vector.load %arg5[%c1_160, %c0_161, %c0_162] : memref<2x1x32xf32, #tpu.memory_space<vmem>>, vector<1x1x32xf32>
    %229 = vector.shape_cast %228 : vector<1x1x32xf32> to vector<1x32xf32>
    %c1_163 = arith.constant 1 : index
    %c0_164 = arith.constant 0 : index
    %c0_165 = arith.constant 0 : index
    %230 = vector.load %arg6[%c1_163, %c0_164, %c0_165] : memref<2x1x32xf32, #tpu.memory_space<vmem>>, vector<1x1x32xf32>
    %231 = vector.shape_cast %230 : vector<1x1x32xf32> to vector<1x32xf32>
    %cst_166 = arith.constant dense<0.000000e+00> : vector<18xf32>
    %232 = vector.multi_reduction <add>, %227, %cst_166 [1] : vector<18x32xf32> to vector<18xf32>
    %233 = vector.shape_cast %232 : vector<18xf32> to vector<18x1xf32>
    %cst_167 = arith.constant 3.200000e+01 : f32
    %234 = vector.broadcast %cst_167 : f32 to vector<18x1xf32>
    %235 = arith.divf %233, %234 : vector<18x1xf32>
    %236 = vector.broadcast %235 : vector<18x1xf32> to vector<18x32xf32>
    %237 = arith.subf %227, %236 : vector<18x32xf32>
    %238 = arith.mulf %237, %237 : vector<18x32xf32>
    %cst_168 = arith.constant dense<0.000000e+00> : vector<18xf32>
    %239 = vector.multi_reduction <add>, %238, %cst_168 [1] : vector<18x32xf32> to vector<18xf32>
    %240 = vector.shape_cast %239 : vector<18xf32> to vector<18x1xf32>
    %cst_169 = arith.constant 3.200000e+01 : f32
    %241 = vector.broadcast %cst_169 : f32 to vector<18x1xf32>
    %242 = arith.divf %240, %241 : vector<18x1xf32>
    %cst_170 = arith.constant 9.99999974E-6 : f32
    %243 = vector.broadcast %cst_170 : f32 to vector<18x1xf32>
    %244 = arith.addf %242, %243 : vector<18x1xf32>
    %245 = math.rsqrt %244 : vector<18x1xf32>
    %246 = vector.broadcast %245 : vector<18x1xf32> to vector<18x32xf32>
    %247 = arith.mulf %237, %246 : vector<18x32xf32>
    %248 = vector.broadcast %229 : vector<1x32xf32> to vector<18x32xf32>
    %249 = arith.mulf %247, %248 : vector<18x32xf32>
    %250 = vector.broadcast %231 : vector<1x32xf32> to vector<18x32xf32>
    %251 = arith.addf %249, %250 : vector<18x32xf32>
    %cst_171 = arith.constant 0.000000e+00 : f32
    %252 = vector.broadcast %cst_171 : f32 to vector<18x32xf32>
    %c1_172 = arith.constant 1 : index
    %c0_173 = arith.constant 0 : index
    %c0_174 = arith.constant 0 : index
    %c0_175 = arith.constant 0 : index
    %253 = vector.load %arg7[%c1_172, %c0_173, %c0_174, %c0_175] : memref<2x4x32x8xf32, #tpu.memory_space<vmem>>, vector<1x1x32x8xf32>
    %254 = vector.shape_cast %253 : vector<1x1x32x8xf32> to vector<32x8xf32>
    %cst_176 = arith.constant dense<0.000000e+00> : vector<18x8xf32>
    %255 = tpu.matmul %251, %254, %cst_176 {dimension_numbers = #tpu.dot_dimension_numbers<[1], [0], [0], [1], [0, 0, 1, 1], [], []>} : vector<18x32xf32>, vector<32x8xf32>, vector<18x8xf32> -> vector<18x8xf32>
    %c1_177 = arith.constant 1 : index
    %c0_178 = arith.constant 0 : index
    %c0_179 = arith.constant 0 : index
    %c0_180 = arith.constant 0 : index
    %256 = vector.load %arg8[%c1_177, %c0_178, %c0_179, %c0_180] : memref<2x4x32x8xf32, #tpu.memory_space<vmem>>, vector<1x1x32x8xf32>
    %257 = vector.shape_cast %256 : vector<1x1x32x8xf32> to vector<32x8xf32>
    %cst_181 = arith.constant dense<0.000000e+00> : vector<18x8xf32>
    %258 = tpu.matmul %251, %257, %cst_181 {dimension_numbers = #tpu.dot_dimension_numbers<[1], [0], [0], [1], [0, 0, 1, 1], [], []>} : vector<18x32xf32>, vector<32x8xf32>, vector<18x8xf32> -> vector<18x8xf32>
    %c1_182 = arith.constant 1 : index
    %c0_183 = arith.constant 0 : index
    %c0_184 = arith.constant 0 : index
    %c0_185 = arith.constant 0 : index
    %259 = vector.load %arg9[%c1_182, %c0_183, %c0_184, %c0_185] : memref<2x4x32x8xf32, #tpu.memory_space<vmem>>, vector<1x1x32x8xf32>
    %260 = vector.shape_cast %259 : vector<1x1x32x8xf32> to vector<32x8xf32>
    %cst_186 = arith.constant dense<0.000000e+00> : vector<18x8xf32>
    %261 = tpu.matmul %251, %260, %cst_186 {dimension_numbers = #tpu.dot_dimension_numbers<[1], [0], [0], [1], [0, 0, 1, 1], [], []>} : vector<18x32xf32>, vector<32x8xf32>, vector<18x8xf32> -> vector<18x8xf32>
    %cst_187 = arith.constant dense<0.000000e+00> : vector<18x18xf32>
    %262 = tpu.matmul %255, %258, %cst_187 {dimension_numbers = #tpu.dot_dimension_numbers<[1], [1], [0], [0], [0, 0, 1, 0], [], []>} : vector<18x8xf32>, vector<18x8xf32>, vector<18x18xf32> -> vector<18x18xf32>
    %cst_188 = arith.constant 0.353553385 : f32
    %263 = vector.broadcast %cst_188 : f32 to vector<18x18xf32>
    %264 = arith.mulf %262, %263 : vector<18x18xf32>
    %265 = arith.addf %264, %5 : vector<18x18xf32>
    %cst_189 = arith.constant dense<0xFF800000> : vector<18xf32>
    %266 = vector.multi_reduction <maximumf>, %265, %cst_189 [1] : vector<18x18xf32> to vector<18xf32>
    %267 = vector.shape_cast %266 : vector<18xf32> to vector<18x1xf32>
    %268 = vector.broadcast %267 : vector<18x1xf32> to vector<18x18xf32>
    %269 = arith.subf %265, %268 : vector<18x18xf32>
    %270 = math.exp %269 : vector<18x18xf32>
    %cst_190 = arith.constant dense<0.000000e+00> : vector<18xf32>
    %271 = vector.multi_reduction <add>, %270, %cst_190 [1] : vector<18x18xf32> to vector<18xf32>
    %272 = vector.shape_cast %271 : vector<18xf32> to vector<18x1xf32>
    %273 = tpu.reciprocal %272 {approx = true} : vector<18x1xf32> -> vector<18x1xf32>
    %274 = vector.broadcast %273 : vector<18x1xf32> to vector<18x18xf32>
    %275 = arith.mulf %270, %274 : vector<18x18xf32>
    %cst_191 = arith.constant dense<0.000000e+00> : vector<18x8xf32>
    %276 = tpu.matmul %275, %261, %cst_191 {dimension_numbers = #tpu.dot_dimension_numbers<[1], [0], [0], [1], [0, 0, 1, 1], [], []>} : vector<18x18xf32>, vector<18x8xf32>, vector<18x8xf32> -> vector<18x8xf32>
    %c1_192 = arith.constant 1 : index
    %c0_193 = arith.constant 0 : index
    %c0_194 = arith.constant 0 : index
    %c0_195 = arith.constant 0 : index
    %277 = vector.load %arg10[%c1_192, %c0_193, %c0_194, %c0_195] : memref<2x4x8x32xf32, #tpu.memory_space<vmem>>, vector<1x1x8x32xf32>
    %278 = vector.shape_cast %277 : vector<1x1x8x32xf32> to vector<8x32xf32>
    %cst_196 = arith.constant dense<0.000000e+00> : vector<18x32xf32>
    %279 = tpu.matmul %276, %278, %cst_196 {dimension_numbers = #tpu.dot_dimension_numbers<[1], [0], [0], [1], [0, 0, 1, 1], [], []>} : vector<18x8xf32>, vector<8x32xf32>, vector<18x32xf32> -> vector<18x32xf32>
    %280 = arith.addf %252, %279 : vector<18x32xf32>
    %c1_197 = arith.constant 1 : index
    %c1_198 = arith.constant 1 : index
    %c0_199 = arith.constant 0 : index
    %c0_200 = arith.constant 0 : index
    %281 = vector.load %arg7[%c1_197, %c1_198, %c0_199, %c0_200] : memref<2x4x32x8xf32, #tpu.memory_space<vmem>>, vector<1x1x32x8xf32>
    %282 = vector.shape_cast %281 : vector<1x1x32x8xf32> to vector<32x8xf32>
    %cst_201 = arith.constant dense<0.000000e+00> : vector<18x8xf32>
    %283 = tpu.matmul %251, %282, %cst_201 {dimension_numbers = #tpu.dot_dimension_numbers<[1], [0], [0], [1], [0, 0, 1, 1], [], []>} : vector<18x32xf32>, vector<32x8xf32>, vector<18x8xf32> -> vector<18x8xf32>
    %c1_202 = arith.constant 1 : index
    %c1_203 = arith.constant 1 : index
    %c0_204 = arith.constant 0 : index
    %c0_205 = arith.constant 0 : index
    %284 = vector.load %arg8[%c1_202, %c1_203, %c0_204, %c0_205] : memref<2x4x32x8xf32, #tpu.memory_space<vmem>>, vector<1x1x32x8xf32>
    %285 = vector.shape_cast %284 : vector<1x1x32x8xf32> to vector<32x8xf32>
    %cst_206 = arith.constant dense<0.000000e+00> : vector<18x8xf32>
    %286 = tpu.matmul %251, %285, %cst_206 {dimension_numbers = #tpu.dot_dimension_numbers<[1], [0], [0], [1], [0, 0, 1, 1], [], []>} : vector<18x32xf32>, vector<32x8xf32>, vector<18x8xf32> -> vector<18x8xf32>
    %c1_207 = arith.constant 1 : index
    %c1_208 = arith.constant 1 : index
    %c0_209 = arith.constant 0 : index
    %c0_210 = arith.constant 0 : index
    %287 = vector.load %arg9[%c1_207, %c1_208, %c0_209, %c0_210] : memref<2x4x32x8xf32, #tpu.memory_space<vmem>>, vector<1x1x32x8xf32>
    %288 = vector.shape_cast %287 : vector<1x1x32x8xf32> to vector<32x8xf32>
    %cst_211 = arith.constant dense<0.000000e+00> : vector<18x8xf32>
    %289 = tpu.matmul %251, %288, %cst_211 {dimension_numbers = #tpu.dot_dimension_numbers<[1], [0], [0], [1], [0, 0, 1, 1], [], []>} : vector<18x32xf32>, vector<32x8xf32>, vector<18x8xf32> -> vector<18x8xf32>
    %cst_212 = arith.constant dense<0.000000e+00> : vector<18x18xf32>
    %290 = tpu.matmul %283, %286, %cst_212 {dimension_numbers = #tpu.dot_dimension_numbers<[1], [1], [0], [0], [0, 0, 1, 0], [], []>} : vector<18x8xf32>, vector<18x8xf32>, vector<18x18xf32> -> vector<18x18xf32>
    %cst_213 = arith.constant 0.353553385 : f32
    %291 = vector.broadcast %cst_213 : f32 to vector<18x18xf32>
    %292 = arith.mulf %290, %291 : vector<18x18xf32>
    %293 = arith.addf %292, %5 : vector<18x18xf32>
    %cst_214 = arith.constant dense<0xFF800000> : vector<18xf32>
    %294 = vector.multi_reduction <maximumf>, %293, %cst_214 [1] : vector<18x18xf32> to vector<18xf32>
    %295 = vector.shape_cast %294 : vector<18xf32> to vector<18x1xf32>
    %296 = vector.broadcast %295 : vector<18x1xf32> to vector<18x18xf32>
    %297 = arith.subf %293, %296 : vector<18x18xf32>
    %298 = math.exp %297 : vector<18x18xf32>
    %cst_215 = arith.constant dense<0.000000e+00> : vector<18xf32>
    %299 = vector.multi_reduction <add>, %298, %cst_215 [1] : vector<18x18xf32> to vector<18xf32>
    %300 = vector.shape_cast %299 : vector<18xf32> to vector<18x1xf32>
    %301 = tpu.reciprocal %300 {approx = true} : vector<18x1xf32> -> vector<18x1xf32>
    %302 = vector.broadcast %301 : vector<18x1xf32> to vector<18x18xf32>
    %303 = arith.mulf %298, %302 : vector<18x18xf32>
    %cst_216 = arith.constant dense<0.000000e+00> : vector<18x8xf32>
    %304 = tpu.matmul %303, %289, %cst_216 {dimension_numbers = #tpu.dot_dimension_numbers<[1], [0], [0], [1], [0, 0, 1, 1], [], []>} : vector<18x18xf32>, vector<18x8xf32>, vector<18x8xf32> -> vector<18x8xf32>
    %c1_217 = arith.constant 1 : index
    %c1_218 = arith.constant 1 : index
    %c0_219 = arith.constant 0 : index
    %c0_220 = arith.constant 0 : index
    %305 = vector.load %arg10[%c1_217, %c1_218, %c0_219, %c0_220] : memref<2x4x8x32xf32, #tpu.memory_space<vmem>>, vector<1x1x8x32xf32>
    %306 = vector.shape_cast %305 : vector<1x1x8x32xf32> to vector<8x32xf32>
    %cst_221 = arith.constant dense<0.000000e+00> : vector<18x32xf32>
    %307 = tpu.matmul %304, %306, %cst_221 {dimension_numbers = #tpu.dot_dimension_numbers<[1], [0], [0], [1], [0, 0, 1, 1], [], []>} : vector<18x8xf32>, vector<8x32xf32>, vector<18x32xf32> -> vector<18x32xf32>
    %308 = arith.addf %280, %307 : vector<18x32xf32>
    %c1_222 = arith.constant 1 : index
    %c2_223 = arith.constant 2 : index
    %c0_224 = arith.constant 0 : index
    %c0_225 = arith.constant 0 : index
    %309 = vector.load %arg7[%c1_222, %c2_223, %c0_224, %c0_225] : memref<2x4x32x8xf32, #tpu.memory_space<vmem>>, vector<1x1x32x8xf32>
    %310 = vector.shape_cast %309 : vector<1x1x32x8xf32> to vector<32x8xf32>
    %cst_226 = arith.constant dense<0.000000e+00> : vector<18x8xf32>
    %311 = tpu.matmul %251, %310, %cst_226 {dimension_numbers = #tpu.dot_dimension_numbers<[1], [0], [0], [1], [0, 0, 1, 1], [], []>} : vector<18x32xf32>, vector<32x8xf32>, vector<18x8xf32> -> vector<18x8xf32>
    %c1_227 = arith.constant 1 : index
    %c2_228 = arith.constant 2 : index
    %c0_229 = arith.constant 0 : index
    %c0_230 = arith.constant 0 : index
    %312 = vector.load %arg8[%c1_227, %c2_228, %c0_229, %c0_230] : memref<2x4x32x8xf32, #tpu.memory_space<vmem>>, vector<1x1x32x8xf32>
    %313 = vector.shape_cast %312 : vector<1x1x32x8xf32> to vector<32x8xf32>
    %cst_231 = arith.constant dense<0.000000e+00> : vector<18x8xf32>
    %314 = tpu.matmul %251, %313, %cst_231 {dimension_numbers = #tpu.dot_dimension_numbers<[1], [0], [0], [1], [0, 0, 1, 1], [], []>} : vector<18x32xf32>, vector<32x8xf32>, vector<18x8xf32> -> vector<18x8xf32>
    %c1_232 = arith.constant 1 : index
    %c2_233 = arith.constant 2 : index
    %c0_234 = arith.constant 0 : index
    %c0_235 = arith.constant 0 : index
    %315 = vector.load %arg9[%c1_232, %c2_233, %c0_234, %c0_235] : memref<2x4x32x8xf32, #tpu.memory_space<vmem>>, vector<1x1x32x8xf32>
    %316 = vector.shape_cast %315 : vector<1x1x32x8xf32> to vector<32x8xf32>
    %cst_236 = arith.constant dense<0.000000e+00> : vector<18x8xf32>
    %317 = tpu.matmul %251, %316, %cst_236 {dimension_numbers = #tpu.dot_dimension_numbers<[1], [0], [0], [1], [0, 0, 1, 1], [], []>} : vector<18x32xf32>, vector<32x8xf32>, vector<18x8xf32> -> vector<18x8xf32>
    %cst_237 = arith.constant dense<0.000000e+00> : vector<18x18xf32>
    %318 = tpu.matmul %311, %314, %cst_237 {dimension_numbers = #tpu.dot_dimension_numbers<[1], [1], [0], [0], [0, 0, 1, 0], [], []>} : vector<18x8xf32>, vector<18x8xf32>, vector<18x18xf32> -> vector<18x18xf32>
    %cst_238 = arith.constant 0.353553385 : f32
    %319 = vector.broadcast %cst_238 : f32 to vector<18x18xf32>
    %320 = arith.mulf %318, %319 : vector<18x18xf32>
    %321 = arith.addf %320, %5 : vector<18x18xf32>
    %cst_239 = arith.constant dense<0xFF800000> : vector<18xf32>
    %322 = vector.multi_reduction <maximumf>, %321, %cst_239 [1] : vector<18x18xf32> to vector<18xf32>
    %323 = vector.shape_cast %322 : vector<18xf32> to vector<18x1xf32>
    %324 = vector.broadcast %323 : vector<18x1xf32> to vector<18x18xf32>
    %325 = arith.subf %321, %324 : vector<18x18xf32>
    %326 = math.exp %325 : vector<18x18xf32>
    %cst_240 = arith.constant dense<0.000000e+00> : vector<18xf32>
    %327 = vector.multi_reduction <add>, %326, %cst_240 [1] : vector<18x18xf32> to vector<18xf32>
    %328 = vector.shape_cast %327 : vector<18xf32> to vector<18x1xf32>
    %329 = tpu.reciprocal %328 {approx = true} : vector<18x1xf32> -> vector<18x1xf32>
    %330 = vector.broadcast %329 : vector<18x1xf32> to vector<18x18xf32>
    %331 = arith.mulf %326, %330 : vector<18x18xf32>
    %cst_241 = arith.constant dense<0.000000e+00> : vector<18x8xf32>
    %332 = tpu.matmul %331, %317, %cst_241 {dimension_numbers = #tpu.dot_dimension_numbers<[1], [0], [0], [1], [0, 0, 1, 1], [], []>} : vector<18x18xf32>, vector<18x8xf32>, vector<18x8xf32> -> vector<18x8xf32>
    %c1_242 = arith.constant 1 : index
    %c2_243 = arith.constant 2 : index
    %c0_244 = arith.constant 0 : index
    %c0_245 = arith.constant 0 : index
    %333 = vector.load %arg10[%c1_242, %c2_243, %c0_244, %c0_245] : memref<2x4x8x32xf32, #tpu.memory_space<vmem>>, vector<1x1x8x32xf32>
    %334 = vector.shape_cast %333 : vector<1x1x8x32xf32> to vector<8x32xf32>
    %cst_246 = arith.constant dense<0.000000e+00> : vector<18x32xf32>
    %335 = tpu.matmul %332, %334, %cst_246 {dimension_numbers = #tpu.dot_dimension_numbers<[1], [0], [0], [1], [0, 0, 1, 1], [], []>} : vector<18x8xf32>, vector<8x32xf32>, vector<18x32xf32> -> vector<18x32xf32>
    %336 = arith.addf %308, %335 : vector<18x32xf32>
    %c1_247 = arith.constant 1 : index
    %c3_248 = arith.constant 3 : index
    %c0_249 = arith.constant 0 : index
    %c0_250 = arith.constant 0 : index
    %337 = vector.load %arg7[%c1_247, %c3_248, %c0_249, %c0_250] : memref<2x4x32x8xf32, #tpu.memory_space<vmem>>, vector<1x1x32x8xf32>
    %338 = vector.shape_cast %337 : vector<1x1x32x8xf32> to vector<32x8xf32>
    %cst_251 = arith.constant dense<0.000000e+00> : vector<18x8xf32>
    %339 = tpu.matmul %251, %338, %cst_251 {dimension_numbers = #tpu.dot_dimension_numbers<[1], [0], [0], [1], [0, 0, 1, 1], [], []>} : vector<18x32xf32>, vector<32x8xf32>, vector<18x8xf32> -> vector<18x8xf32>
    %c1_252 = arith.constant 1 : index
    %c3_253 = arith.constant 3 : index
    %c0_254 = arith.constant 0 : index
    %c0_255 = arith.constant 0 : index
    %340 = vector.load %arg8[%c1_252, %c3_253, %c0_254, %c0_255] : memref<2x4x32x8xf32, #tpu.memory_space<vmem>>, vector<1x1x32x8xf32>
    %341 = vector.shape_cast %340 : vector<1x1x32x8xf32> to vector<32x8xf32>
    %cst_256 = arith.constant dense<0.000000e+00> : vector<18x8xf32>
    %342 = tpu.matmul %251, %341, %cst_256 {dimension_numbers = #tpu.dot_dimension_numbers<[1], [0], [0], [1], [0, 0, 1, 1], [], []>} : vector<18x32xf32>, vector<32x8xf32>, vector<18x8xf32> -> vector<18x8xf32>
    %c1_257 = arith.constant 1 : index
    %c3_258 = arith.constant 3 : index
    %c0_259 = arith.constant 0 : index
    %c0_260 = arith.constant 0 : index
    %343 = vector.load %arg9[%c1_257, %c3_258, %c0_259, %c0_260] : memref<2x4x32x8xf32, #tpu.memory_space<vmem>>, vector<1x1x32x8xf32>
    %344 = vector.shape_cast %343 : vector<1x1x32x8xf32> to vector<32x8xf32>
    %cst_261 = arith.constant dense<0.000000e+00> : vector<18x8xf32>
    %345 = tpu.matmul %251, %344, %cst_261 {dimension_numbers = #tpu.dot_dimension_numbers<[1], [0], [0], [1], [0, 0, 1, 1], [], []>} : vector<18x32xf32>, vector<32x8xf32>, vector<18x8xf32> -> vector<18x8xf32>
    %cst_262 = arith.constant dense<0.000000e+00> : vector<18x18xf32>
    %346 = tpu.matmul %339, %342, %cst_262 {dimension_numbers = #tpu.dot_dimension_numbers<[1], [1], [0], [0], [0, 0, 1, 0], [], []>} : vector<18x8xf32>, vector<18x8xf32>, vector<18x18xf32> -> vector<18x18xf32>
    %cst_263 = arith.constant 0.353553385 : f32
    %347 = vector.broadcast %cst_263 : f32 to vector<18x18xf32>
    %348 = arith.mulf %346, %347 : vector<18x18xf32>
    %349 = arith.addf %348, %5 : vector<18x18xf32>
    %cst_264 = arith.constant dense<0xFF800000> : vector<18xf32>
    %350 = vector.multi_reduction <maximumf>, %349, %cst_264 [1] : vector<18x18xf32> to vector<18xf32>
    %351 = vector.shape_cast %350 : vector<18xf32> to vector<18x1xf32>
    %352 = vector.broadcast %351 : vector<18x1xf32> to vector<18x18xf32>
    %353 = arith.subf %349, %352 : vector<18x18xf32>
    %354 = math.exp %353 : vector<18x18xf32>
    %cst_265 = arith.constant dense<0.000000e+00> : vector<18xf32>
    %355 = vector.multi_reduction <add>, %354, %cst_265 [1] : vector<18x18xf32> to vector<18xf32>
    %356 = vector.shape_cast %355 : vector<18xf32> to vector<18x1xf32>
    %357 = tpu.reciprocal %356 {approx = true} : vector<18x1xf32> -> vector<18x1xf32>
    %358 = vector.broadcast %357 : vector<18x1xf32> to vector<18x18xf32>
    %359 = arith.mulf %354, %358 : vector<18x18xf32>
    %cst_266 = arith.constant dense<0.000000e+00> : vector<18x8xf32>
    %360 = tpu.matmul %359, %345, %cst_266 {dimension_numbers = #tpu.dot_dimension_numbers<[1], [0], [0], [1], [0, 0, 1, 1], [], []>} : vector<18x18xf32>, vector<18x8xf32>, vector<18x8xf32> -> vector<18x8xf32>
    %c1_267 = arith.constant 1 : index
    %c3_268 = arith.constant 3 : index
    %c0_269 = arith.constant 0 : index
    %c0_270 = arith.constant 0 : index
    %361 = vector.load %arg10[%c1_267, %c3_268, %c0_269, %c0_270] : memref<2x4x8x32xf32, #tpu.memory_space<vmem>>, vector<1x1x8x32xf32>
    %362 = vector.shape_cast %361 : vector<1x1x8x32xf32> to vector<8x32xf32>
    %cst_271 = arith.constant dense<0.000000e+00> : vector<18x32xf32>
    %363 = tpu.matmul %360, %362, %cst_271 {dimension_numbers = #tpu.dot_dimension_numbers<[1], [0], [0], [1], [0, 0, 1, 1], [], []>} : vector<18x8xf32>, vector<8x32xf32>, vector<18x32xf32> -> vector<18x32xf32>
    %364 = arith.addf %336, %363 : vector<18x32xf32>
    %365 = arith.addf %227, %364 : vector<18x32xf32>
    %c1_272 = arith.constant 1 : index
    %c0_273 = arith.constant 0 : index
    %c0_274 = arith.constant 0 : index
    %366 = vector.load %arg11[%c1_272, %c0_273, %c0_274] : memref<2x1x32xf32, #tpu.memory_space<vmem>>, vector<1x1x32xf32>
    %367 = vector.shape_cast %366 : vector<1x1x32xf32> to vector<1x32xf32>
    %368 = vector.broadcast %367 : vector<1x32xf32> to vector<18x32xf32>
    %369 = arith.addf %365, %368 : vector<18x32xf32>
    %c1_275 = arith.constant 1 : index
    %c0_276 = arith.constant 0 : index
    %c0_277 = arith.constant 0 : index
    %370 = vector.load %arg12[%c1_275, %c0_276, %c0_277] : memref<2x1x32xf32, #tpu.memory_space<vmem>>, vector<1x1x32xf32>
    %371 = vector.shape_cast %370 : vector<1x1x32xf32> to vector<1x32xf32>
    %c1_278 = arith.constant 1 : index
    %c0_279 = arith.constant 0 : index
    %c0_280 = arith.constant 0 : index
    %372 = vector.load %arg13[%c1_278, %c0_279, %c0_280] : memref<2x1x32xf32, #tpu.memory_space<vmem>>, vector<1x1x32xf32>
    %373 = vector.shape_cast %372 : vector<1x1x32xf32> to vector<1x32xf32>
    %cst_281 = arith.constant dense<0.000000e+00> : vector<18xf32>
    %374 = vector.multi_reduction <add>, %369, %cst_281 [1] : vector<18x32xf32> to vector<18xf32>
    %375 = vector.shape_cast %374 : vector<18xf32> to vector<18x1xf32>
    %cst_282 = arith.constant 3.200000e+01 : f32
    %376 = vector.broadcast %cst_282 : f32 to vector<18x1xf32>
    %377 = arith.divf %375, %376 : vector<18x1xf32>
    %378 = vector.broadcast %377 : vector<18x1xf32> to vector<18x32xf32>
    %379 = arith.subf %369, %378 : vector<18x32xf32>
    %380 = arith.mulf %379, %379 : vector<18x32xf32>
    %cst_283 = arith.constant dense<0.000000e+00> : vector<18xf32>
    %381 = vector.multi_reduction <add>, %380, %cst_283 [1] : vector<18x32xf32> to vector<18xf32>
    %382 = vector.shape_cast %381 : vector<18xf32> to vector<18x1xf32>
    %cst_284 = arith.constant 3.200000e+01 : f32
    %383 = vector.broadcast %cst_284 : f32 to vector<18x1xf32>
    %384 = arith.divf %382, %383 : vector<18x1xf32>
    %cst_285 = arith.constant 9.99999974E-6 : f32
    %385 = vector.broadcast %cst_285 : f32 to vector<18x1xf32>
    %386 = arith.addf %384, %385 : vector<18x1xf32>
    %387 = math.rsqrt %386 : vector<18x1xf32>
    %388 = vector.broadcast %387 : vector<18x1xf32> to vector<18x32xf32>
    %389 = arith.mulf %379, %388 : vector<18x32xf32>
    %390 = vector.broadcast %371 : vector<1x32xf32> to vector<18x32xf32>
    %391 = arith.mulf %389, %390 : vector<18x32xf32>
    %392 = vector.broadcast %373 : vector<1x32xf32> to vector<18x32xf32>
    %393 = arith.addf %391, %392 : vector<18x32xf32>
    %c1_286 = arith.constant 1 : index
    %c0_287 = arith.constant 0 : index
    %c0_288 = arith.constant 0 : index
    %394 = vector.load %arg14[%c1_286, %c0_287, %c0_288] : memref<2x32x32xf32, #tpu.memory_space<vmem>>, vector<1x32x32xf32>
    %395 = vector.shape_cast %394 : vector<1x32x32xf32> to vector<32x32xf32>
    %cst_289 = arith.constant dense<0.000000e+00> : vector<18x32xf32>
    %396 = tpu.matmul %393, %395, %cst_289 {dimension_numbers = #tpu.dot_dimension_numbers<[1], [0], [0], [1], [0, 0, 1, 1], [], []>} : vector<18x32xf32>, vector<32x32xf32>, vector<18x32xf32> -> vector<18x32xf32>
    %c1_290 = arith.constant 1 : index
    %c0_291 = arith.constant 0 : index
    %c0_292 = arith.constant 0 : index
    %397 = vector.load %arg15[%c1_290, %c0_291, %c0_292] : memref<2x1x32xf32, #tpu.memory_space<vmem>>, vector<1x1x32xf32>
    %398 = vector.shape_cast %397 : vector<1x1x32xf32> to vector<1x32xf32>
    %399 = vector.broadcast %398 : vector<1x32xf32> to vector<18x32xf32>
    %400 = arith.addf %396, %399 : vector<18x32xf32>
    %cst_293 = arith.constant 5.000000e-01 : f32
    %401 = vector.broadcast %cst_293 : f32 to vector<18x32xf32>
    %402 = arith.mulf %401, %400 : vector<18x32xf32>
    %cst_294 = arith.constant 0.707106769 : f32
    %403 = vector.broadcast %cst_294 : f32 to vector<18x32xf32>
    %404 = arith.mulf %400, %403 : vector<18x32xf32>
    %cst_295 = arith.constant 0.000000e+00 : f32
    %405 = vector.broadcast %cst_295 : f32 to vector<18x32xf32>
    %406 = arith.cmpf oge, %404, %405 : vector<18x32xf32>
    %cst_296 = arith.constant 1.000000e+00 : f32
    %cst_297 = arith.constant -1.000000e+00 : f32
    %407 = vector.broadcast %cst_296 : f32 to vector<18x32xf32>
    %408 = vector.broadcast %cst_297 : f32 to vector<18x32xf32>
    %409 = arith.select %406, %407, %408 : vector<18x32xi1>, vector<18x32xf32>
    %410 = math.absf %404 : vector<18x32xf32>
    %cst_298 = arith.constant 0.327591091 : f32
    %411 = vector.broadcast %cst_298 : f32 to vector<18x32xf32>
    %412 = arith.mulf %411, %410 : vector<18x32xf32>
    %cst_299 = arith.constant 1.000000e+00 : f32
    %413 = vector.broadcast %cst_299 : f32 to vector<18x32xf32>
    %414 = arith.addf %413, %412 : vector<18x32xf32>
    %cst_300 = arith.constant 1.000000e+00 : f32
    %415 = vector.broadcast %cst_300 : f32 to vector<18x32xf32>
    %416 = arith.divf %415, %414 : vector<18x32xf32>
    %cst_301 = arith.constant 1.06140542 : f32
    %417 = vector.broadcast %cst_301 : f32 to vector<18x32xf32>
    %418 = arith.mulf %417, %416 : vector<18x32xf32>
    %cst_302 = arith.constant -1.45315206 : f32
    %419 = vector.broadcast %cst_302 : f32 to vector<18x32xf32>
    %420 = arith.addf %418, %419 : vector<18x32xf32>
    %421 = arith.mulf %420, %416 : vector<18x32xf32>
    %cst_303 = arith.constant 1.42141378 : f32
    %422 = vector.broadcast %cst_303 : f32 to vector<18x32xf32>
    %423 = arith.addf %421, %422 : vector<18x32xf32>
    %424 = arith.mulf %423, %416 : vector<18x32xf32>
    %cst_304 = arith.constant -0.284496725 : f32
    %425 = vector.broadcast %cst_304 : f32 to vector<18x32xf32>
    %426 = arith.addf %424, %425 : vector<18x32xf32>
    %427 = arith.mulf %426, %416 : vector<18x32xf32>
    %cst_305 = arith.constant 0.254829586 : f32
    %428 = vector.broadcast %cst_305 : f32 to vector<18x32xf32>
    %429 = arith.addf %427, %428 : vector<18x32xf32>
    %430 = arith.mulf %429, %416 : vector<18x32xf32>
    %cst_306 = arith.constant 0.000000e+00 : f32
    %431 = vector.broadcast %cst_306 : f32 to vector<18x32xf32>
    %432 = arith.subf %431, %410 : vector<18x32xf32>
    %433 = arith.mulf %432, %410 : vector<18x32xf32>
    %434 = math.exp %433 : vector<18x32xf32>
    %435 = arith.mulf %430, %434 : vector<18x32xf32>
    %cst_307 = arith.constant 1.000000e+00 : f32
    %436 = vector.broadcast %cst_307 : f32 to vector<18x32xf32>
    %437 = arith.subf %436, %435 : vector<18x32xf32>
    %438 = arith.mulf %409, %437 : vector<18x32xf32>
    %cst_308 = arith.constant 1.000000e+00 : f32
    %439 = vector.broadcast %cst_308 : f32 to vector<18x32xf32>
    %440 = arith.addf %439, %438 : vector<18x32xf32>
    %441 = arith.mulf %402, %440 : vector<18x32xf32>
    %c1_309 = arith.constant 1 : index
    %c0_310 = arith.constant 0 : index
    %c0_311 = arith.constant 0 : index
    %442 = vector.load %arg16[%c1_309, %c0_310, %c0_311] : memref<2x32x32xf32, #tpu.memory_space<vmem>>, vector<1x32x32xf32>
    %443 = vector.shape_cast %442 : vector<1x32x32xf32> to vector<32x32xf32>
    %cst_312 = arith.constant dense<0.000000e+00> : vector<18x32xf32>
    %444 = tpu.matmul %441, %443, %cst_312 {dimension_numbers = #tpu.dot_dimension_numbers<[1], [0], [0], [1], [0, 0, 1, 1], [], []>} : vector<18x32xf32>, vector<32x32xf32>, vector<18x32xf32> -> vector<18x32xf32>
    %445 = arith.addf %369, %444 : vector<18x32xf32>
    %c1_313 = arith.constant 1 : index
    %c0_314 = arith.constant 0 : index
    %c0_315 = arith.constant 0 : index
    %446 = vector.load %arg17[%c1_313, %c0_314, %c0_315] : memref<2x1x32xf32, #tpu.memory_space<vmem>>, vector<1x1x32xf32>
    %447 = vector.shape_cast %446 : vector<1x1x32xf32> to vector<1x32xf32>
    %448 = vector.broadcast %447 : vector<1x32xf32> to vector<18x32xf32>
    %449 = arith.addf %445, %448 : vector<18x32xf32>
    %c0_316 = arith.constant 0 : index
    %c0_317 = arith.constant 0 : index
    %450 = vector.load %arg18[%c0_316, %c0_317] : memref<18x32xf32, #tpu.memory_space<vmem>>, vector<18x32xf32>
    tpu.vector_store %arg18[%c0_316, %c0_317], %449 {strides = array<i32>} : memref<18x32xf32, #tpu.memory_space<vmem>>, vector<18x32xf32>,
    return
  }
  func.func @transform_0(%arg0: i32) -> (i32, i32) {
    %c0_i32 = arith.constant 0 : i32
    %c0_i32_0 = arith.constant 0 : i32
    %c0_i32_1 = arith.constant 0 : i32
    return %c0_i32, %c0_i32_0 : i32, i32
  }
  func.func @transform_1(%arg0: i32) -> (i32, i32) {
    %c0_i32 = arith.constant 0 : i32
    %c0_i32_0 = arith.constant 0 : i32
    %c0_i32_1 = arith.constant 0 : i32
    return %c0_i32, %c0_i32_0 : i32, i32
  }
  func.func @transform_2(%arg0: i32) -> (i32, i32) {
    %c0_i32 = arith.constant 0 : i32
    %c0_i32_0 = arith.constant 0 : i32
    %c0_i32_1 = arith.constant 0 : i32
    return %c0_i32, %c0_i32_0 : i32, i32
  }
  func.func @transform_3(%arg0: i32) -> (i32, i32) {
    %c0_i32 = arith.constant 0 : i32
    %c0_i32_0 = arith.constant 0 : i32
    %c0_i32_1 = arith.constant 0 : i32
    return %c0_i32, %c0_i32_0 : i32, i32
  }
  func.func @transform_4(%arg0: i32) -> (i32, i32, i32) {
    %c0_i32 = arith.constant 0 : i32
    %c0_i32_0 = arith.constant 0 : i32
    %c0_i32_1 = arith.constant 0 : i32
    %c0_i32_2 = arith.constant 0 : i32
    return %c0_i32, %c0_i32_0, %c0_i32_1 : i32, i32, i32
  }
  func.func @transform_5(%arg0: i32) -> (i32, i32, i32) {
    %c0_i32 = arith.constant 0 : i32
    %c0_i32_0 = arith.constant 0 : i32
    %c0_i32_1 = arith.constant 0 : i32
    %c0_i32_2 = arith.constant 0 : i32
    return %c0_i32, %c0_i32_0, %c0_i32_1 : i32, i32, i32
  }
  func.func @transform_6(%arg0: i32) -> (i32, i32, i32, i32) {
    %c0_i32 = arith.constant 0 : i32
    %c0_i32_0 = arith.constant 0 : i32
    %c0_i32_1 = arith.constant 0 : i32
    %c0_i32_2 = arith.constant 0 : i32
    %c0_i32_3 = arith.constant 0 : i32
    return %c0_i32, %c0_i32_0, %c0_i32_1, %c0_i32_2 : i32, i32, i32, i32
  }
  func.func @transform_7(%arg0: i32) -> (i32, i32, i32, i32) {
    %c0_i32 = arith.constant 0 : i32
    %c0_i32_0 = arith.constant 0 : i32
    %c0_i32_1 = arith.constant 0 : i32
    %c0_i32_2 = arith.constant 0 : i32
    %c0_i32_3 = arith.constant 0 : i32
    return %c0_i32, %c0_i32_0, %c0_i32_1, %c0_i32_2 : i32, i32, i32, i32
  }
  func.func @transform_8(%arg0: i32) -> (i32, i32, i32, i32) {
    %c0_i32 = arith.constant 0 : i32
    %c0_i32_0 = arith.constant 0 : i32
    %c0_i32_1 = arith.constant 0 : i32
    %c0_i32_2 = arith.constant 0 : i32
    %c0_i32_3 = arith.constant 0 : i32
    return %c0_i32, %c0_i32_0, %c0_i32_1, %c0_i32_2 : i32, i32, i32, i32
  }
  func.func @transform_9(%arg0: i32) -> (i32, i32, i32, i32) {
    %c0_i32 = arith.constant 0 : i32
    %c0_i32_0 = arith.constant 0 : i32
    %c0_i32_1 = arith.constant 0 : i32
    %c0_i32_2 = arith.constant 0 : i32
    %c0_i32_3 = arith.constant 0 : i32
    return %c0_i32, %c0_i32_0, %c0_i32_1, %c0_i32_2 : i32, i32, i32, i32
  }
  func.func @transform_10(%arg0: i32) -> (i32, i32, i32) {
    %c0_i32 = arith.constant 0 : i32
    %c0_i32_0 = arith.constant 0 : i32
    %c0_i32_1 = arith.constant 0 : i32
    %c0_i32_2 = arith.constant 0 : i32
    return %c0_i32, %c0_i32_0, %c0_i32_1 : i32, i32, i32
  }
  func.func @transform_11(%arg0: i32) -> (i32, i32, i32) {
    %c0_i32 = arith.constant 0 : i32
    %c0_i32_0 = arith.constant 0 : i32
    %c0_i32_1 = arith.constant 0 : i32
    %c0_i32_2 = arith.constant 0 : i32
    return %c0_i32, %c0_i32_0, %c0_i32_1 : i32, i32, i32
  }
  func.func @transform_12(%arg0: i32) -> (i32, i32, i32) {
    %c0_i32 = arith.constant 0 : i32
    %c0_i32_0 = arith.constant 0 : i32
    %c0_i32_1 = arith.constant 0 : i32
    %c0_i32_2 = arith.constant 0 : i32
    return %c0_i32, %c0_i32_0, %c0_i32_1 : i32, i32, i32
  }
  func.func @transform_13(%arg0: i32) -> (i32, i32, i32) {
    %c0_i32 = arith.constant 0 : i32
    %c0_i32_0 = arith.constant 0 : i32
    %c0_i32_1 = arith.constant 0 : i32
    %c0_i32_2 = arith.constant 0 : i32
    return %c0_i32, %c0_i32_0, %c0_i32_1 : i32, i32, i32
  }
  func.func @transform_14(%arg0: i32) -> (i32, i32, i32) {
    %c0_i32 = arith.constant 0 : i32
    %c0_i32_0 = arith.constant 0 : i32
    %c0_i32_1 = arith.constant 0 : i32
    %c0_i32_2 = arith.constant 0 : i32
    return %c0_i32, %c0_i32_0, %c0_i32_1 : i32, i32, i32
  }
  func.func @transform_15(%arg0: i32) -> (i32, i32, i32) {
    %c0_i32 = arith.constant 0 : i32
    %c0_i32_0 = arith.constant 0 : i32
    %c0_i32_1 = arith.constant 0 : i32
    %c0_i32_2 = arith.constant 0 : i32
    return %c0_i32, %c0_i32_0, %c0_i32_1 : i32, i32, i32
  }
  func.func @transform_16(%arg0: i32) -> (i32, i32, i32) {
    %c0_i32 = arith.constant 0 : i32
    %c0_i32_0 = arith.constant 0 : i32
    %c0_i32_1 = arith.constant 0 : i32
    %c0_i32_2 = arith.constant 0 : i32
    return %c0_i32, %c0_i32_0, %c0_i32_1 : i32, i32, i32
  }
  func.func @transform_17(%arg0: i32) -> (i32, i32) {
    %c0_i32 = arith.constant 0 : i32
    %c0_i32_0 = arith.constant 0 : i32
    %c0_i32_1 = arith.constant 0 : i32
    return %c0_i32, %c0_i32_0 : i32, i32
  }
}

</mosaic_0001>

<bundles_post_ra>
// kernel: tile.9
= control target key start
LH: loop header
LB: loop body
LE: loop exit
PB: predicated region body
PF: predicated region fallthrough
CT: control target
= control target key end

     0   :  { %vm3_vm0 = vcmask 261120   ;;  %s6_s6 = smov 3  ;;  %s48_s0 = inlined_call_operand.vmem [shape: f32[2,9,32], index: 0, kind: input, shape index: {}]   ;;  %s49_s1 = inlined_call_operand.vmem [shape: f32[18,32], index: 1, kind: output, shape index: {}]  }
   0x1   :  { %v2_v0 = vld [vmem:[%s48_s0] sm:$0xff]   ;;  %v18_v2 = vld [vmem:[%s48_s0 + $0x11] sm:$0xff]  }
   0x2   :  { %v16_v1 = vld [vmem:[%s48_s0 + $0x8] ss:$8 sm:%s6_s6]   ;;  %4 = vst.msk [vmem:[%s49_s1] sm:$0xff] %vm3_vm0, %v2_v0   ;;  %19 = vst.msk [vmem:[%s49_s1 + $0xa] sm:$0xff] %vm3_vm0, %v18_v2  }
   0x3   :  { %17 = vst.msk [vmem:[%s49_s1 + $0x8] sm:$0x3] %vm3_vm0, %v16_v1  }

// kernel: _lambda_.1
= control target key start
LH: loop header
LB: loop body
LE: loop exit
PB: predicated region body
PF: predicated region fallthrough
CT: control target
= control target key end

     0   :  { %v7510_v0 = vmov 0.0|0.0   ;;  %vm7511_vm0 = vmmov 0   ;;  %v7512_v4 = vmov 0.0   ;;  %vm70_vm1 = vcmask 523264   ;;  %s9073_s1 = inlined_call_operand.vmem [shape: f32[64,32], index: 1, kind: input, shape index: {}]   ;;  %s9074_s0 = inlined_call_operand.vmem [shape: f32[18,64], index: 0, kind: input, shape index: {}]   ;;  %s9075_s2 = inlined_call_operand.vmem [shape: f32[18,32], index: 2, kind: input, shape index: {}]   ;;  %s9076_s6 = inlined_call_operand.vmem [shape: f32[2,4,32,8], index: 6, kind: input, shape index: {}]   ;;  %s9077_s8 = inlined_call_operand.vmem [shape: f32[2,4,32,8], index: 8, kind: input, shape index: {}]   ;;  %s9078_s4 = inlined_call_operand.vmem [shape: f32[2,1,32], index: 4, kind: input, shape index: {}, may-alias: {4,11}]   ;;  %s9079_s7 = inlined_call_operand.vmem [shape: f32[2,4,32,8], index: 7, kind: input, shape index: {}]   ;;  %s9080_s5 = inlined_call_operand.vmem [shape: f32[2,1,32], index: 5, kind: input, shape index: {}, may-alias: {5,10,12,14,16}]   ;;  %s9081_s3 = inlined_call_operand.vmem [shape: f32[18,18], index: 3, kind: input, shape index: {}]   ;;  %s9082_s9 = inlined_call_operand.vmem [shape: f32[2,4,8,32], index: 9, kind: input, shape index: {}]   ;;  %s9083_s10 = inlined_call_operand.vmem [shape: f32[2,1,32], index: 10, kind: input, shape index: {}, may-alias: {5,10,12,14,16}]   ;;  %s9084_s13 = inlined_call_operand.vmem [shape: f32[2,32,32], index: 13, kind: input, shape index: {}]   ;;  %s9085_s11 = inlined_call_operand.vmem [shape: f32[2,1,32], index: 11, kind: input, shape index: {}, may-alias: {4,11}]   ;;  %s9086_s12 = inlined_call_operand.vmem [shape: f32[2,1,32], index: 12, kind: input, shape index: {}, may-alias: {5,10,12,14,16}]   ;;  %s9087_s15 = inlined_call_operand.vmem [shape: f32[2,32,32], index: 15, kind: input, shape index: {}]   ;;  %s9088_s14 = inlined_call_operand.vmem [shape: f32[2,1,32], index: 14, kind: input, shape index: {}, may-alias: {5,10,12,14,16}]   ;;  %s9089_s16 = inlined_call_operand.vmem [shape: f32[2,1,32], index: 16, kind: input, shape index: {}, may-alias: {5,10,12,14,16}]   ;;  %s9090_s17 = inlined_call_operand.vmem [shape: f32[18,32], index: 17, kind: output, shape index: {}]  }
   0x1   :  { %9093 = sst [smem:[#allocation2_spill]] %s9073_s1  ;;  %7123 = vmatprep.subr.bf16.mxu0 %v7510_v0  ;;  %6310 = vmatprep.mubr.msk.f32.mxu0 %vm7511_vm0, %v7512_v4  ;;  %v67_v17 = vld [vmem:[%s9075_s2] sm:$0xff]  ;;  %vm165_vm2 = vcmask 261120   ;;  %v68_v21 = vld [vmem:[%s9075_s2 + $0x8] sm:$0xff]  ;;  %v69_v26 = vld [vmem:[%s9075_s2 + $0x10] sm:$0x3] }
   0x2   :  { %9094 = sst [smem:[#allocation3_spill]] %s9074_s0  ;;  %s9095_s26 = sld [smem:[#allocation2_spill]]  ;;  %7135 = vmatprep.subr.bf16.mxu1 %v7510_v0  ;;  %6327 = vmatprep.mubr.msk.f32.mxu1 %vm7511_vm0, %v7512_v4  ;;  %vm172_vm3 = vcmask 254976   ;;  %v225_v47 = vld [vmem:[%s9076_s6] sm:$0xff]  ;;  %v226_v48 = vld [vmem:[%s9076_s6 + $0x8] sm:$0xff]  ;;  %v227_v53 = vld [vmem:[%s9076_s6 + $0x10] sm:$0xff] }
   0x3   :  { %s9096_s29 = sld [smem:[#allocation3_spill]]  ;;  %v402_v49 = vld [vmem:[%s9077_s8] sm:$0xff]  ;;  %v7136_v50 = vpack.c.bf16 %v226_v48, %v225_v47  ;;  %v403_v51 = vld [vmem:[%s9077_s8 + $0x8] sm:$0xff]  ;;  %v228_v54 = vld [vmem:[%s9076_s6 + $0x18] sm:$0xff]  ;;  %vm635_vm4 = vcmask 1041408   ;;  %vm486_vm5 = vcmask 64512  }
   0x4   :  { %v7148_v52 = vpack.c.bf16 %v403_v51, %v402_v49  ;;  %v404_v55 = vld [vmem:[%s9077_s8 + $0x10] sm:$0xff]  ;;  %v7139_v56 = vpack.c.bf16 %v228_v54, %v227_v53  ;;  %v405_v57 = vld [vmem:[%s9077_s8 + $0x18] sm:$0xff]  ;;  %vm7780_vm6 = vmpackc.low %vm486_vm5, %vm486_vm5  ;;  %vm591_vm7 = vcmask 146432   ;;  %vm598_vm8 = vcmask 140288  }
   0x5   :  { %7137 = vmatpush3.bf16.msra.mxu1 %v7136_v50  ;;  %v7151_v58 = vpack.c.bf16 %v405_v57, %v404_v55  ;;  %v5672_v50 = vld [vmem:[%s9076_s6 + $0x20] sm:$0xff]  ;;  %v5673_v51 = vld [vmem:[%s9076_s6 + $0x28] sm:$0xff]  ;;  %v5674_v53 = vld [vmem:[%s9076_s6 + $0x30] sm:$0xff] }
   0x6   :  { %7138 = vmatprep.subr.bf16.mxu1 %v7510_v0  ;;  %v5675_v54 = vld [vmem:[%s9076_s6 + $0x38] sm:$0xff]  ;;  %v5687_v57 = vld [vmem:[%s9077_s8 + $0x28] sm:$0xff] }
   0x7   :  { %v7164_v55 = vpack.c.bf16 %v5675_v54, %v5674_v53 }
   0x8   :  { %v59_v1 = vld [vmem:[%s9095_s26] sm:$0xff]  ;;  %v60_v2 = vld [vmem:[%s9095_s26 + $0x8] sm:$0xff]  ;;  %v61_v3 = vld [vmem:[%s9095_s26 + $0x10] sm:$0xff] }
   0x9   :  { %v7124_v5 = vpack.c.bf16 %v60_v2, %v59_v1  ;;  %v62_v6 = vld [vmem:[%s9095_s26 + $0x18] sm:$0xff]  ;;  %v63_v8 = vld [vmem:[%s9095_s26 + $0x20] sm:$0xff]  ;;  %v64_v9 = vld [vmem:[%s9095_s26 + $0x28] sm:$0xff]  ;;  %7140 = vmatpush3.bf16.msra.mxu1 %v7139_v56 }
   0xa   :  { %v7127_v7 = vpack.c.bf16 %v62_v6, %v61_v3  ;;  %v7130_v10 = vpack.c.bf16 %v64_v9, %v63_v8  ;;  %v65_v11 = vld [vmem:[%s9095_s26 + $0x30] sm:$0xff]  ;;  %v66_v12 = vld [vmem:[%s9095_s26 + $0x38] sm:$0xff]  ;;  %v56_v14 = vld [vmem:[%s9096_s29] sm:$0xff]  ;;  %7141 = vmatprep.subr.bf16.mxu1 %v7510_v0 }
   0xb   :  { %7125 = vmatpush3.bf16.msra.mxu0 %v7124_v5  ;;  %v7133_v13 = vpack.c.bf16 %v66_v12, %v65_v11  ;;  %v57_v15 = vld [vmem:[%s9096_s29 + $0x8] sm:$0xff]  ;;  %v58_v16 = vld [vmem:[%s9096_s29 + $0x10] sm:$0x3]  ;;  %v318_v9 = vld [vmem:[%s9079_s7] sm:$0xff] }
   0xc   :  { %7126 = vmatprep.subr.bf16.mxu0 %v7510_v0  ;;  %v5652_v11 = vld [vmem:[%s9080_s5] ss:$0 sm:$0xff] }
   0xd   :  { %v5686_v56 = vld [vmem:[%s9077_s8 + $0x20] sm:$0xff] }
   0xf   :  { %7128 = vmatpush3.bf16.msra.mxu0 %v7127_v7  ;;  %v5651_v7 = vld [vmem:[%s9078_s4] ss:$0 sm:$0xff] }
  0x10   :  { %7129 = vmatprep.subr.bf16.mxu0 %v7510_v0 }
  0x13   :  { %7131 = vmatpush3.bf16.msra.mxu0 %v7130_v10  ;;  %v319_v10 = vld [vmem:[%s9079_s7 + $0x8] sm:$0xff] }
  0x14   :  { %7132 = vmatprep.subr.bf16.mxu0 %v7510_v0 }
  0x17   :  { %7134 = vmatpush3.bf16.msra.mxu0 %v7133_v13 }
  0x18   :  { %7147 = vmatprep.subr.bf16.mxu0 %v7510_v0 }
  0x1a   :  { %6311 = vmatmul.mubr.msk.f32.vlgmr.msra.gmra.mrb[0].mxu0 %vm70_vm1, %v56_v14  ;;  %v7142_v14 = vpack.c.bf16 %v319_v10, %v318_v9 }
  0x1b   :  { %6313 = vmatprep.mubr.msk.f32.mxu0 %vm7511_vm0, %v7512_v4  ;;  %7149 = vmatpush3.bf16.msra.mxu0 %v7148_v52  ;;  %v7161_v52 = vpack.c.bf16 %v5673_v51, %v5672_v50 }
  0x1c   :  { %7150 = vmatprep.subr.bf16.mxu0 %v7510_v0 }
  0x1e   :  { %6314 = vmatmul.mubr.msk.f32.gmra.mrb[2].mxu0 %vm70_vm1, %v57_v15 }
  0x1f   :  { %6316 = vmatprep.mubr.msk.f32.mxu0 %vm7511_vm0, %v7512_v4  ;;  %7152 = vmatpush3.bf16.msra.mxu0 %v7151_v58  ;;  %v7173_v58 = vpack.c.bf16 %v5687_v57, %v5686_v56  ;;  %v5679_v56 = vld [vmem:[%s9079_s7 + $0x20] sm:$0xff]  ;;  %v5680_v57 = vld [vmem:[%s9079_s7 + $0x28] sm:$0xff] }
  0x20   :  { %7157 = vmatprep.subr.bf16.mxu0 %v7510_v0 }
  0x22   :  { %6317 = vmatmul.mubr.msk.f32.gmra.mrb[4].mxu0 %vm70_vm1, %v58_v16 }
  0x23   :  { %6361 = vmatprep.mubr.msk.f32.mxu0 %vm7511_vm0, %v7512_v4 }
  0xed   :  { %v146_v18 = vpop.f32.mrb[0].mxu0 }
  0xee   :  { %v7656_v19 = vadd.f32 %v146_v18, %v67_v17  ;;  %v6312_v20 = vpop.f32.mrb[1].mxu0  ;;  %v320_v17 = vld [vmem:[%s9079_s7 + $0x10] sm:$0xff]  ;;  %v321_v18 = vld [vmem:[%s9079_s7 + $0x18] sm:$0xff] }
  0xf0   :  { %v166_v22 = vsel %vm165_vm2, %v7656_v19, 0.0 }
  0xf1   :  { %167 = vadd.xlane.f32.xlu0 %v166_v22  ;;  %v151_v23 = vpop.f32.mrb[2].mxu0 }
  0xf2   :  { %v7663_v24 = vadd.f32 %v151_v23, %v68_v21  ;;  %v6315_v25 = vpop.f32.mrb[3].mxu0 }
  0xf3   :  { %v7145_v25 = vpack.c.bf16 %v321_v18, %v320_v17 }
  0xf4   :  { %v169_v27 = vsel %vm165_vm2, %v7663_v24, 0.0 }
  0xf5   :  { %170 = vadd.xlane.f32.xlu0 %v169_v27  ;;  %v156_v28 = vpop.f32.mrb[4].mxu0 }
  0xf6   :  { %v7670_v29 = vadd.f32 %v156_v28, %v69_v26  ;;  %v6318_v30 = vpop.f32.mrb[5].mxu0 }
  0xf8   :  { %v173_v31 = vsel %vm172_vm3, %v7670_v29, 0.0 }
  0xf9   :  { %174 = vadd.xlane.f32.xlu1 %v173_v31 }
 0x17e   :  { %v168_v32 = vpop.xlane.xlu0 %167 }
 0x17f   :  { %v177_v33 = vmul.f32 0.03125, %v168_v32 }
 0x181   :  { %v180_v34 = vsub.f32 %v7656_v19, %v177_v33 }
 0x182   :  { %v171_v35 = vpop.xlane.xlu0 %170 }
 0x183   :  { %v178_v36 = vmul.f32 0.03125, %v171_v35  ;;  %v183_v37 = vmul.f32 %v180_v34, %v180_v34 }
 0x185   :  { %v181_v38 = vsub.f32 %v7663_v24, %v178_v36  ;;  %v186_v39 = vsel %vm165_vm2, %v183_v37, 0.0 }
 0x186   :  { %187 = vadd.xlane.f32.xlu1 %v186_v39  ;;  %v175_v40 = vpop.xlane.xlu1 %174 }
 0x187   :  { %v179_v41 = vmul.f32 0.03125, %v175_v40  ;;  %v184_v42 = vmul.f32 %v181_v38, %v181_v38 }
 0x189   :  { %v7678_v43 = vsub.f32 %v7670_v29, %v179_v41  ;;  %v189_v44 = vsel %vm165_vm2, %v184_v42, 0.0 }
 0x18a   :  { %190 = vadd.xlane.f32.xlu0 %v189_v44 }
 0x18b   :  { %v185_v45 = vmul.f32 %v7678_v43, %v7678_v43 }
 0x18d   :  { %v192_v46 = vsel %vm172_vm3, %v185_v45, 0.0 }
 0x18e   :  { %193 = vadd.xlane.f32.xlu1 %v192_v46 }
 0x213   :  { %v188_v59 = vpop.xlane.xlu1 %187 }
 0x214   :  { %v195_v60 = vmul.f32 0.03125, %v188_v59  ;;  %v5688_v59 = vld [vmem:[%s9077_s8 + $0x30] sm:$0xff] }
 0x216   :  { %v198_v61 = vadd.f32 1e-05, %v195_v60  ;;  %v5689_v60 = vld [vmem:[%s9077_s8 + $0x38] sm:$0xff] }
 0x217   :  { %v191_v62 = vpop.xlane.xlu0 %190 }
 0x218   :  { %7363 = vrsqrt.f32 %v198_v61  ;;  %v196_v63 = vmul.f32 0.03125, %v191_v62  ;;  %v7176_v61 = vpack.c.bf16 %v5689_v60, %v5688_v59  ;;  %v7167_v59 = vpack.c.bf16 %v5680_v57, %v5679_v56 }
 0x21a   :  { %v199_v1 = vadd.f32 1e-05, %v196_v63  ;;  %v7853_v63 = vld [vmem:[%s9081_s3] sm:$0xff] }
 0x21b   :  { %v194_v2 = vpop.xlane.xlu1 %193 }
 0x21c   :  { %7365 = vrsqrt.f32 %v199_v1  ;;  %v197_v3 = vmul.f32 0.03125, %v194_v2 }
 0x21e   :  { %v200_v5 = vadd.f32 1e-05, %v197_v3 }
 0x220   :  { %7367 = vrsqrt.f32 %v200_v5 }
 0x222   :  { %v7364_v6 = vpop.eup %7363 }
 0x223   :  { %v204_v8 = vmul.f32 %v7364_v6, %v180_v34  ;;  %v7859_v6 = vld [vmem:[%s9081_s3 + $0x8] sm:$0xff] }
 0x225   :  { %v213_v12 = vmul.f32 %v5651_v7, %v204_v8 }
 0x226   :  { %v7366_v13 = vpop.eup %7365 }
 0x227   :  { %v7724_v15 = vadd.f32 %v5652_v11, %v213_v12  ;;  %v205_v16 = vmul.f32 %v7366_v13, %v181_v38  ;;  %v7866_v12 = vld [vmem:[%s9081_s3 + $0x10] sm:$0x3] }
 0x229   :  { %v214_v20 = vmul.f32 %v5651_v7, %v205_v16  ;;  %6328 = vmatmul.mubr.msk.f32.vlgmr.msra.gmra.mrb[0].mxu1 %vm165_vm2, %v7724_v15  ;;  %6362 = vmatmul.mubr.msk.f32.vlgmr.msra.gmra.mrb[6].mxu0 %vm165_vm2, %v7724_v15 }
 0x22a   :  { %v7368_v21 = vpop.eup %7367  ;;  %6330 = vmatprep.mubr.msk.f32.mxu1 %vm7511_vm0, %v7512_v4  ;;  %7143 = vmatpush3.bf16.msra.mxu1 %v7142_v14 }
 0x22b   :  { %v7738_v22 = vadd.f32 %v5652_v11, %v214_v20  ;;  %v206_v23 = vmul.f32 %v7368_v21, %v7678_v43  ;;  %6364 = vmatprep.mubr.msk.f32.mxu0 %vm7511_vm0, %v7512_v4  ;;  %7144 = vmatprep.subr.bf16.mxu1 %v7510_v0 }
 0x22d   :  { %v215_v26 = vmul.f32 %v5651_v7, %v206_v23  ;;  %6331 = vmatmul.mubr.msk.f32.gmra.mrb[2].mxu1 %vm165_vm2, %v7738_v22  ;;  %6365 = vmatmul.mubr.msk.f32.gmra.mrb[8].mxu0 %vm165_vm2, %v7738_v22 }
 0x22e   :  { %6333 = vmatprep.mubr.msk.f32.mxu1 %vm7511_vm0, %v7512_v4  ;;  %6367 = vmatprep.mubr.msk.f32.mxu0 %vm7511_vm0, %v7512_v4 }
 0x22f   :  { %v7752_v27 = vadd.f32 %v5652_v11, %v215_v26  ;;  %7146 = vmatpush3.bf16.msra.mxu1 %v7145_v25 }
 0x230   :  { %7153 = vmatprep.subr.bf16.mxu1 %v7510_v0 }
 0x231   :  { %6334 = vmatmul.mubr.msk.f32.gmra.mrb[4].mxu1 %vm165_vm2, %v7752_v27  ;;  %6368 = vmatmul.mubr.msk.f32.gmra.mrb[10].mxu0 %vm165_vm2, %v7752_v27 }
 0x232   :  { %6344 = vmatprep.mubr.msk.f32.mxu1 %vm7511_vm0, %v7512_v4  ;;  %6391 = vmatprep.mubr.msk.f32.mxu0 %vm7511_vm0, %v7512_v4 }
 0x235   :  { %6345 = vmatmul.mubr.msk.f32.vlgmr.msra.gmra.mrb[6].mxu1 %vm165_vm2, %v7724_v15 }
 0x236   :  { %6347 = vmatprep.mubr.msk.f32.mxu1 %vm7511_vm0, %v7512_v4 }
 0x239   :  { %6348 = vmatmul.mubr.msk.f32.gmra.mrb[8].mxu1 %vm165_vm2, %v7738_v22 }
 0x23a   :  { %6350 = vmatprep.mubr.msk.f32.mxu1 %vm7511_vm0, %v7512_v4 }
 0x23d   :  { %6351 = vmatmul.mubr.msk.f32.gmra.mrb[10].mxu1 %vm165_vm2, %v7752_v27 }
 0x23e   :  { %6376 = vmatprep.mubr.msk.f32.mxu1 %vm7511_vm0, %v7512_v4 }
 0x2fc   :  { %v304_v28 = vpop.f32.mrb[0].mxu1  ;;  %v472_v30 = vpop.f32.mrb[6].mxu0 }
 0x2fd   :  { %v6329_v31 = vpop.f32.mrb[1].mxu1  ;;  %v6363_v32 = vpop.f32.mrb[7].mxu0 }
 0x300   :  { %v309_v33 = vpop.f32.mrb[2].mxu1  ;;  %v477_v34 = vpop.f32.mrb[8].mxu0 }
 0x301   :  { %v7158_v35 = vpack.c.bf16 %v477_v34, %v472_v30  ;;  %v6332_v36 = vpop.f32.mrb[3].mxu1  ;;  %v6366_v37 = vpop.f32.mrb[9].mxu0 }
 0x303   :  { %7159 = vmatpush3.bf16.msra.mxu0 %v7158_v35 }
 0x304   :  { %v314_v38 = vpop.f32.mrb[4].mxu1  ;;  %v482_v39 = vpop.f32.mrb[10].mxu0  ;;  %6389 = vmatprep.subr.mxu0 %v7512_v4 }
 0x305   :  { %v6335_v40 = vpop.f32.mrb[5].mxu1  ;;  %v6369_v41 = vpop.f32.mrb[11].mxu0 }
 0x307   :  { %6390 = vmatpush3.msk.msra.mxu0 %vm635_vm4, %v482_v39 }
 0x308   :  { %v388_v42 = vpop.f32.mrb[6].mxu1  ;;  %7166 = vmatprep.subr.bf16.mxu0 %v7510_v0 }
 0x309   :  { %v6346_v43 = vpop.f32.mrb[7].mxu1 }
 0x30c   :  { %v393_v44 = vpop.f32.mrb[8].mxu1 }
 0x30d   :  { %v7154_v46 = vpack.c.bf16 %v393_v44, %v388_v42  ;;  %v6349_v47 = vpop.f32.mrb[9].mxu1 }
 0x30f   :  { %7156 = vmatpush3.bf16.xpose.msk.msra.mxu1 %vm7780_vm6, %v7154_v46 }
 0x310   :  { %v398_v48 = vpop.f32.mrb[10].mxu1  ;;  %6374 = vmatprep.subr.mxu1 %v7512_v4 }
 0x311   :  { %v6352_v49 = vpop.f32.mrb[11].mxu1 }
 0x317   :  { %6375 = vmatpush3.xpose.msk.msra.mxu1 %vm486_vm5, %v398_v48 }
 0x318   :  { %7160 = vmatprep.subr.bf16.mxu1 %v7510_v0 }
 0x31a   :  { %6377 = vmatmul.mubr.msk.f32.vlgmr.msra.gmra.mrb[12].mxu1 %vm486_vm5, %v304_v28 }
 0x31b   :  { %6379 = vmatprep.mubr.msk.f32.mxu1 %vm7511_vm0, %v7512_v4  ;;  %7162 = vmatpush3.bf16.msra.mxu1 %v7161_v52 }
 0x31c   :  { %7163 = vmatprep.subr.bf16.mxu1 %v7510_v0 }
 0x31e   :  { %6380 = vmatmul.mubr.msk.f32.gmra.mrb[14].mxu1 %vm486_vm5, %v309_v33 }
 0x31f   :  { %6382 = vmatprep.mubr.msk.f32.mxu1 %vm7511_vm0, %v7512_v4  ;;  %7165 = vmatpush3.bf16.msra.mxu1 %v7164_v55 }
 0x320   :  { %7172 = vmatprep.subr.bf16.mxu1 %v7510_v0 }
 0x322   :  { %6383 = vmatmul.mubr.msk.f32.gmra.mrb[16].mxu1 %vm486_vm5, %v314_v38 }
 0x323   :  { %6408 = vmatprep.mubr.msk.f32.mxu1 %vm7511_vm0, %v7512_v4 }
 0x326   :  { %6409 = vmatmul.mubr.msk.f32.vlgmr.msra.gmra.mrb[18].mxu1 %vm165_vm2, %v7724_v15 }
 0x327   :  { %6411 = vmatprep.mubr.msk.f32.mxu1 %vm7511_vm0, %v7512_v4  ;;  %7174 = vmatpush3.bf16.msra.mxu1 %v7173_v58 }
 0x328   :  { %7175 = vmatprep.subr.bf16.mxu1 %v7510_v0 }
 0x32a   :  { %6412 = vmatmul.mubr.msk.f32.gmra.mrb[20].mxu1 %vm165_vm2, %v7738_v22 }
 0x32b   :  { %6414 = vmatprep.mubr.msk.f32.mxu1 %vm7511_vm0, %v7512_v4  ;;  %7177 = vmatpush3.bf16.msra.mxu1 %v7176_v61  ;;  %v5681_v61 = vld [vmem:[%s9079_s7 + $0x30] sm:$0xff] }
 0x32c   :  { %7182 = vmatprep.subr.bf16.mxu1 %v7510_v0 }
 0x32e   :  { %6415 = vmatmul.mubr.msk.f32.gmra.mrb[22].mxu1 %vm165_vm2, %v7752_v27 }
 0x32f   :  { %6442 = vmatprep.mubr.msk.f32.mxu1 %vm7511_vm0, %v7512_v4 }
 0x332   :  { %6443 = vmatmul.mubr.msk.f32.vlgmr.msra.gmra.mrb[24].mxu1 %vm165_vm2, %v7724_v15 }
 0x333   :  { %6445 = vmatprep.mubr.msk.f32.mxu1 %vm7511_vm0, %v7512_v4 }
 0x336   :  { %6446 = vmatmul.mubr.msk.f32.gmra.mrb[26].mxu1 %vm165_vm2, %v7738_v22 }
 0x337   :  { %6448 = vmatprep.mubr.msk.f32.mxu1 %vm7511_vm0, %v7512_v4 }
 0x33a   :  { %6449 = vmatmul.mubr.msk.f32.gmra.mrb[28].mxu1 %vm165_vm2, %v7752_v27 }
 0x33b   :  { %6472 = vmatprep.mubr.msk.f32.mxu1 %vm7511_vm0, %v7512_v4 }
 0x3ed   :  { %v571_v62 = vpop.f32.mrb[12].mxu1 }
 0x3ee   :  { %v585_v1 = vmul.f32 0.35355338, %v571_v62  ;;  %v6378_v2 = vpop.f32.mrb[13].mxu1  ;;  %v5682_v62 = vld [vmem:[%s9079_s7 + $0x38] sm:$0xff] }
 0x3ef   :  { %v7170_v2 = vpack.c.bf16 %v5682_v62, %v5681_v61 }
 0x3f0   :  { %v588_v3 = vadd.f32 %v585_v1, %v7853_v63 }
 0x3f1   :  { %v576_v5 = vpop.f32.mrb[14].mxu1 }
 0x3f2   :  { %v586_v7 = vmul.f32 0.35355338, %v576_v5  ;;  %v6381_v8 = vpop.f32.mrb[15].mxu1  ;;  %v592_v9 = vsel %vm591_vm7, %v588_v3, -inf }
 0x3f3   :  { %593 = vmax.xlane.f32.xlu0 %v592_v9 }
 0x3f4   :  { %v589_v10 = vadd.f32 %v586_v7, %v7859_v6 }
 0x3f5   :  { %v581_v11 = vpop.f32.mrb[16].mxu1 }
 0x3f6   :  { %v587_v13 = vmul.f32 0.35355338, %v581_v11  ;;  %v6384_v14 = vpop.f32.mrb[17].mxu1  ;;  %v595_v16 = vsel %vm591_vm7, %v589_v10, -inf }
 0x3f7   :  { %596 = vmax.xlane.f32.xlu1 %v595_v16 }
 0x3f8   :  { %v590_v17 = vadd.f32 %v587_v13, %v7866_v12 }
 0x3f9   :  { %v7870_v18 = vpop.f32.mrb[18].mxu1 }
 0x3fa   :  { %v6410_v20 = vpop.f32.mrb[19].mxu1  ;;  %v599_v21 = vsel %vm598_vm8, %v590_v17, -inf }
 0x3fb   :  { %600 = vmax.xlane.f32.xlu0 %v599_v21 }
 0x3fd   :  { %v7873_v23 = vpop.f32.mrb[20].mxu1 }
 0x3fe   :  { %v6413_v25 = vpop.f32.mrb[21].mxu1 }
 0x401   :  { %v7875_v26 = vpop.f32.mrb[22].mxu1 }
 0x402   :  { %v6416_v28 = vpop.f32.mrb[23].mxu1 }
 0x405   :  { %v961_v30 = vpop.f32.mrb[24].mxu1 }
 0x406   :  { %v6444_v31 = vpop.f32.mrb[25].mxu1 }
 0x409   :  { %v966_v32 = vpop.f32.mrb[26].mxu1 }
 0x40a   :  { %v7183_v33 = vpack.c.bf16 %v966_v32, %v961_v30  ;;  %v6447_v34 = vpop.f32.mrb[27].mxu1 }
 0x40c   :  { %7184 = vmatpush3.bf16.msra.mxu1 %v7183_v33 }
 0x40d   :  { %v971_v35 = vpop.f32.mrb[28].mxu1  ;;  %6470 = vmatprep.subr.mxu1 %v7512_v4 }
 0x40e   :  { %v6450_v36 = vpop.f32.mrb[29].mxu1 }
 0x410   :  { %6471 = vmatpush3.msk.msra.mxu1 %vm635_vm4, %v971_v35 }
 0x411   :  { %6492 = vmatprep.subr.mxu1 %v7512_v4 }
 0x480   :  { %v594_v37 = vpop.xlane.xlu0 %593 }
 0x481   :  { %v602_v38 = vsub.f32 %v588_v3, %v594_v37 }
 0x483   :  { %v605_v39 = vmul.f32 1.442695, %v602_v38 }
 0x484   :  { %v597_v40 = vpop.xlane.xlu1 %596 }
 0x485   :  { %7369 = vpow2.f32 %v605_v39  ;;  %v603_v41 = vsub.f32 %v589_v10, %v597_v40 }
 0x487   :  { %v607_v42 = vmul.f32 1.442695, %v603_v41 }
 0x488   :  { %v601_v43 = vpop.xlane.xlu0 %600 }
 0x489   :  { %7371 = vpow2.f32 %v607_v42  ;;  %v604_v44 = vsub.f32 %v590_v17, %v601_v43 }
 0x48b   :  { %v609_v46 = vmul.f32 1.442695, %v604_v44 }
 0x48d   :  { %7373 = vpow2.f32 %v609_v46 }
 0x48f   :  { %v7370_v47 = vpop.eup %7369 }
 0x490   :  { %v611_v48 = vsel %vm591_vm7, %v7370_v47, 0.0 }
 0x491   :  { %612 = vadd.xlane.f32.xlu1 %v611_v48 }
 0x493   :  { %v7372_v49 = vpop.eup %7371 }
 0x494   :  { %v614_v50 = vsel %vm591_vm7, %v7372_v49, 0.0 }
 0x495   :  { %615 = vadd.xlane.f32.xlu0 %v614_v50 }
 0x497   :  { %v7374_v51 = vpop.eup %7373 }
 0x498   :  { %v617_v52 = vsel %vm598_vm8, %v7374_v51, 0.0 }
 0x499   :  { %618 = vadd.xlane.f32.xlu1 %v617_v52 }
 0x51e   :  { %v613_v53 = vpop.xlane.xlu1 %612 }
 0x51f   :  { %7375 = vrcp.f32 %v613_v53 }
 0x522   :  { %v616_v54 = vpop.xlane.xlu0 %615 }
 0x523   :  { %7377 = vrcp.f32 %v616_v54 }
 0x526   :  { %v619_v55 = vpop.xlane.xlu1 %618 }
 0x527   :  { %7379 = vrcp.f32 %v619_v55 }
 0x529   :  { %v7376_v58 = vpop.eup %7375 }
 0x52a   :  { %v623_v60 = vmul.f32 %v7376_v58, %v7370_v47 }
 0x52c   :  { %6392 = vmatmul.mubr.msk.f32.vlgmr.msra.gmra.mrb[12].mxu0 %vm591_vm7, %v623_v60 }
 0x52d   :  { %v7378_v1 = vpop.eup %7377  ;;  %6394 = vmatprep.mubr.msk.f32.mxu0 %vm7511_vm0, %v7512_v4  ;;  %7168 = vmatpush3.bf16.msra.mxu0 %v7167_v59  ;;  %v5703_v59 = vld [vmem:[%s9082_s9 + $0x8] sm:$0xff] }
 0x52e   :  { %v624_v3 = vmul.f32 %v7378_v1, %v7372_v49  ;;  %7169 = vmatprep.subr.bf16.mxu0 %v7510_v0 }
 0x530   :  { %6395 = vmatmul.mubr.msk.f32.gmra.mrb[14].mxu0 %vm591_vm7, %v624_v3  ;;  %v719_v3 = vld [vmem:[%s9082_s9] sm:$0xff] }
 0x531   :  { %v7380_v5 = vpop.eup %7379  ;;  %6397 = vmatprep.mubr.msk.f32.mxu0 %vm7511_vm0, %v7512_v4  ;;  %7171 = vmatpush3.bf16.msra.mxu0 %v7170_v2 }
 0x532   :  { %v625_v7 = vmul.f32 %v7380_v5, %v7374_v51  ;;  %7178 = vmatprep.subr.bf16.mxu0 %v7510_v0 }
 0x534   :  { %6398 = vmatmul.mubr.msk.f32.gmra.mrb[16].mxu0 %vm591_vm7, %v625_v7 }
 0x535   :  { %6425 = vmatprep.mubr.msk.f32.mxu0 %vm7511_vm0, %v7512_v4 }
 0x538   :  { %6426 = vmatmul.mubr.msk.f32.vlgmr.msra.gmra.mrb[18].mxu0 %vm165_vm2, %v7724_v15 }
 0x539   :  { %6428 = vmatprep.mubr.msk.f32.mxu0 %vm7511_vm0, %v7512_v4 }
 0x53c   :  { %6429 = vmatmul.mubr.msk.f32.gmra.mrb[20].mxu0 %vm165_vm2, %v7738_v22 }
 0x53d   :  { %6431 = vmatprep.mubr.msk.f32.mxu0 %vm7511_vm0, %v7512_v4 }
 0x540   :  { %6432 = vmatmul.mubr.msk.f32.gmra.mrb[22].mxu0 %vm165_vm2, %v7752_v27 }
 0x541   :  { %6457 = vmatprep.mubr.msk.f32.mxu0 %vm7511_vm0, %v7512_v4 }
 0x5ff   :  { %v7918_v8 = vpop.f32.mrb[12].mxu0 }
 0x600   :  { %v6393_v9 = vpop.f32.mrb[13].mxu0 }
 0x603   :  { %v7920_v10 = vpop.f32.mrb[14].mxu0 }
 0x604   :  { %v6396_v11 = vpop.f32.mrb[15].mxu0 }
 0x607   :  { %v7922_v13 = vpop.f32.mrb[16].mxu0 }
 0x608   :  { %v6399_v14 = vpop.f32.mrb[17].mxu0 }
 0x609   :  { %v5717_v14 = vld [vmem:[%s9079_s7 + $0x40] sm:$0xff] }
 0x60b   :  { %v876_v16 = vpop.f32.mrb[18].mxu0 }
 0x60c   :  { %v6427_v17 = vpop.f32.mrb[19].mxu0 }
 0x60f   :  { %v881_v20 = vpop.f32.mrb[20].mxu0 }
 0x610   :  { %v7179_v21 = vpack.c.bf16 %v881_v20, %v876_v16  ;;  %v6430_v25 = vpop.f32.mrb[21].mxu0  ;;  %v5718_v16 = vld [vmem:[%s9079_s7 + $0x48] sm:$0xff]  ;;  %v5719_v20 = vld [vmem:[%s9079_s7 + $0x50] sm:$0xff] }
 0x611   :  { %v7192_v17 = vpack.c.bf16 %v5718_v16, %v5717_v14 }
 0x612   :  { %7181 = vmatpush3.bf16.xpose.msk.msra.mxu0 %vm7780_vm6, %v7179_v21  ;;  %v5720_v21 = vld [vmem:[%s9079_s7 + $0x58] sm:$0xff] }
 0x613   :  { %v886_v28 = vpop.f32.mrb[22].mxu0  ;;  %6455 = vmatprep.subr.mxu0 %v7512_v4  ;;  %v7195_v25 = vpack.c.bf16 %v5720_v21, %v5719_v20 }
 0x614   :  { %v6433_v30 = vpop.f32.mrb[23].mxu0 }
 0x615   :  { %v5713_v30 = vld [vmem:[%s9076_s6 + $0x58] sm:$0xff] }
 0x61a   :  { %6456 = vmatpush3.xpose.msk.msra.mxu0 %vm486_vm5, %v886_v28  ;;  %v5712_v28 = vld [vmem:[%s9076_s6 + $0x50] sm:$0xff] }
 0x61b   :  { %6481 = vmatprep.subr.mxu0 %v7512_v4 }
 0x61d   :  { %6458 = vmatmul.mubr.msk.f32.vlgmr.msra.gmra.mrb[24].mxu0 %vm486_vm5, %v7870_v18 }
 0x61e   :  { %6460 = vmatprep.mubr.msk.f32.mxu0 %vm7511_vm0, %v7512_v4  ;;  %6482 = vmatpush3.msra.mxu0 %v5703_v59 }
 0x61f   :  { %7185 = vmatprep.subr.bf16.mxu0 %v7510_v0 }
 0x621   :  { %6461 = vmatmul.mubr.msk.f32.gmra.mrb[26].mxu0 %vm486_vm5, %v7873_v23 }
 0x622   :  { %6463 = vmatprep.mubr.msk.f32.mxu0 %vm7511_vm0, %v7512_v4 }
 0x625   :  { %6464 = vmatmul.mubr.msk.f32.gmra.mrb[28].mxu0 %vm486_vm5, %v7875_v26 }
 0x626   :  { %6483 = vmatprep.mubr.msk.f32.mxu0 %vm7511_vm0, %v7512_v4 }
 0x6f0   :  { %v1059_v31 = vpop.f32.mrb[24].mxu0 }
 0x6f1   :  { %v1073_v32 = vmul.f32 0.35355338, %v1059_v31  ;;  %v6459_v33 = vpop.f32.mrb[25].mxu0 }
 0x6f2   :  { %v7189_v33 = vpack.c.bf16 %v5713_v30, %v5712_v28 }
 0x6f3   :  { %v1076_v18 = vadd.f32 %v1073_v32, %v7853_v63 }
 0x6f4   :  { %v1064_v34 = vpop.f32.mrb[26].mxu0 }
 0x6f5   :  { %v1074_v35 = vmul.f32 0.35355338, %v1064_v34  ;;  %v6462_v36 = vpop.f32.mrb[27].mxu0  ;;  %v1079_v37 = vsel %vm591_vm7, %v1076_v18, -inf }
 0x6f6   :  { %1080 = vmax.xlane.f32.xlu0 %v1079_v37  ;;  %v5725_v36 = vld [vmem:[%s9077_s8 + $0x48] sm:$0xff] }
 0x6f7   :  { %v1077_v23 = vadd.f32 %v1074_v35, %v7859_v6  ;;  %v5724_v35 = vld [vmem:[%s9077_s8 + $0x40] sm:$0xff] }
 0x6f8   :  { %v1069_v38 = vpop.f32.mrb[28].mxu0 }
 0x6f9   :  { %v1075_v39 = vmul.f32 0.35355338, %v1069_v38  ;;  %v6465_v40 = vpop.f32.mrb[29].mxu0  ;;  %v1082_v26 = vsel %vm591_vm7, %v1077_v23, -inf  ;;  %v7198_v38 = vpack.c.bf16 %v5725_v36, %v5724_v35 }
 0x6fa   :  { %1083 = vmax.xlane.f32.xlu1 %v1082_v26  ;;  %v5727_v40 = vld [vmem:[%s9077_s8 + $0x58] sm:$0xff] }
 0x6fb   :  { %v1078_v41 = vadd.f32 %v1075_v39, %v7866_v12  ;;  %v5726_v39 = vld [vmem:[%s9077_s8 + $0x50] sm:$0xff] }
 0x6fd   :  { %v1085_v42 = vsel %vm598_vm8, %v1078_v41, -inf }
 0x6fe   :  { %1086 = vmax.xlane.f32.xlu0 %v1085_v42  ;;  %v7201_v42 = vpack.c.bf16 %v5727_v40, %v5726_v39 }
 0x783   :  { %v1081_v43 = vpop.xlane.xlu0 %1080 }
 0x784   :  { %v1088_v44 = vsub.f32 %v1076_v18, %v1081_v43 }
 0x786   :  { %v1091_v46 = vmul.f32 1.442695, %v1088_v44 }
 0x787   :  { %v1084_v47 = vpop.xlane.xlu1 %1083 }
 0x788   :  { %7381 = vpow2.f32 %v1091_v46  ;;  %v1089_v48 = vsub.f32 %v1077_v23, %v1084_v47 }
 0x78a   :  { %v1093_v49 = vmul.f32 1.442695, %v1089_v48 }
 0x78b   :  { %v1087_v50 = vpop.xlane.xlu0 %1086 }
 0x78c   :  { %7383 = vpow2.f32 %v1093_v49  ;;  %v1090_v51 = vsub.f32 %v1078_v41, %v1087_v50 }
 0x78e   :  { %v1095_v52 = vmul.f32 1.442695, %v1090_v51 }
 0x790   :  { %7385 = vpow2.f32 %v1095_v52 }
 0x792   :  { %v7382_v53 = vpop.eup %7381 }
 0x793   :  { %v1097_v54 = vsel %vm591_vm7, %v7382_v53, 0.0 }
 0x794   :  { %1098 = vadd.xlane.f32.xlu1 %v1097_v54 }
 0x796   :  { %v7384_v55 = vpop.eup %7383 }
 0x797   :  { %v1100_v56 = vsel %vm591_vm7, %v7384_v55, 0.0 }
 0x798   :  { %1101 = vadd.xlane.f32.xlu0 %v1100_v56 }
 0x79a   :  { %v7386_v57 = vpop.eup %7385 }
 0x79b   :  { %v1103_v58 = vsel %vm598_vm8, %v7386_v57, 0.0 }
 0x79c   :  { %1104 = vadd.xlane.f32.xlu1 %v1103_v58 }
 0x821   :  { %v1099_v60 = vpop.xlane.xlu1 %1098 }
 0x822   :  { %7387 = vrcp.f32 %v1099_v60 }
 0x825   :  { %v1102_v61 = vpop.xlane.xlu0 %1101 }
 0x826   :  { %7389 = vrcp.f32 %v1102_v61 }
 0x829   :  { %v1105_v62 = vpop.xlane.xlu1 %1104 }
 0x82a   :  { %7391 = vrcp.f32 %v1105_v62 }
 0x82c   :  { %v7388_v1 = vpop.eup %7387 }
 0x82d   :  { %v1109_v2 = vmul.f32 %v7388_v1, %v7382_v53 }
 0x82f   :  { %6473 = vmatmul.mubr.msk.f32.vlgmr.msra.gmra.mrb[30].mxu1 %vm591_vm7, %v1109_v2 }
 0x830   :  { %v7390_v5 = vpop.eup %7389  ;;  %6475 = vmatprep.mubr.msk.f32.mxu1 %vm7511_vm0, %v7512_v4  ;;  %6493 = vmatpush3.msra.mxu1 %v719_v3 }
 0x831   :  { %v1110_v7 = vmul.f32 %v7390_v5, %v7384_v55  ;;  %7191 = vmatprep.subr.bf16.mxu1 %v7510_v0 }
 0x833   :  { %6476 = vmatmul.mubr.msk.f32.gmra.mrb[32].mxu1 %vm591_vm7, %v1110_v7 }
 0x834   :  { %v7392_v9 = vpop.eup %7391  ;;  %6478 = vmatprep.mubr.msk.f32.mxu1 %vm7511_vm0, %v7512_v4 }
 0x835   :  { %v1111_v11 = vmul.f32 %v7392_v9, %v7386_v57 }
 0x837   :  { %6479 = vmatmul.mubr.msk.f32.gmra.mrb[34].mxu1 %vm591_vm7, %v1111_v11 }
 0x838   :  { %6494 = vmatprep.mubr.msk.f32.mxu1 %vm7511_vm0, %v7512_v4 }
 0x83b   :  { %6495 = vmatmul.mubr.msk.f32.vlgmr.msra.gmra.mrb[36].mxu1 %vm486_vm5, %v7918_v8  ;;  %v5710_v8 = vld [vmem:[%s9076_s6 + $0x40] sm:$0xff] }
 0x83c   :  { %6497 = vmatprep.mubr.msk.f32.mxu1 %vm7511_vm0, %v7512_v4  ;;  %7193 = vmatpush3.bf16.msra.mxu1 %v7192_v17 }
 0x83d   :  { %7194 = vmatprep.subr.bf16.mxu1 %v7510_v0 }
 0x83f   :  { %6498 = vmatmul.mubr.msk.f32.gmra.mrb[38].mxu1 %vm486_vm5, %v7920_v10  ;;  %v5711_v10 = vld [vmem:[%s9076_s6 + $0x48] sm:$0xff] }
 0x840   :  { %6500 = vmatprep.mubr.msk.f32.mxu1 %vm7511_vm0, %v7512_v4  ;;  %7196 = vmatpush3.bf16.msra.mxu1 %v7195_v25 }
 0x841   :  { %7203 = vmatprep.subr.bf16.mxu1 %v7510_v0 }
 0x843   :  { %6501 = vmatmul.mubr.msk.f32.gmra.mrb[40].mxu1 %vm486_vm5, %v7922_v13  ;;  %v7186_v13 = vpack.c.bf16 %v5711_v10, %v5710_v8 }
 0x844   :  { %6528 = vmatprep.mubr.msk.f32.mxu1 %vm7511_vm0, %v7512_v4 }
 0x847   :  { %6529 = vmatmul.mubr.msk.f32.vlgmr.msra.gmra.mrb[42].mxu1 %vm165_vm2, %v7724_v15 }
 0x848   :  { %6531 = vmatprep.mubr.msk.f32.mxu1 %vm7511_vm0, %v7512_v4 }
 0x84b   :  { %6532 = vmatmul.mubr.msk.f32.gmra.mrb[44].mxu1 %vm165_vm2, %v7738_v22 }
 0x84c   :  { %6534 = vmatprep.mubr.msk.f32.mxu1 %vm7511_vm0, %v7512_v4 }
 0x84f   :  { %6535 = vmatmul.mubr.msk.f32.gmra.mrb[46].mxu1 %vm165_vm2, %v7752_v27 }
 0x850   :  { %6560 = vmatprep.mubr.msk.f32.mxu1 %vm7511_vm0, %v7512_v4 }
 0x902   :  { %v1190_v31 = vpop.f32.mrb[30].mxu1 }
 0x903   :  { %v6474_v32 = vpop.f32.mrb[31].mxu1  ;;  %6484 = vmatmul.mubr.msk.f32.vlgmr.msra.gmra.mrb[30].mxu0 %vm486_vm5, %v1190_v31 }
 0x904   :  { %6486 = vmatprep.mubr.msk.f32.mxu0 %vm7511_vm0, %v7512_v4  ;;  %7187 = vmatpush3.bf16.msra.mxu0 %v7186_v13 }
 0x905   :  { %7188 = vmatprep.subr.bf16.mxu0 %v7510_v0 }
 0x906   :  { %v1195_v18 = vpop.f32.mrb[32].mxu1 }
 0x907   :  { %v6477_v34 = vpop.f32.mrb[33].mxu1  ;;  %6487 = vmatmul.mubr.msk.f32.gmra.mrb[32].mxu0 %vm486_vm5, %v1195_v18 }
 0x908   :  { %6489 = vmatprep.mubr.msk.f32.mxu0 %vm7511_vm0, %v7512_v4  ;;  %7190 = vmatpush3.bf16.msra.mxu0 %v7189_v33 }
 0x909   :  { %7197 = vmatprep.subr.bf16.mxu0 %v7510_v0 }
 0x90a   :  { %v1200_v37 = vpop.f32.mrb[34].mxu1 }
 0x90b   :  { %v6480_v23 = vpop.f32.mrb[35].mxu1  ;;  %6490 = vmatmul.mubr.msk.f32.gmra.mrb[34].mxu0 %vm486_vm5, %v1200_v37 }
 0x90c   :  { %6511 = vmatprep.mubr.msk.f32.mxu0 %vm7511_vm0, %v7512_v4 }
 0x90e   :  { %v1370_v26 = vpop.f32.mrb[36].mxu1 }
 0x90f   :  { %v6496_v41 = vpop.f32.mrb[37].mxu1  ;;  %6512 = vmatmul.mubr.msk.f32.vlgmr.msra.gmra.mrb[36].mxu0 %vm165_vm2, %v7724_v15 }
 0x910   :  { %6514 = vmatprep.mubr.msk.f32.mxu0 %vm7511_vm0, %v7512_v4  ;;  %7199 = vmatpush3.bf16.msra.mxu0 %v7198_v38 }
 0x911   :  { %7200 = vmatprep.subr.bf16.mxu0 %v7510_v0 }
 0x912   :  { %v1375_v43 = vpop.f32.mrb[38].mxu1 }
 0x913   :  { %v6499_v44 = vpop.f32.mrb[39].mxu1  ;;  %6515 = vmatmul.mubr.msk.f32.gmra.mrb[38].mxu0 %vm165_vm2, %v7738_v22 }
 0x914   :  { %6517 = vmatprep.mubr.msk.f32.mxu0 %vm7511_vm0, %v7512_v4  ;;  %7202 = vmatpush3.bf16.msra.mxu0 %v7201_v42 }
 0x915   :  { %7207 = vmatprep.subr.bf16.mxu0 %v7510_v0 }
 0x916   :  { %v1380_v46 = vpop.f32.mrb[40].mxu1 }
 0x917   :  { %v6502_v47 = vpop.f32.mrb[41].mxu1  ;;  %6518 = vmatmul.mubr.msk.f32.gmra.mrb[40].mxu0 %vm165_vm2, %v7752_v27 }
 0x918   :  { %6545 = vmatprep.mubr.msk.f32.mxu0 %vm7511_vm0, %v7512_v4 }
 0x91a   :  { %v1540_v48 = vpop.f32.mrb[42].mxu1 }
 0x91b   :  { %v6530_v49 = vpop.f32.mrb[43].mxu1  ;;  %6546 = vmatmul.mubr.msk.f32.vlgmr.msra.gmra.mrb[42].mxu0 %vm165_vm2, %v7724_v15 }
 0x91c   :  { %6548 = vmatprep.mubr.msk.f32.mxu0 %vm7511_vm0, %v7512_v4 }
 0x91e   :  { %v1545_v50 = vpop.f32.mrb[44].mxu1 }
 0x91f   :  { %v7204_v51 = vpack.c.bf16 %v1545_v50, %v1540_v48  ;;  %v6533_v52 = vpop.f32.mrb[45].mxu1  ;;  %6549 = vmatmul.mubr.msk.f32.gmra.mrb[44].mxu0 %vm165_vm2, %v7738_v22 }
 0x920   :  { %6551 = vmatprep.mubr.msk.f32.mxu0 %vm7511_vm0, %v7512_v4 }
 0x921   :  { %7206 = vmatpush3.bf16.xpose.msk.msra.mxu1 %vm7780_vm6, %v7204_v51 }
 0x922   :  { %v1550_v53 = vpop.f32.mrb[46].mxu1  ;;  %6558 = vmatprep.subr.mxu1 %v7512_v4 }
 0x923   :  { %v6536_v54 = vpop.f32.mrb[47].mxu1  ;;  %6552 = vmatmul.mubr.msk.f32.gmra.mrb[46].mxu0 %vm165_vm2, %v7752_v27 }
 0x924   :  { %6575 = vmatprep.mubr.msk.f32.mxu0 %vm7511_vm0, %v7512_v4 }
 0x929   :  { %6559 = vmatpush3.xpose.msk.msra.mxu1 %vm486_vm5, %v1550_v53 }
 0x92a   :  { %6584 = vmatprep.subr.mxu1 %v7512_v4 }
 0x9d6   :  { %v1281_v55 = vpop.f32.mrb[30].mxu0 }
 0x9d7   :  { %v8071_v56 = vadd.f32 %v1370_v26, %v1281_v55  ;;  %v6485_v57 = vpop.f32.mrb[31].mxu0  ;;  %v5741_v55 = vld [vmem:[%s9082_s9 + $0x10] sm:$0xff] }
 0x9da   :  { %v1286_v58 = vpop.f32.mrb[32].mxu0 }
 0x9db   :  { %v8073_v59 = vadd.f32 %v1375_v43, %v1286_v58  ;;  %v6488_v60 = vpop.f32.mrb[33].mxu0 }
 0x9de   :  { %v1291_v61 = vpop.f32.mrb[34].mxu0 }
 0x9df   :  { %v8075_v62 = vadd.f32 %v1380_v46, %v1291_v61  ;;  %v6491_v1 = vpop.f32.mrb[35].mxu0  ;;  %v5745_v61 = vld [vmem:[%s9076_s6 + $0x60] sm:$0xff] }
 0x9e0   :  { %v5746_v1 = vld [vmem:[%s9076_s6 + $0x68] sm:$0xff] }
 0x9e2   :  { %v1455_v2 = vpop.f32.mrb[36].mxu0 }
 0x9e3   :  { %v6513_v3 = vpop.f32.mrb[37].mxu0  ;;  %6561 = vmatmul.mubr.msk.f32.vlgmr.msra.gmra.mrb[48].mxu1 %vm486_vm5, %v1455_v2 }
 0x9e4   :  { %6563 = vmatprep.mubr.msk.f32.mxu1 %vm7511_vm0, %v7512_v4  ;;  %6585 = vmatpush3.msra.mxu1 %v5741_v55  ;;  %v7211_v3 = vpack.c.bf16 %v5746_v1, %v5745_v61 }
 0x9e5   :  { %7216 = vmatprep.subr.bf16.mxu1 %v7510_v0 }
 0x9e6   :  { %v1460_v5 = vpop.f32.mrb[38].mxu0 }
 0x9e7   :  { %v6516_v7 = vpop.f32.mrb[39].mxu0  ;;  %6564 = vmatmul.mubr.msk.f32.gmra.mrb[50].mxu1 %vm486_vm5, %v1460_v5 }
 0x9e8   :  { %6566 = vmatprep.mubr.msk.f32.mxu1 %vm7511_vm0, %v7512_v4  ;;  %v5747_v7 = vld [vmem:[%s9076_s6 + $0x70] sm:$0xff] }
 0x9ea   :  { %v1465_v9 = vpop.f32.mrb[40].mxu0 }
 0x9eb   :  { %v6519_v11 = vpop.f32.mrb[41].mxu0  ;;  %6567 = vmatmul.mubr.msk.f32.gmra.mrb[52].mxu1 %vm486_vm5, %v1465_v9  ;;  %v5748_v9 = vld [vmem:[%s9076_s6 + $0x78] sm:$0xff] }
 0x9ec   :  { %6586 = vmatprep.mubr.msk.f32.mxu1 %vm7511_vm0, %v7512_v4 }
 0x9ee   :  { %v1625_v14 = vpop.f32.mrb[42].mxu0 }
 0x9ef   :  { %v6547_v16 = vpop.f32.mrb[43].mxu0 }
 0x9f2   :  { %v1630_v17 = vpop.f32.mrb[44].mxu0 }
 0x9f3   :  { %v7208_v20 = vpack.c.bf16 %v1630_v17, %v1625_v14  ;;  %v6550_v21 = vpop.f32.mrb[45].mxu0  ;;  %v7214_v14 = vpack.c.bf16 %v5748_v9, %v5747_v7 }
 0x9f4   :  { %v5759_v21 = vld [vmem:[%s9077_s8 + $0x60] sm:$0xff] }
 0x9f5   :  { %7209 = vmatpush3.bf16.msra.mxu0 %v7208_v20 }
 0x9f6   :  { %v1635_v25 = vpop.f32.mrb[46].mxu0  ;;  %6573 = vmatprep.subr.mxu0 %v7512_v4 }
 0x9f7   :  { %v6553_v8 = vpop.f32.mrb[47].mxu0 }
 0x9f9   :  { %6574 = vmatpush3.msk.msra.mxu0 %vm635_vm4, %v1635_v25  ;;  %v5760_v25 = vld [vmem:[%s9077_s8 + $0x68] sm:$0xff] }
 0x9fa   :  { %7210 = vmatprep.subr.bf16.mxu0 %v7510_v0  ;;  %v7223_v8 = vpack.c.bf16 %v5760_v25, %v5759_v21 }
 0xab6   :  { %v1723_v10 = vpop.f32.mrb[48].mxu1 }
 0xab7   :  { %v1737_v13 = vmul.f32 0.35355338, %v1723_v10  ;;  %v6562_v28 = vpop.f32.mrb[49].mxu1  ;;  %v5761_v10 = vld [vmem:[%s9077_s8 + $0x70] sm:$0xff] }
 0xab9   :  { %v1740_v30 = vadd.f32 %v1737_v13, %v7853_v63  ;;  %v5762_v13 = vld [vmem:[%s9077_s8 + $0x78] sm:$0xff] }
 0xaba   :  { %v1728_v31 = vpop.f32.mrb[50].mxu1  ;;  %v7226_v28 = vpack.c.bf16 %v5762_v13, %v5761_v10 }
 0xabb   :  { %v1738_v32 = vmul.f32 0.35355338, %v1728_v31  ;;  %v6565_v33 = vpop.f32.mrb[51].mxu1  ;;  %v1743_v18 = vsel %vm591_vm7, %v1740_v30, -inf  ;;  %v5753_v31 = vld [vmem:[%s9079_s7 + $0x68] sm:$0xff] }
 0xabc   :  { %1744 = vmax.xlane.f32.xlu0 %v1743_v18  ;;  %v5754_v33 = vld [vmem:[%s9079_s7 + $0x70] sm:$0xff]  ;;  %v5755_v18 = vld [vmem:[%s9079_s7 + $0x78] sm:$0xff] }
 0xabd   :  { %v1741_v34 = vadd.f32 %v1738_v32, %v7859_v6 }
 0xabe   :  { %v1733_v35 = vpop.f32.mrb[52].mxu1 }
 0xabf   :  { %v1739_v36 = vmul.f32 0.35355338, %v1733_v35  ;;  %v6568_v37 = vpop.f32.mrb[53].mxu1  ;;  %v1746_v23 = vsel %vm591_vm7, %v1741_v34, -inf }
 0xac0   :  { %1747 = vmax.xlane.f32.xlu1 %v1746_v23 }
 0xac1   :  { %v1742_v38 = vadd.f32 %v1739_v36, %v7866_v12  ;;  %v7220_v36 = vpack.c.bf16 %v5755_v18, %v5754_v33 }
 0xac3   :  { %v1749_v39 = vsel %vm598_vm8, %v1742_v38, -inf }
 0xac4   :  { %1750 = vmax.xlane.f32.xlu0 %v1749_v39 }
 0xb49   :  { %v1745_v40 = vpop.xlane.xlu0 %1744 }
 0xb4a   :  { %v1752_v26 = vsub.f32 %v1740_v30, %v1745_v40  ;;  %v5752_v30 = vld [vmem:[%s9079_s7 + $0x60] sm:$0xff] }
 0xb4b   :  { %v7217_v32 = vpack.c.bf16 %v5753_v31, %v5752_v30 }
 0xb4c   :  { %v1755_v41 = vmul.f32 1.442695, %v1752_v26 }
 0xb4d   :  { %v1748_v42 = vpop.xlane.xlu1 %1747 }
 0xb4e   :  { %7393 = vpow2.f32 %v1755_v41  ;;  %v1753_v43 = vsub.f32 %v1741_v34, %v1748_v42 }
 0xb50   :  { %v1757_v44 = vmul.f32 1.442695, %v1753_v43 }
 0xb51   :  { %v1751_v46 = vpop.xlane.xlu0 %1750 }
 0xb52   :  { %7395 = vpow2.f32 %v1757_v44  ;;  %v1754_v47 = vsub.f32 %v1742_v38, %v1751_v46 }
 0xb54   :  { %v1759_v48 = vmul.f32 1.442695, %v1754_v47 }
 0xb56   :  { %7397 = vpow2.f32 %v1759_v48 }
 0xb58   :  { %v7394_v49 = vpop.eup %7393 }
 0xb59   :  { %v1761_v50 = vsel %vm591_vm7, %v7394_v49, 0.0 }
 0xb5a   :  { %1762 = vadd.xlane.f32.xlu1 %v1761_v50 }
 0xb5c   :  { %v7396_v51 = vpop.eup %7395 }
 0xb5d   :  { %v1764_v52 = vsel %vm591_vm7, %v7396_v51, 0.0 }
 0xb5e   :  { %1765 = vadd.xlane.f32.xlu0 %v1764_v52 }
 0xb60   :  { %v7398_v53 = vpop.eup %7397 }
 0xb61   :  { %v1767_v54 = vsel %vm598_vm8, %v7398_v53, 0.0 }
 0xb62   :  { %1768 = vadd.xlane.f32.xlu1 %v1767_v54 }
 0xbe7   :  { %v1763_v57 = vpop.xlane.xlu1 %1762 }
 0xbe8   :  { %7399 = vrcp.f32 %v1763_v57 }
 0xbeb   :  { %v1766_v58 = vpop.xlane.xlu0 %1765 }
 0xbec   :  { %7401 = vrcp.f32 %v1766_v58 }
 0xbef   :  { %v1769_v60 = vpop.xlane.xlu1 %1768 }
 0xbf0   :  { %7403 = vrcp.f32 %v1769_v60 }
 0xbf2   :  { %v7400_v2 = vpop.eup %7399 }
 0xbf3   :  { %v1773_v5 = vmul.f32 %v7400_v2, %v7394_v49 }
 0xbf5   :  { %6576 = vmatmul.mubr.msk.f32.vlgmr.msra.gmra.mrb[48].mxu0 %vm591_vm7, %v1773_v5 }
 0xbf6   :  { %v7402_v11 = vpop.eup %7401  ;;  %6578 = vmatprep.mubr.msk.f32.mxu0 %vm7511_vm0, %v7512_v4  ;;  %7212 = vmatpush3.bf16.msra.mxu0 %v7211_v3 }
 0xbf7   :  { %v1774_v16 = vmul.f32 %v7402_v11, %v7396_v51  ;;  %7213 = vmatprep.subr.bf16.mxu0 %v7510_v0 }
 0xbf9   :  { %6579 = vmatmul.mubr.msk.f32.gmra.mrb[50].mxu0 %vm591_vm7, %v1774_v16 }
 0xbfa   :  { %v7404_v17 = vpop.eup %7403  ;;  %6581 = vmatprep.mubr.msk.f32.mxu0 %vm7511_vm0, %v7512_v4  ;;  %7215 = vmatpush3.bf16.msra.mxu0 %v7214_v14 }
 0xbfb   :  { %v1775_v20 = vmul.f32 %v7404_v17, %v7398_v53  ;;  %7222 = vmatprep.subr.bf16.mxu0 %v7510_v0 }
 0xbfd   :  { %6582 = vmatmul.mubr.msk.f32.gmra.mrb[52].mxu0 %vm591_vm7, %v1775_v20 }
 0xbfe   :  { %6603 = vmatprep.mubr.msk.f32.mxu0 %vm7511_vm0, %v7512_v4 }
 0xc01   :  { %6604 = vmatmul.mubr.msk.f32.vlgmr.msra.gmra.mrb[54].mxu0 %vm165_vm2, %v7724_v15 }
 0xc02   :  { %6606 = vmatprep.mubr.msk.f32.mxu0 %vm7511_vm0, %v7512_v4  ;;  %7224 = vmatpush3.bf16.msra.mxu0 %v7223_v8 }
 0xc03   :  { %7225 = vmatprep.subr.bf16.mxu0 %v7510_v0 }
 0xc05   :  { %6607 = vmatmul.mubr.msk.f32.gmra.mrb[56].mxu0 %vm165_vm2, %v7738_v22 }
 0xc06   :  { %6609 = vmatprep.mubr.msk.f32.mxu0 %vm7511_vm0, %v7512_v4  ;;  %7227 = vmatpush3.bf16.msra.mxu0 %v7226_v28 }
 0xc07   :  { %7232 = vmatprep.subr.bf16.mxu0 %v7510_v0 }
 0xc09   :  { %6610 = vmatmul.mubr.msk.f32.gmra.mrb[58].mxu0 %vm165_vm2, %v7752_v27 }
 0xc0a   :  { %6637 = vmatprep.mubr.msk.f32.mxu0 %vm7511_vm0, %v7512_v4 }
 0xc0d   :  { %6638 = vmatmul.mubr.msk.f32.vlgmr.msra.gmra.mrb[60].mxu0 %vm165_vm2, %v7724_v15 }
 0xc0e   :  { %6640 = vmatprep.mubr.msk.f32.mxu0 %vm7511_vm0, %v7512_v4 }
 0xc11   :  { %6641 = vmatmul.mubr.msk.f32.gmra.mrb[62].mxu0 %vm165_vm2, %v7738_v22 }
 0xc12   :  { %6643 = vmatprep.mubr.msk.f32.mxu0 %vm7511_vm0, %v7512_v4 }
 0xc15   :  { %6644 = vmatmul.mubr.msk.f32.gmra.mrb[64].mxu0 %vm165_vm2, %v7752_v27 }
 0xc16   :  { %6667 = vmatprep.mubr.msk.f32.mxu0 %vm7511_vm0, %v7512_v4 }
 0xcc8   :  { %v1854_v34 = vpop.f32.mrb[48].mxu0 }
 0xcc9   :  { %v6577_v35 = vpop.f32.mrb[49].mxu0  ;;  %6587 = vmatmul.mubr.msk.f32.vlgmr.msra.gmra.mrb[54].mxu1 %vm486_vm5, %v1854_v34 }
 0xcca   :  { %6589 = vmatprep.mubr.msk.f32.mxu1 %vm7511_vm0, %v7512_v4  ;;  %7218 = vmatpush3.bf16.msra.mxu1 %v7217_v32 }
 0xccb   :  { %7219 = vmatprep.subr.bf16.mxu1 %v7510_v0 }
 0xccc   :  { %v1859_v37 = vpop.f32.mrb[50].mxu0 }
 0xccd   :  { %v6580_v23 = vpop.f32.mrb[51].mxu0  ;;  %6590 = vmatmul.mubr.msk.f32.gmra.mrb[56].mxu1 %vm486_vm5, %v1859_v37 }
 0xcce   :  { %6592 = vmatprep.mubr.msk.f32.mxu1 %vm7511_vm0, %v7512_v4  ;;  %7221 = vmatpush3.bf16.msra.mxu1 %v7220_v36 }
 0xccf   :  { %7228 = vmatprep.subr.bf16.mxu1 %v7510_v0 }
 0xcd0   :  { %v1864_v38 = vpop.f32.mrb[52].mxu0 }
 0xcd1   :  { %v6583_v39 = vpop.f32.mrb[53].mxu0  ;;  %6593 = vmatmul.mubr.msk.f32.gmra.mrb[58].mxu1 %vm486_vm5, %v1864_v38 }
 0xcd2   :  { %6620 = vmatprep.mubr.msk.f32.mxu1 %vm7511_vm0, %v7512_v4 }
 0xcd4   :  { %v2033_v40 = vpop.f32.mrb[54].mxu0 }
 0xcd5   :  { %v6605_v26 = vpop.f32.mrb[55].mxu0  ;;  %6621 = vmatmul.mubr.msk.f32.vlgmr.msra.gmra.mrb[60].mxu1 %vm165_vm2, %v7724_v15 }
 0xcd6   :  { %6623 = vmatprep.mubr.msk.f32.mxu1 %vm7511_vm0, %v7512_v4  ;;  %v5776_v26 = vld [vmem:[%s9082_s9 + $0x18] sm:$0xff] }
 0xcd8   :  { %v2038_v41 = vpop.f32.mrb[56].mxu0 }
 0xcd9   :  { %v6608_v42 = vpop.f32.mrb[57].mxu0  ;;  %6624 = vmatmul.mubr.msk.f32.gmra.mrb[62].mxu1 %vm165_vm2, %v7738_v22 }
 0xcda   :  { %6626 = vmatprep.mubr.msk.f32.mxu1 %vm7511_vm0, %v7512_v4 }
 0xcdc   :  { %v2043_v43 = vpop.f32.mrb[58].mxu0 }
 0xcdd   :  { %v6611_v44 = vpop.f32.mrb[59].mxu0  ;;  %6627 = vmatmul.mubr.msk.f32.gmra.mrb[64].mxu1 %vm165_vm2, %v7752_v27 }
 0xcde   :  { %6652 = vmatprep.mubr.msk.f32.mxu1 %vm7511_vm0, %v7512_v4 }
 0xce0   :  { %v2203_v15 = vpop.f32.mrb[60].mxu0 }
 0xce1   :  { %v6639_v46 = vpop.f32.mrb[61].mxu0 }
 0xce4   :  { %v2208_v47 = vpop.f32.mrb[62].mxu0 }
 0xce5   :  { %v7233_v48 = vpack.c.bf16 %v2208_v47, %v2203_v15  ;;  %v6642_v49 = vpop.f32.mrb[63].mxu0 }
 0xce7   :  { %7234 = vmatpush3.bf16.msra.mxu0 %v7233_v48 }
 0xce8   :  { %v2213_v50 = vpop.f32.mrb[64].mxu0  ;;  %6665 = vmatprep.subr.mxu0 %v7512_v4 }
 0xce9   :  { %v6645_v22 = vpop.f32.mrb[65].mxu0 }
 0xceb   :  { %6666 = vmatpush3.msk.msra.mxu0 %vm635_vm4, %v2213_v50 }
 0xcec   :  { %7235 = vmatprep.subr.bf16.mxu0 %v7510_v0 }
 0xd9c   :  { %v1945_v51 = vpop.f32.mrb[54].mxu1 }
 0xd9d   :  { %v8202_v27 = vadd.f32 %v1945_v51, %v8071_v56  ;;  %v6588_v52 = vpop.f32.mrb[55].mxu1 }
 0xda0   :  { %v1950_v53 = vpop.f32.mrb[56].mxu1 }
 0xda1   :  { %v8205_v54 = vadd.f32 %v1950_v53, %v8073_v59  ;;  %v6591_v55 = vpop.f32.mrb[57].mxu1 }
 0xda4   :  { %v1955_v57 = vpop.f32.mrb[58].mxu1 }
 0xda5   :  { %v8208_v58 = vadd.f32 %v1955_v57, %v8075_v62  ;;  %v6594_v60 = vpop.f32.mrb[59].mxu1 }
 0xda8   :  { %v2118_v61 = vpop.f32.mrb[60].mxu1 }
 0xda9   :  { %v6622_v1 = vpop.f32.mrb[61].mxu1 }
 0xdaa   :  { %v5780_v1 = vld [vmem:[%s9083_s10] ss:$0 sm:$0xff] }
 0xdac   :  { %v2123_v2 = vpop.f32.mrb[62].mxu1 }
 0xdad   :  { %v7229_v3 = vpack.c.bf16 %v2123_v2, %v2118_v61  ;;  %v6625_v5 = vpop.f32.mrb[63].mxu1 }
 0xdaf   :  { %7231 = vmatpush3.bf16.xpose.msk.msra.mxu1 %vm7780_vm6, %v7229_v3 }
 0xdb0   :  { %v2128_v56 = vpop.f32.mrb[64].mxu1  ;;  %6650 = vmatprep.subr.mxu1 %v7512_v4 }
 0xdb1   :  { %v6628_v7 = vpop.f32.mrb[65].mxu1 }
 0xdb7   :  { %6651 = vmatpush3.xpose.msk.msra.mxu1 %vm486_vm5, %v2128_v56 }
 0xdb8   :  { %6676 = vmatprep.subr.mxu1 %v7512_v4 }
 0xdba   :  { %6653 = vmatmul.mubr.msk.f32.vlgmr.msra.gmra.mrb[66].mxu1 %vm486_vm5, %v2033_v40 }
 0xdbb   :  { %6655 = vmatprep.mubr.msk.f32.mxu1 %vm7511_vm0, %v7512_v4  ;;  %6677 = vmatpush3.msra.mxu1 %v5776_v26 }
 0xdbc   :  { %7241 = vmatprep.subr.bf16.mxu1 %v7510_v0 }
 0xdbe   :  { %6656 = vmatmul.mubr.msk.f32.gmra.mrb[68].mxu1 %vm486_vm5, %v2038_v41 }
 0xdbf   :  { %6658 = vmatprep.mubr.msk.f32.mxu1 %vm7511_vm0, %v7512_v4 }
 0xdc2   :  { %6659 = vmatmul.mubr.msk.f32.gmra.mrb[70].mxu1 %vm486_vm5, %v2043_v43 }
 0xdc3   :  { %6678 = vmatprep.mubr.msk.f32.mxu1 %vm7511_vm0, %v7512_v4 }
 0xe8d   :  { %v2301_v59 = vpop.f32.mrb[66].mxu1 }
 0xe8e   :  { %v2315_v62 = vmul.f32 0.35355338, %v2301_v59  ;;  %v6654_v9 = vpop.f32.mrb[67].mxu1 }
 0xe90   :  { %v2318_v11 = vadd.f32 %v2315_v62, %v7853_v63 }
 0xe91   :  { %v2306_v14 = vpop.f32.mrb[68].mxu1 }
 0xe92   :  { %v2316_v16 = vmul.f32 0.35355338, %v2306_v14  ;;  %v6657_v17 = vpop.f32.mrb[69].mxu1  ;;  %v2321_v20 = vsel %vm591_vm7, %v2318_v11, -inf }
 0xe93   :  { %2322 = vmax.xlane.f32.xlu0 %v2321_v20 }
 0xe94   :  { %v2319_v21 = vadd.f32 %v2316_v16, %v7859_v6 }
 0xe95   :  { %v2311_v25 = vpop.f32.mrb[70].mxu1 }
 0xe96   :  { %v2317_v8 = vmul.f32 0.35355338, %v2311_v25  ;;  %v6660_v10 = vpop.f32.mrb[71].mxu1  ;;  %v2324_v13 = vsel %vm591_vm7, %v2319_v21, -inf }
 0xe97   :  { %2325 = vmax.xlane.f32.xlu1 %v2324_v13 }
 0xe98   :  { %v2320_v28 = vadd.f32 %v2317_v8, %v7866_v12 }
 0xe9a   :  { %v2327_v30 = vsel %vm598_vm8, %v2320_v28, -inf }
 0xe9b   :  { %2328 = vmax.xlane.f32.xlu0 %v2327_v30 }
 0xf20   :  { %v2323_v63 = vpop.xlane.xlu0 %2322 }
 0xf21   :  { %v2330_v31 = vsub.f32 %v2318_v11, %v2323_v63 }
 0xf23   :  { %v2333_v32 = vmul.f32 1.442695, %v2330_v31 }
 0xf24   :  { %v2326_v33 = vpop.xlane.xlu1 %2325 }
 0xf25   :  { %7405 = vpow2.f32 %v2333_v32  ;;  %v2331_v18 = vsub.f32 %v2319_v21, %v2326_v33 }
 0xf27   :  { %v2335_v34 = vmul.f32 1.442695, %v2331_v18  ;;  %v2612_v18 = vld [vmem:[%s9084_s13] sm:$0xff] }
 0xf28   :  { %v2329_v35 = vpop.xlane.xlu0 %2328 }
 0xf29   :  { %7407 = vpow2.f32 %v2335_v34  ;;  %v2332_v6 = vsub.f32 %v2320_v28, %v2329_v35  ;;  %v2613_v34 = vld [vmem:[%s9084_s13 + $0x8] sm:$0xff] }
 0xf2a   :  { %v7236_v35 = vpack.c.bf16 %v2613_v34, %v2612_v18 }
 0xf2b   :  { %v2337_v36 = vmul.f32 1.442695, %v2332_v6  ;;  %v2614_v6 = vld [vmem:[%s9084_s13 + $0x10] sm:$0xff] }
 0xf2d   :  { %7409 = vpow2.f32 %v2337_v36  ;;  %v2615_v36 = vld [vmem:[%s9084_s13 + $0x18] sm:$0xff] }
 0xf2f   :  { %v7406_v37 = vpop.eup %7405 }
 0xf30   :  { %v2339_v23 = vsel %vm591_vm7, %v7406_v37, 0.0 }
 0xf31   :  { %2340 = vadd.xlane.f32.xlu1 %v2339_v23 }
 0xf33   :  { %v7408_v12 = vpop.eup %7407 }
 0xf34   :  { %v2342_v38 = vsel %vm591_vm7, %v7408_v12, 0.0 }
 0xf35   :  { %2343 = vadd.xlane.f32.xlu0 %v2342_v38 }
 0xf37   :  { %v7410_v39 = vpop.eup %7409 }
 0xf38   :  { %v2345_v40 = vsel %vm598_vm8, %v7410_v39, 0.0 }
 0xf39   :  { %2346 = vadd.xlane.f32.xlu1 %v2345_v40 }
 0xfbe   :  { %v2341_v41 = vpop.xlane.xlu1 %2340 }
 0xfbf   :  { %7411 = vrcp.f32 %v2341_v41 }
 0xfc2   :  { %v2344_v42 = vpop.xlane.xlu0 %2343 }
 0xfc3   :  { %7413 = vrcp.f32 %v2344_v42 }
 0xfc6   :  { %v2347_v43 = vpop.xlane.xlu1 %2346 }
 0xfc7   :  { %7415 = vrcp.f32 %v2347_v43 }
 0xfc9   :  { %v7412_v44 = vpop.eup %7411 }
 0xfca   :  { %v2351_v15 = vmul.f32 %v7412_v44, %v7406_v37  ;;  %v7239_v37 = vpack.c.bf16 %v2615_v36, %v2614_v6 }
 0xfcc   :  { %6668 = vmatmul.mubr.msk.f32.vlgmr.msra.gmra.mrb[66].mxu0 %vm591_vm7, %v2351_v15  ;;  %v5781_v15 = vld [vmem:[%s9085_s11] ss:$0 sm:$0xff] }
 0xfcd   :  { %v7414_v46 = vpop.eup %7413  ;;  %6670 = vmatprep.mubr.msk.f32.mxu0 %vm7511_vm0, %v7512_v4  ;;  %7237 = vmatpush3.bf16.msra.mxu0 %v7236_v35 }
 0xfce   :  { %v2352_v47 = vmul.f32 %v7414_v46, %v7408_v12  ;;  %7238 = vmatprep.subr.bf16.mxu0 %v7510_v0 }
 0xfd0   :  { %6671 = vmatmul.mubr.msk.f32.gmra.mrb[68].mxu0 %vm591_vm7, %v2352_v47  ;;  %v5782_v47 = vld [vmem:[%s9086_s12] ss:$0 sm:$0xff] }
 0xfd1   :  { %v7416_v48 = vpop.eup %7415  ;;  %6673 = vmatprep.mubr.msk.f32.mxu0 %vm7511_vm0, %v7512_v4  ;;  %7240 = vmatpush3.bf16.msra.mxu0 %v7239_v37 }
 0xfd2   :  { %v2353_v49 = vmul.f32 %v7416_v48, %v7410_v39  ;;  %7247 = vmatprep.subr.bf16.mxu0 %v7510_v0 }
 0xfd4   :  { %6674 = vmatmul.mubr.msk.f32.gmra.mrb[70].mxu0 %vm591_vm7, %v2353_v49 }
 0xfd5   :  { %6695 = vmatprep.mubr.msk.f32.mxu0 %vm7511_vm0, %v7512_v4 }
0x109f   :  { %v2432_v50 = vpop.f32.mrb[66].mxu0 }
0x10a0   :  { %v6669_v22 = vpop.f32.mrb[67].mxu0  ;;  %6679 = vmatmul.mubr.msk.f32.vlgmr.msra.gmra.mrb[72].mxu1 %vm486_vm5, %v2432_v50 }
0x10a1   :  { %6681 = vmatprep.mubr.msk.f32.mxu1 %vm7511_vm0, %v7512_v4 }
0x10a3   :  { %v2437_v51 = vpop.f32.mrb[68].mxu0 }
0x10a4   :  { %v6672_v52 = vpop.f32.mrb[69].mxu0  ;;  %6682 = vmatmul.mubr.msk.f32.gmra.mrb[74].mxu1 %vm486_vm5, %v2437_v51 }
0x10a5   :  { %6684 = vmatprep.mubr.msk.f32.mxu1 %vm7511_vm0, %v7512_v4 }
0x10a7   :  { %v2442_v53 = vpop.f32.mrb[70].mxu0 }
0x10a8   :  { %v6675_v55 = vpop.f32.mrb[71].mxu0  ;;  %6685 = vmatmul.mubr.msk.f32.gmra.mrb[76].mxu1 %vm486_vm5, %v2442_v53 }
0x10a9   :  { %6712 = vmatprep.mubr.msk.f32.mxu1 %vm7511_vm0, %v7512_v4 }
0x1173   :  { %v2523_v57 = vpop.f32.mrb[72].mxu1 }
0x1174   :  { %v2537_v60 = vadd.f32 %v2523_v57, %v8202_v27  ;;  %v6680_v61 = vpop.f32.mrb[73].mxu1 }
0x1175   :  { %v2793_v61 = vld [vmem:[%s9087_s15] sm:$0xff] }
0x1176   :  { %v2540_v2 = vadd.f32 %v2537_v60, %v7656_v19 }
0x1177   :  { %v2528_v3 = vpop.f32.mrb[74].mxu1 }
0x1178   :  { %v8260_v5 = vadd.f32 %v5780_v1, %v2540_v2  ;;  %v2538_v56 = vadd.f32 %v2528_v3, %v8205_v54  ;;  %v6683_v7 = vpop.f32.mrb[75].mxu1  ;;  %v2795_v3 = vld [vmem:[%s9087_s15 + $0x10] sm:$0xff] }
0x117a   :  { %v2541_v59 = vadd.f32 %v2538_v56, %v7663_v24  ;;  %v2555_v62 = vsel %vm165_vm2, %v8260_v5, 0.0  ;;  %v2796_v56 = vld [vmem:[%s9087_s15 + $0x18] sm:$0xff] }
0x117b   :  { %2556 = vadd.xlane.f32.xlu0 %v2555_v62  ;;  %v2533_v27 = vpop.f32.mrb[76].mxu1  ;;  %v7245_v7 = vpack.c.bf16 %v2796_v56, %v2795_v3 }
0x117c   :  { %v8266_v9 = vadd.f32 %v5780_v1, %v2541_v59  ;;  %v2539_v11 = vadd.f32 %v2533_v27, %v8208_v58  ;;  %v6686_v14 = vpop.f32.mrb[77].mxu1  ;;  %v5783_v59 = vld [vmem:[%s9088_s14] ss:$0 sm:$0xff] }
0x117e   :  { %v2542_v19 = vadd.f32 %v2539_v11, %v7670_v29  ;;  %v2558_v16 = vsel %vm165_vm2, %v8266_v9, 0.0 }
0x117f   :  { %2559 = vadd.xlane.f32.xlu1 %v2558_v16 }
0x1180   :  { %v8272_v54 = vadd.f32 %v5780_v1, %v2542_v19  ;;  %v2794_v1 = vld [vmem:[%s9087_s15 + $0x8] sm:$0xff] }
0x1181   :  { %v7242_v2 = vpack.c.bf16 %v2794_v1, %v2793_v61 }
0x1182   :  { %v2561_v24 = vsel %vm172_vm3, %v8272_v54, 0.0 }
0x1183   :  { %2562 = vadd.xlane.f32.xlu0 %v2561_v24  ;;  %7243 = vmatpush3.bf16.msra.mxu1 %v7242_v2 }
0x1184   :  { %7244 = vmatprep.subr.bf16.mxu1 %v7510_v0 }
0x1187   :  { %7246 = vmatpush3.bf16.msra.mxu1 %v7245_v7 }
0x1188   :  { %7253 = vmatprep.subr.bf16.mxu1 %v7510_v0 }
0x1208   :  { %v2557_v17 = vpop.xlane.xlu0 %2556 }
0x1209   :  { %v2564_v20 = vmul.f32 0.03125, %v2557_v17 }
0x120b   :  { %v2567_v21 = vsub.f32 %v8260_v5, %v2564_v20 }
0x120c   :  { %v2560_v25 = vpop.xlane.xlu1 %2559 }
0x120d   :  { %v2565_v8 = vmul.f32 0.03125, %v2560_v25  ;;  %v2570_v58 = vmul.f32 %v2567_v21, %v2567_v21 }
0x120f   :  { %v2568_v10 = vsub.f32 %v8266_v9, %v2565_v8  ;;  %v2573_v29 = vsel %vm165_vm2, %v2570_v58, 0.0 }
0x1210   :  { %2574 = vadd.xlane.f32.xlu1 %v2573_v29  ;;  %v2563_v13 = vpop.xlane.xlu0 %2562 }
0x1211   :  { %v2566_v28 = vmul.f32 0.03125, %v2563_v13  ;;  %v2571_v30 = vmul.f32 %v2568_v10, %v2568_v10 }
0x1213   :  { %v2569_v63 = vsub.f32 %v8272_v54, %v2566_v28  ;;  %v2576_v31 = vsel %vm165_vm2, %v2571_v30, 0.0 }
0x1214   :  { %2577 = vadd.xlane.f32.xlu0 %v2576_v31 }
0x1215   :  { %v2572_v32 = vmul.f32 %v2569_v63, %v2569_v63 }
0x1217   :  { %v2579_v33 = vsel %vm172_vm3, %v2572_v32, 0.0 }
0x1218   :  { %2580 = vadd.xlane.f32.xlu1 %v2579_v33 }
0x129d   :  { %v2575_v23 = vpop.xlane.xlu1 %2574 }
0x129e   :  { %v2582_v12 = vmul.f32 0.03125, %v2575_v23 }
0x12a0   :  { %v2585_v38 = vadd.f32 1e-05, %v2582_v12 }
0x12a1   :  { %v2578_v39 = vpop.xlane.xlu0 %2577 }
0x12a2   :  { %7417 = vrsqrt.f32 %v2585_v38  ;;  %v2583_v40 = vmul.f32 0.03125, %v2578_v39 }
0x12a4   :  { %v2586_v26 = vadd.f32 1e-05, %v2583_v40 }
0x12a5   :  { %v2581_v41 = vpop.xlane.xlu1 %2580 }
0x12a6   :  { %7419 = vrsqrt.f32 %v2586_v26  ;;  %v2584_v42 = vmul.f32 0.03125, %v2581_v41 }
0x12a8   :  { %v2587_v43 = vadd.f32 1e-05, %v2584_v42 }
0x12aa   :  { %7421 = vrsqrt.f32 %v2587_v43 }
0x12ac   :  { %v7418_v44 = vpop.eup %7417 }
0x12ad   :  { %v2591_v46 = vmul.f32 %v7418_v44, %v2567_v21 }
0x12af   :  { %v2600_v48 = vmul.f32 %v5781_v15, %v2591_v46 }
0x12b0   :  { %v7420_v49 = vpop.eup %7419 }
0x12b1   :  { %v2609_v50 = vadd.f32 %v5782_v47, %v2600_v48  ;;  %v2592_v22 = vmul.f32 %v7420_v49, %v2568_v10 }
0x12b3   :  { %6696 = vmatmul.mubr.msk.f32.vlgmr.msra.gmra.mrb[72].mxu0 %vm165_vm2, %v2609_v50  ;;  %v2601_v51 = vmul.f32 %v5781_v15, %v2592_v22 }
0x12b4   :  { %v7422_v52 = vpop.eup %7421  ;;  %6698 = vmatprep.mubr.msk.f32.mxu0 %vm7511_vm0, %v7512_v4 }
0x12b5   :  { %v2610_v53 = vadd.f32 %v5782_v47, %v2601_v51  ;;  %v2593_v55 = vmul.f32 %v7422_v52, %v2569_v63 }
0x12b7   :  { %6699 = vmatmul.mubr.msk.f32.gmra.mrb[74].mxu0 %vm165_vm2, %v2610_v53  ;;  %v2602_v57 = vmul.f32 %v5781_v15, %v2593_v55 }
0x12b8   :  { %6701 = vmatprep.mubr.msk.f32.mxu0 %vm7511_vm0, %v7512_v4 }
0x12b9   :  { %v2611_v60 = vadd.f32 %v5782_v47, %v2602_v57 }
0x12bb   :  { %6702 = vmatmul.mubr.msk.f32.gmra.mrb[76].mxu0 %vm165_vm2, %v2611_v60 }
0x12bc   :  { %6729 = vmatprep.mubr.msk.f32.mxu0 %vm7511_vm0, %v7512_v4 }
0x1386   :  { %v2698_v62 = vpop.f32.mrb[72].mxu0 }
0x1387   :  { %v8328_v27 = vadd.f32 %v5783_v59, %v2698_v62  ;;  %v6697_v11 = vpop.f32.mrb[73].mxu0 }
0x1389   :  { %v8331_v14 = vmul.f32 0.70710677, %v8328_v27 }
0x138a   :  { %v2703_v19 = vpop.f32.mrb[74].mxu0 }
0x138b   :  { %v2724_v16 = vand.u32 2147483647, %v8331_v14  ;;  %v8334_v24 = vadd.f32 %v5783_v59, %v2703_v19  ;;  %v6700_v17 = vpop.f32.mrb[75].mxu0  ;;  %vm2718_vm9 = vcmp.ge.f32.partialorder %v8331_v14, 0.0 }
0x138d   :  { %v2727_v20 = vmul.f32 0.3275911, %v2724_v16  ;;  %v8337_v21 = vmul.f32 0.70710677, %v8334_v24  ;;  %v2766_v32 = vsub.f32 0.0, %v2724_v16 }
0x138e   :  { %v2708_v25 = vpop.f32.mrb[76].mxu0 }
0x138f   :  { %v2730_v8 = vadd.f32 1.0, %v2727_v20  ;;  %v2725_v58 = vand.u32 2147483647, %v8337_v21  ;;  %v6703_v10 = vpop.f32.mrb[77].mxu0  ;;  %v8340_v29 = vadd.f32 %v5783_v59, %v2708_v25  ;;  %v2769_v34 = vmul.f32 %v2766_v32, %v2724_v16 }
0x1390   :  { %v7513_v16 = vmov -1.0   ;;  %vm2719_vm10 = vcmp.ge.f32.partialorder %v8337_v21, 0.0  ;;  %v2712_v10 = vmul.f32 0.5, %v8328_v27 }
0x1391   :  { %7423 = vrcp.f32 %v2730_v8  ;;  %v2728_v13 = vmul.f32 0.3275911, %v2725_v58  ;;  %v8343_v28 = vmul.f32 0.70710677, %v8340_v29  ;;  %v2767_v35 = vsub.f32 0.0, %v2725_v58 }
0x1392   :  { %v2772_v23 = vmul.f32 1.442695, %v2769_v34  ;;  %v2721_v17 = vsel %vm2718_vm9, 1.0, %v7513_v16  ;;  %v2722_v14 = vsel %vm2719_vm10, 1.0, %v7513_v16  ;;  %v2713_v34 = vmul.f32 0.5, %v8334_v24 }
0x1393   :  { %v2731_v30 = vadd.f32 1.0, %v2728_v13  ;;  %v2726_v63 = vand.u32 2147483647, %v8343_v28  ;;  %v2770_v12 = vmul.f32 %v2767_v35, %v2725_v58  ;;  %vm2720_vm11 = vcmp.ge.f32.partialorder %v8343_v28, 0.0 }
0x1395   :  { %7425 = vrcp.f32 %v2731_v30  ;;  %v2729_v31 = vmul.f32 0.3275911, %v2726_v63  ;;  %v2768_v40 = vsub.f32 0.0, %v2726_v63  ;;  %v2774_v42 = vmul.f32 1.442695, %v2770_v12 }
0x1396   :  { %v5790_v12 = vld [vmem:[%s9089_s16] ss:$0 sm:$0xff] }
0x1397   :  { %v2732_v33 = vadd.f32 1.0, %v2729_v31  ;;  %v2771_v46 = vmul.f32 %v2768_v40, %v2726_v63 }
0x1399   :  { %7427 = vrcp.f32 %v2732_v33  ;;  %v2776_v52 = vmul.f32 1.442695, %v2771_v46 }
0x139a   :  { %7429 = vpow2.f32 %v2772_v23 }
0x139b   :  { %v7424_v18 = vpop.eup %7423  ;;  %7431 = vpow2.f32 %v2774_v42 }
0x139c   :  { %v2739_v6 = vmul.f32 1.0614054, %v7424_v18  ;;  %7433 = vpow2.f32 %v2776_v52 }
0x139e   :  { %v2742_v36 = vadd.f32 -1.4531521, %v2739_v6  ;;  %v2723_v6 = vsel %vm2720_vm11, 1.0, %v7513_v16 }
0x139f   :  { %v7426_v37 = vpop.eup %7425 }
0x13a0   :  { %v2745_v38 = vmul.f32 %v7424_v18, %v2742_v36  ;;  %v2740_v39 = vmul.f32 1.0614054, %v7426_v37 }
0x13a2   :  { %v2748_v26 = vadd.f32 1.4214138, %v2745_v38  ;;  %v2743_v41 = vadd.f32 -1.4531521, %v2740_v39 }
0x13a3   :  { %v7428_v43 = vpop.eup %7427 }
0x13a4   :  { %v2751_v44 = vmul.f32 %v7424_v18, %v2748_v26  ;;  %v2746_v15 = vmul.f32 %v7426_v37, %v2743_v41  ;;  %v2741_v47 = vmul.f32 1.0614054, %v7428_v43  ;;  %v7430_v2 = vpop.eup %7429 }
0x13a5   :  { %v7432_v19 = vpop.eup %7431 }
0x13a6   :  { %v2754_v48 = vadd.f32 -0.28449672, %v2751_v44  ;;  %v2749_v49 = vadd.f32 1.4214138, %v2746_v15  ;;  %v2744_v50 = vadd.f32 -1.4531521, %v2741_v47  ;;  %v7434_v31 = vpop.eup %7433 }
0x13a8   :  { %v2757_v22 = vmul.f32 %v7424_v18, %v2754_v48  ;;  %v2752_v51 = vmul.f32 %v7426_v37, %v2749_v49  ;;  %v2747_v53 = vmul.f32 %v7428_v43, %v2744_v50 }
0x13aa   :  { %v2760_v55 = vadd.f32 0.2548296, %v2757_v22  ;;  %v2755_v57 = vadd.f32 -0.28449672, %v2752_v51  ;;  %v2750_v60 = vadd.f32 1.4214138, %v2747_v53 }
0x13ac   :  { %v2763_v61 = vmul.f32 %v7424_v18, %v2760_v55  ;;  %v2758_v1 = vmul.f32 %v7426_v37, %v2755_v57  ;;  %v2753_v3 = vmul.f32 %v7428_v43, %v2750_v60 }
0x13ae   :  { %v2778_v56 = vmul.f32 %v7430_v2, %v2763_v61  ;;  %v2761_v7 = vadd.f32 0.2548296, %v2758_v1  ;;  %v2756_v59 = vadd.f32 -0.28449672, %v2753_v3 }
0x13b0   :  { %v2781_v62 = vsub.f32 1.0, %v2778_v56  ;;  %v2764_v11 = vmul.f32 %v7426_v37, %v2761_v7  ;;  %v2759_v20 = vmul.f32 %v7428_v43, %v2756_v59  ;;  %v2714_v37 = vmul.f32 0.5, %v8340_v29  ;;  %v5802_v56 = vld [vmem:[%s9079_s7 + $0x80] sm:$0xff]  ;;  %v5803_v7 = vld [vmem:[%s9079_s7 + $0x88] sm:$0xff] }
0x13b1   :  { %v5795_v59 = vld [vmem:[%s9076_s6 + $0x80] sm:$0xff] }
0x13b2   :  { %v2784_v25 = vmul.f32 %v2781_v62, %v2721_v17  ;;  %v2779_v8 = vmul.f32 %v7432_v19, %v2764_v11  ;;  %v2762_v58 = vadd.f32 0.2548296, %v2759_v20  ;;  %v7254_v62 = vpack.c.bf16 %v5803_v7, %v5802_v56  ;;  %v5796_v11 = vld [vmem:[%s9076_s6 + $0x88] sm:$0xff]  ;;  %v5797_v17 = vld [vmem:[%s9076_s6 + $0x90] sm:$0xff]  ;;  %v5798_v20 = vld [vmem:[%s9076_s6 + $0x98] sm:$0xff] }
0x13b3   :  { %v7248_v19 = vpack.c.bf16 %v5796_v11, %v5795_v59  ;;  %v5829_v59 = vld [vmem:[%s9076_s6 + $0xb0] sm:$0xff] }
0x13b4   :  { %v2787_v13 = vadd.f32 1.0, %v2784_v25  ;;  %v2782_v30 = vsub.f32 1.0, %v2779_v8  ;;  %v2765_v63 = vmul.f32 %v7428_v43, %v2762_v58  ;;  %v5804_v25 = vld [vmem:[%s9079_s7 + $0x90] sm:$0xff]  ;;  %v7251_v8 = vpack.c.bf16 %v5798_v20, %v5797_v17  ;;  %v5805_v58 = vld [vmem:[%s9079_s7 + $0x98] sm:$0xff] }
0x13b5   :  { %7249 = vmatpush3.bf16.msra.mxu0 %v7248_v19 }
0x13b6   :  { %v2790_v32 = vmul.f32 %v2787_v13, %v2712_v10  ;;  %v2785_v33 = vmul.f32 %v2782_v30, %v2722_v14  ;;  %v2780_v18 = vmul.f32 %v7434_v31, %v2765_v63  ;;  %7250 = vmatprep.subr.bf16.mxu0 %v7510_v0  ;;  %v7257_v10 = vpack.c.bf16 %v5805_v58, %v5804_v25  ;;  %v5841_v58 = vld [vmem:[%s9077_s8 + $0xa0] sm:$0xff] }
0x13b8   :  { %v2788_v35 = vadd.f32 1.0, %v2785_v33  ;;  %6713 = vmatmul.mubr.msk.f32.vlgmr.msra.gmra.mrb[78].mxu1 %vm165_vm2, %v2790_v32  ;;  %v2783_v21 = vsub.f32 1.0, %v2780_v18 }
0x13b9   :  { %6715 = vmatprep.mubr.msk.f32.mxu1 %vm7511_vm0, %v7512_v4  ;;  %7255 = vmatpush3.bf16.msra.mxu1 %v7254_v62  ;;  %v5830_v62 = vld [vmem:[%s9076_s6 + $0xb8] sm:$0xff] }
0x13ba   :  { %v2791_v27 = vmul.f32 %v2788_v35, %v2713_v34  ;;  %v2786_v36 = vmul.f32 %v2783_v21, %v2723_v6  ;;  %7256 = vmatprep.subr.bf16.mxu1 %v7510_v0  ;;  %7252 = vmatpush3.bf16.msra.mxu0 %v7251_v8  ;;  %v5793_v21 = vld [vmem:[%s9078_s4 + $0x1] ss:$0 sm:$0xff]  ;;  %v7276_v20 = vpack.c.bf16 %v5830_v62, %v5829_v59 }
0x13bb   :  { %7259 = vmatprep.subr.bf16.mxu0 %v7510_v0  ;;  %v5794_v6 = vld [vmem:[%s9080_s5 + $0x1] ss:$0 sm:$0xff] }
0x13bc   :  { %6716 = vmatmul.mubr.msk.f32.gmra.mrb[80].mxu1 %vm165_vm2, %v2791_v27  ;;  %v2789_v23 = vadd.f32 1.0, %v2786_v36  ;;  %v5809_v36 = vld [vmem:[%s9077_s8 + $0x80] sm:$0xff] }
0x13bd   :  { %6718 = vmatprep.mubr.msk.f32.mxu1 %vm7511_vm0, %v7512_v4  ;;  %7258 = vmatpush3.bf16.msra.mxu1 %v7257_v10  ;;  %v5842_v10 = vld [vmem:[%s9077_s8 + $0xa8] sm:$0xff] }
0x13be   :  { %v2792_v24 = vmul.f32 %v2789_v23, %v2714_v37  ;;  %7265 = vmatprep.subr.bf16.mxu1 %v7510_v0  ;;  %v5810_v37 = vld [vmem:[%s9077_s8 + $0x88] sm:$0xff] }
0x13c0   :  { %6719 = vmatmul.mubr.msk.f32.gmra.mrb[82].mxu1 %vm165_vm2, %v2792_v24 }
0x13c1   :  { %6746 = vmatprep.mubr.msk.f32.mxu1 %vm7511_vm0, %v7512_v4 }
0x148b   :  { %v2872_v28 = vpop.f32.mrb[78].mxu1 }
0x148c   :  { %v2886_v38 = vadd.f32 %v2872_v28, %v8260_v5  ;;  %v6714_v39 = vpop.f32.mrb[79].mxu1 }
0x148d   :  { %v5811_v39 = vld [vmem:[%s9077_s8 + $0x90] sm:$0xff] }
0x148e   :  { %v8368_v40 = vadd.f32 %v5790_v12, %v2886_v38  ;;  %v7260_v38 = vpack.c.bf16 %v5810_v37, %v5809_v36  ;;  %v8557_v36 = vld [vmem:[%s9081_s3 + $0x8] sm:$0xff] }
0x148f   :  { %v2877_v29 = vpop.f32.mrb[80].mxu1 }
0x1490   :  { %v2887_v26 = vadd.f32 %v2877_v29, %v8266_v9  ;;  %v6717_v41 = vpop.f32.mrb[81].mxu1  ;;  %v2903_v42 = vsel %vm165_vm2, %v8368_v40, 0.0  ;;  %v5812_v29 = vld [vmem:[%s9077_s8 + $0x98] sm:$0xff] }
0x1491   :  { %2904 = vadd.xlane.f32.xlu0 %v2903_v42 }
0x1492   :  { %v8373_v43 = vadd.f32 %v5790_v12, %v2887_v26 }
0x1493   :  { %v2882_v44 = vpop.f32.mrb[82].mxu1 }
0x1494   :  { %v2906_v15 = vsel %vm165_vm2, %v8373_v43, 0.0  ;;  %v2888_v46 = vadd.f32 %v2882_v44, %v8272_v54  ;;  %v6720_v5 = vpop.f32.mrb[83].mxu1  ;;  %v7263_v44 = vpack.c.bf16 %v5812_v29, %v5811_v39  ;;  %v8564_v39 = vld [vmem:[%s9081_s3 + $0x10] sm:$0x3] }
0x1495   :  { %2907 = vadd.xlane.f32.xlu1 %v2906_v15 }
0x1496   :  { %v8378_v47 = vadd.f32 %v5790_v12, %v2888_v46 }
0x1498   :  { %v2909_v9 = vsel %vm172_vm3, %v8378_v47, 0.0 }
0x1499   :  { %2910 = vadd.xlane.f32.xlu0 %v2909_v9 }
0x151e   :  { %v2905_v48 = vpop.xlane.xlu0 %2904 }
0x151f   :  { %v2912_v49 = vmul.f32 0.03125, %v2905_v48 }
0x1521   :  { %v2915_v50 = vsub.f32 %v8368_v40, %v2912_v49 }
0x1522   :  { %v2908_v22 = vpop.xlane.xlu1 %2907 }
0x1523   :  { %v2913_v51 = vmul.f32 0.03125, %v2908_v22  ;;  %v2918_v52 = vmul.f32 %v2915_v50, %v2915_v50 }
0x1525   :  { %v2916_v53 = vsub.f32 %v8373_v43, %v2913_v51  ;;  %v2921_v55 = vsel %vm165_vm2, %v2918_v52, 0.0 }
0x1526   :  { %2922 = vadd.xlane.f32.xlu1 %v2921_v55  ;;  %v2911_v54 = vpop.xlane.xlu0 %2910 }
0x1527   :  { %v2919_v57 = vmul.f32 %v2916_v53, %v2916_v53  ;;  %v2914_v60 = vmul.f32 0.03125, %v2911_v54 }
0x1529   :  { %v2924_v61 = vsel %vm165_vm2, %v2919_v57, 0.0  ;;  %v2917_v1 = vsub.f32 %v8378_v47, %v2914_v60 }
0x152a   :  { %2925 = vadd.xlane.f32.xlu0 %v2924_v61 }
0x152b   :  { %v2920_v2 = vmul.f32 %v2917_v1, %v2917_v1 }
0x152d   :  { %v2927_v3 = vsel %vm172_vm3, %v2920_v2, 0.0  ;;  %v5828_v2 = vld [vmem:[%s9076_s6 + $0xa8] sm:$0xff] }
0x152e   :  { %2928 = vadd.xlane.f32.xlu1 %v2927_v3 }
0x15b3   :  { %v2923_v13 = vpop.xlane.xlu1 %2922 }
0x15b4   :  { %v2930_v30 = vmul.f32 0.03125, %v2923_v13  ;;  %v7285_v13 = vpack.c.bf16 %v5842_v10, %v5841_v58  ;;  %v5834_v10 = vld [vmem:[%s9079_s7 + $0xa0] sm:$0xff] }
0x15b6   :  { %v2933_v14 = vadd.f32 1e-05, %v2930_v30  ;;  %v5843_v30 = vld [vmem:[%s9077_s8 + $0xb0] sm:$0xff] }
0x15b7   :  { %v2926_v63 = vpop.xlane.xlu0 %2925 }
0x15b8   :  { %7435 = vrsqrt.f32 %v2933_v14  ;;  %v2931_v31 = vmul.f32 0.03125, %v2926_v63  ;;  %v5844_v14 = vld [vmem:[%s9077_s8 + $0xb8] sm:$0xff] }
0x15b9   :  { %v7288_v63 = vpack.c.bf16 %v5844_v14, %v5843_v30 }
0x15ba   :  { %v2934_v32 = vadd.f32 1e-05, %v2931_v31 }
0x15bb   :  { %v2929_v33 = vpop.xlane.xlu1 %2928 }
0x15bc   :  { %7437 = vrsqrt.f32 %v2934_v32  ;;  %v2932_v18 = vmul.f32 0.03125, %v2929_v33 }
0x15be   :  { %v2935_v34 = vadd.f32 1e-05, %v2932_v18  ;;  %v8550_v18 = vld [vmem:[%s9081_s3] sm:$0xff] }
0x15c0   :  { %7439 = vrsqrt.f32 %v2935_v34 }
0x15c2   :  { %v7436_v35 = vpop.eup %7435 }
0x15c3   :  { %v2939_v27 = vmul.f32 %v7436_v35, %v2915_v50 }
0x15c5   :  { %v2948_v23 = vmul.f32 %v5793_v21, %v2939_v27 }
0x15c6   :  { %v7438_v24 = vpop.eup %7437 }
0x15c7   :  { %v8428_v28 = vadd.f32 %v5794_v6, %v2948_v23  ;;  %v2940_v12 = vmul.f32 %v7438_v24, %v2916_v53 }
0x15c9   :  { %v2949_v26 = vmul.f32 %v5793_v21, %v2940_v12  ;;  %6730 = vmatmul.mubr.msk.f32.vlgmr.msra.gmra.mrb[78].mxu0 %vm165_vm2, %v8428_v28  ;;  %6747 = vmatmul.mubr.msk.f32.vlgmr.msra.gmra.mrb[84].mxu1 %vm165_vm2, %v8428_v28 }
0x15ca   :  { %6732 = vmatprep.mubr.msk.f32.mxu0 %vm7511_vm0, %v7512_v4  ;;  %6749 = vmatprep.mubr.msk.f32.mxu1 %vm7511_vm0, %v7512_v4  ;;  %v7440_v41 = vpop.eup %7439 }
0x15cb   :  { %v8444_v42 = vadd.f32 %v5794_v6, %v2949_v26  ;;  %7261 = vmatpush3.bf16.msra.mxu0 %v7260_v38  ;;  %v2941_v15 = vmul.f32 %v7440_v41, %v2917_v1  ;;  %v5827_v1 = vld [vmem:[%s9076_s6 + $0xa0] sm:$0xff] }
0x15cc   :  { %7262 = vmatprep.subr.bf16.mxu0 %v7510_v0  ;;  %v7273_v7 = vpack.c.bf16 %v5828_v2, %v5827_v1 }
0x15cd   :  { %6733 = vmatmul.mubr.msk.f32.gmra.mrb[80].mxu0 %vm165_vm2, %v8444_v42  ;;  %6750 = vmatmul.mubr.msk.f32.gmra.mrb[86].mxu1 %vm165_vm2, %v8444_v42  ;;  %v2950_v46 = vmul.f32 %v5793_v21, %v2941_v15 }
0x15ce   :  { %6735 = vmatprep.mubr.msk.f32.mxu0 %vm7511_vm0, %v7512_v4  ;;  %6752 = vmatprep.mubr.msk.f32.mxu1 %vm7511_vm0, %v7512_v4 }
0x15cf   :  { %7264 = vmatpush3.bf16.msra.mxu0 %v7263_v44  ;;  %v8455_v5 = vadd.f32 %v5794_v6, %v2950_v46 }
0x15d0   :  { %7269 = vmatprep.subr.bf16.mxu0 %v7510_v0 }
0x15d1   :  { %6736 = vmatmul.mubr.msk.f32.gmra.mrb[82].mxu0 %vm165_vm2, %v8455_v5  ;;  %6753 = vmatmul.mubr.msk.f32.gmra.mrb[88].mxu1 %vm165_vm2, %v8455_v5 }
0x15d2   :  { %6763 = vmatprep.mubr.msk.f32.mxu0 %vm7511_vm0, %v7512_v4  ;;  %6778 = vmatprep.mubr.msk.f32.mxu1 %vm7511_vm0, %v7512_v4 }
0x15d5   :  { %6764 = vmatmul.mubr.msk.f32.vlgmr.msra.gmra.mrb[84].mxu0 %vm165_vm2, %v8428_v28 }
0x15d6   :  { %6766 = vmatprep.mubr.msk.f32.mxu0 %vm7511_vm0, %v7512_v4 }
0x15d9   :  { %6767 = vmatmul.mubr.msk.f32.gmra.mrb[86].mxu0 %vm165_vm2, %v8444_v42 }
0x15da   :  { %6769 = vmatprep.mubr.msk.f32.mxu0 %vm7511_vm0, %v7512_v4 }
0x15dd   :  { %6770 = vmatmul.mubr.msk.f32.gmra.mrb[88].mxu0 %vm165_vm2, %v8455_v5 }
0x15de   :  { %6793 = vmatprep.mubr.msk.f32.mxu0 %vm7511_vm0, %v7512_v4 }
0x169c   :  { %v3040_v9 = vpop.f32.mrb[78].mxu0  ;;  %v3125_v48 = vpop.f32.mrb[84].mxu1 }
0x169d   :  { %v6731_v49 = vpop.f32.mrb[79].mxu0  ;;  %v6748_v50 = vpop.f32.mrb[85].mxu1 }
0x16a0   :  { %v3045_v22 = vpop.f32.mrb[80].mxu0  ;;  %v3130_v51 = vpop.f32.mrb[86].mxu1 }
0x16a1   :  { %v7266_v52 = vpack.c.bf16 %v3130_v51, %v3125_v48  ;;  %v6734_v53 = vpop.f32.mrb[81].mxu0  ;;  %v6751_v55 = vpop.f32.mrb[87].mxu1 }
0x16a3   :  { %7268 = vmatpush3.bf16.xpose.msk.msra.mxu1 %vm7780_vm6, %v7266_v52 }
0x16a4   :  { %6776 = vmatprep.subr.mxu1 %v7512_v4  ;;  %v3050_v54 = vpop.f32.mrb[82].mxu0  ;;  %v3135_v57 = vpop.f32.mrb[88].mxu1 }
0x16a5   :  { %v6737_v60 = vpop.f32.mrb[83].mxu0  ;;  %v6754_v61 = vpop.f32.mrb[89].mxu1 }
0x16a8   :  { %v3210_v3 = vpop.f32.mrb[84].mxu0 }
0x16a9   :  { %v6765_v56 = vpop.f32.mrb[85].mxu0 }
0x16ab   :  { %6777 = vmatpush3.xpose.msk.msra.mxu1 %vm486_vm5, %v3135_v57 }
0x16ac   :  { %7272 = vmatprep.subr.bf16.mxu1 %v7510_v0  ;;  %v3215_v11 = vpop.f32.mrb[86].mxu0 }
0x16ad   :  { %v7270_v19 = vpack.c.bf16 %v3215_v11, %v3210_v3  ;;  %v6768_v17 = vpop.f32.mrb[87].mxu0 }
0x16ae   :  { %6779 = vmatmul.mubr.msk.f32.vlgmr.msra.gmra.mrb[90].mxu1 %vm486_vm5, %v3040_v9 }
0x16af   :  { %6781 = vmatprep.mubr.msk.f32.mxu1 %vm7511_vm0, %v7512_v4  ;;  %7274 = vmatpush3.bf16.msra.mxu1 %v7273_v7 }
0x16b0   :  { %7271 = vmatpush3.bf16.msra.mxu0 %v7270_v19  ;;  %7275 = vmatprep.subr.bf16.mxu1 %v7510_v0  ;;  %v3220_v25 = vpop.f32.mrb[88].mxu0 }
0x16b1   :  { %6791 = vmatprep.subr.mxu0 %v7512_v4  ;;  %v6771_v8 = vpop.f32.mrb[89].mxu0 }
0x16b2   :  { %6782 = vmatmul.mubr.msk.f32.gmra.mrb[92].mxu1 %vm486_vm5, %v3045_v22 }
0x16b3   :  { %6784 = vmatprep.mubr.msk.f32.mxu1 %vm7511_vm0, %v7512_v4  ;;  %7277 = vmatpush3.bf16.msra.mxu1 %v7276_v20 }
0x16b4   :  { %6792 = vmatpush3.msk.msra.mxu0 %vm635_vm4, %v3220_v25  ;;  %7284 = vmatprep.subr.bf16.mxu1 %v7510_v0 }
0x16b5   :  { %7278 = vmatprep.subr.bf16.mxu0 %v7510_v0 }
0x16b6   :  { %6785 = vmatmul.mubr.msk.f32.gmra.mrb[94].mxu1 %vm486_vm5, %v3050_v54 }
0x16b7   :  { %6810 = vmatprep.mubr.msk.f32.mxu1 %vm7511_vm0, %v7512_v4 }
0x16ba   :  { %6811 = vmatmul.mubr.msk.f32.vlgmr.msra.gmra.mrb[96].mxu1 %vm165_vm2, %v8428_v28 }
0x16bb   :  { %6813 = vmatprep.mubr.msk.f32.mxu1 %vm7511_vm0, %v7512_v4  ;;  %7286 = vmatpush3.bf16.msra.mxu1 %v7285_v13  ;;  %v5835_v13 = vld [vmem:[%s9079_s7 + $0xa8] sm:$0xff] }
0x16bc   :  { %7287 = vmatprep.subr.bf16.mxu1 %v7510_v0  ;;  %v7279_v14 = vpack.c.bf16 %v5835_v13, %v5834_v10 }
0x16be   :  { %6814 = vmatmul.mubr.msk.f32.gmra.mrb[98].mxu1 %vm165_vm2, %v8444_v42 }
0x16bf   :  { %6816 = vmatprep.mubr.msk.f32.mxu1 %vm7511_vm0, %v7512_v4  ;;  %7289 = vmatpush3.bf16.msra.mxu1 %v7288_v63 }
0x16c0   :  { %7294 = vmatprep.subr.bf16.mxu1 %v7510_v0 }
0x16c2   :  { %6817 = vmatmul.mubr.msk.f32.gmra.mrb[100].mxu1 %vm165_vm2, %v8455_v5 }
0x16c3   :  { %6844 = vmatprep.mubr.msk.f32.mxu1 %vm7511_vm0, %v7512_v4 }
0x16c6   :  { %6845 = vmatmul.mubr.msk.f32.vlgmr.msra.gmra.mrb[102].mxu1 %vm165_vm2, %v8428_v28 }
0x16c7   :  { %6847 = vmatprep.mubr.msk.f32.mxu1 %vm7511_vm0, %v7512_v4 }
0x16ca   :  { %6848 = vmatmul.mubr.msk.f32.gmra.mrb[104].mxu1 %vm165_vm2, %v8444_v42 }
0x16cb   :  { %6850 = vmatprep.mubr.msk.f32.mxu1 %vm7511_vm0, %v7512_v4 }
0x16ce   :  { %6851 = vmatmul.mubr.msk.f32.gmra.mrb[106].mxu1 %vm165_vm2, %v8455_v5 }
0x16cf   :  { %6874 = vmatprep.mubr.msk.f32.mxu1 %vm7511_vm0, %v7512_v4 }
0x1781   :  { %v3308_v31 = vpop.f32.mrb[90].mxu1 }
0x1782   :  { %v3322_v32 = vmul.f32 0.35355338, %v3308_v31  ;;  %v6780_v33 = vpop.f32.mrb[91].mxu1  ;;  %v5836_v31 = vld [vmem:[%s9079_s7 + $0xb0] sm:$0xff] }
0x1784   :  { %v3325_v34 = vadd.f32 %v8550_v18, %v3322_v32  ;;  %v5837_v32 = vld [vmem:[%s9079_s7 + $0xb8] sm:$0xff] }
0x1785   :  { %v3313_v35 = vpop.f32.mrb[92].mxu1 }
0x1786   :  { %v3323_v21 = vmul.f32 0.35355338, %v3313_v35  ;;  %v6783_v27 = vpop.f32.mrb[93].mxu1  ;;  %v3328_v6 = vsel %vm591_vm7, %v3325_v34, -inf }
0x1787   :  { %3329 = vmax.xlane.f32.xlu0 %v3328_v6 }
0x1788   :  { %v3326_v37 = vadd.f32 %v8557_v36, %v3323_v21 }
0x1789   :  { %v3318_v23 = vpop.f32.mrb[94].mxu1 }
0x178a   :  { %v3324_v24 = vmul.f32 0.35355338, %v3318_v23  ;;  %v6786_v12 = vpop.f32.mrb[95].mxu1  ;;  %v3331_v38 = vsel %vm591_vm7, %v3326_v37, -inf }
0x178b   :  { %3332 = vmax.xlane.f32.xlu1 %v3331_v38 }
0x178c   :  { %v3327_v29 = vadd.f32 %v8564_v39, %v3324_v24 }
0x178d   :  { %v8567_v26 = vpop.f32.mrb[96].mxu1 }
0x178e   :  { %v6812_v41 = vpop.f32.mrb[97].mxu1  ;;  %v3334_v44 = vsel %vm598_vm8, %v3327_v29, -inf }
0x178f   :  { %3335 = vmax.xlane.f32.xlu0 %v3334_v44 }
0x1791   :  { %v8570_v15 = vpop.f32.mrb[98].mxu1 }
0x1792   :  { %v6815_v46 = vpop.f32.mrb[99].mxu1 }
0x1795   :  { %v8572_v9 = vpop.f32.mrb[100].mxu1 }
0x1796   :  { %v6818_v48 = vpop.f32.mrb[101].mxu1 }
0x1799   :  { %v3696_v49 = vpop.f32.mrb[102].mxu1 }
0x179a   :  { %v6846_v50 = vpop.f32.mrb[103].mxu1 }
0x179d   :  { %v3701_v22 = vpop.f32.mrb[104].mxu1 }
0x179e   :  { %v7295_v51 = vpack.c.bf16 %v3701_v22, %v3696_v49  ;;  %v6849_v52 = vpop.f32.mrb[105].mxu1 }
0x17a0   :  { %7296 = vmatpush3.bf16.msra.mxu1 %v7295_v51 }
0x17a1   :  { %v3706_v53 = vpop.f32.mrb[106].mxu1  ;;  %6872 = vmatprep.subr.mxu1 %v7512_v4 }
0x17a2   :  { %v6852_v55 = vpop.f32.mrb[107].mxu1 }
0x17a4   :  { %6873 = vmatpush3.msk.msra.mxu1 %vm635_vm4, %v3706_v53 }
0x17a5   :  { %6894 = vmatprep.subr.mxu1 %v7512_v4 }
0x1814   :  { %v3330_v54 = vpop.xlane.xlu0 %3329 }
0x1815   :  { %v3337_v57 = vsub.f32 %v3325_v34, %v3330_v54  ;;  %v7282_v34 = vpack.c.bf16 %v5837_v32, %v5836_v31 }
0x1817   :  { %v3340_v60 = vmul.f32 1.442695, %v3337_v57 }
0x1818   :  { %v3333_v61 = vpop.xlane.xlu1 %3332 }
0x1819   :  { %7441 = vpow2.f32 %v3340_v60  ;;  %v3338_v1 = vsub.f32 %v3326_v37, %v3333_v61 }
0x181b   :  { %v3342_v2 = vmul.f32 1.442695, %v3338_v1 }
0x181c   :  { %v3336_v3 = vpop.xlane.xlu0 %3335 }
0x181d   :  { %7443 = vpow2.f32 %v3342_v2  ;;  %v3339_v56 = vsub.f32 %v3327_v29, %v3336_v3 }
0x181f   :  { %v3344_v7 = vmul.f32 1.442695, %v3339_v56 }
0x1821   :  { %7445 = vpow2.f32 %v3344_v7 }
0x1823   :  { %v7442_v59 = vpop.eup %7441 }
0x1824   :  { %v3346_v62 = vsel %vm591_vm7, %v7442_v59, 0.0 }
0x1825   :  { %3347 = vadd.xlane.f32.xlu1 %v3346_v62 }
0x1827   :  { %v7444_v11 = vpop.eup %7443 }
0x1828   :  { %v3349_v19 = vsel %vm591_vm7, %v7444_v11, 0.0 }
0x1829   :  { %3350 = vadd.xlane.f32.xlu0 %v3349_v19 }
0x182b   :  { %v7446_v17 = vpop.eup %7445 }
0x182c   :  { %v3352_v20 = vsel %vm598_vm8, %v7446_v17, 0.0 }
0x182d   :  { %3353 = vadd.xlane.f32.xlu1 %v3352_v20 }
0x18b2   :  { %v3348_v25 = vpop.xlane.xlu1 %3347 }
0x18b3   :  { %7447 = vrcp.f32 %v3348_v25 }
0x18b6   :  { %v3351_v8 = vpop.xlane.xlu0 %3350 }
0x18b7   :  { %7449 = vrcp.f32 %v3351_v8 }
0x18ba   :  { %v3354_v58 = vpop.xlane.xlu1 %3353 }
0x18bb   :  { %7451 = vrcp.f32 %v3354_v58 }
0x18bd   :  { %v7448_v30 = vpop.eup %7447 }
0x18be   :  { %v3358_v63 = vmul.f32 %v7448_v30, %v7442_v59 }
0x18c0   :  { %6794 = vmatmul.mubr.msk.f32.vlgmr.msra.gmra.mrb[90].mxu0 %vm591_vm7, %v3358_v63  ;;  %v5858_v63 = vld [vmem:[%s9082_s9 + $0x28] sm:$0xff] }
0x18c1   :  { %v7450_v33 = vpop.eup %7449  ;;  %6796 = vmatprep.mubr.msk.f32.mxu0 %vm7511_vm0, %v7512_v4  ;;  %7280 = vmatpush3.bf16.msra.mxu0 %v7279_v14 }
0x18c2   :  { %v3359_v35 = vmul.f32 %v7450_v33, %v7444_v11  ;;  %7281 = vmatprep.subr.bf16.mxu0 %v7510_v0 }
0x18c4   :  { %6797 = vmatmul.mubr.msk.f32.gmra.mrb[92].mxu0 %vm591_vm7, %v3359_v35 }
0x18c5   :  { %v7452_v21 = vpop.eup %7451  ;;  %6799 = vmatprep.mubr.msk.f32.mxu0 %vm7511_vm0, %v7512_v4  ;;  %7283 = vmatpush3.bf16.msra.mxu0 %v7282_v34 }
0x18c6   :  { %v3360_v27 = vmul.f32 %v7452_v21, %v7446_v17  ;;  %7290 = vmatprep.subr.bf16.mxu0 %v7510_v0  ;;  %v5826_v21 = vld [vmem:[%s9082_s9 + $0x20] sm:$0xff] }
0x18c8   :  { %6800 = vmatmul.mubr.msk.f32.gmra.mrb[94].mxu0 %vm591_vm7, %v3360_v27 }
0x18c9   :  { %6827 = vmatprep.mubr.msk.f32.mxu0 %vm7511_vm0, %v7512_v4 }
0x18cc   :  { %6828 = vmatmul.mubr.msk.f32.vlgmr.msra.gmra.mrb[96].mxu0 %vm165_vm2, %v8428_v28 }
0x18cd   :  { %6830 = vmatprep.mubr.msk.f32.mxu0 %vm7511_vm0, %v7512_v4 }
0x18d0   :  { %6831 = vmatmul.mubr.msk.f32.gmra.mrb[98].mxu0 %vm165_vm2, %v8444_v42 }
0x18d1   :  { %6833 = vmatprep.mubr.msk.f32.mxu0 %vm7511_vm0, %v7512_v4 }
0x18d4   :  { %6834 = vmatmul.mubr.msk.f32.gmra.mrb[100].mxu0 %vm165_vm2, %v8455_v5 }
0x18d5   :  { %6859 = vmatprep.mubr.msk.f32.mxu0 %vm7511_vm0, %v7512_v4 }
0x1993   :  { %v8615_v6 = vpop.f32.mrb[90].mxu0 }
0x1994   :  { %v6795_v37 = vpop.f32.mrb[91].mxu0 }
0x1997   :  { %v8617_v23 = vpop.f32.mrb[92].mxu0 }
0x1998   :  { %v6798_v24 = vpop.f32.mrb[93].mxu0 }
0x199b   :  { %v8619_v12 = vpop.f32.mrb[94].mxu0 }
0x199c   :  { %v6801_v38 = vpop.f32.mrb[95].mxu0 }
0x199f   :  { %v3611_v29 = vpop.f32.mrb[96].mxu0 }
0x19a0   :  { %v6829_v41 = vpop.f32.mrb[97].mxu0 }
0x19a1   :  { %v5873_v41 = vld [vmem:[%s9079_s7 + $0xc8] sm:$0xff] }
0x19a3   :  { %v3616_v44 = vpop.f32.mrb[98].mxu0 }
0x19a4   :  { %v7291_v46 = vpack.c.bf16 %v3616_v44, %v3611_v29  ;;  %v6832_v48 = vpop.f32.mrb[99].mxu0  ;;  %v5872_v29 = vld [vmem:[%s9079_s7 + $0xc0] sm:$0xff] }
0x19a5   :  { %v7304_v44 = vpack.c.bf16 %v5873_v41, %v5872_v29  ;;  %v5875_v48 = vld [vmem:[%s9079_s7 + $0xd8] sm:$0xff] }
0x19a6   :  { %7293 = vmatpush3.bf16.xpose.msk.msra.mxu0 %vm7780_vm6, %v7291_v46  ;;  %v5874_v46 = vld [vmem:[%s9079_s7 + $0xd0] sm:$0xff] }
0x19a7   :  { %v3621_v49 = vpop.f32.mrb[100].mxu0  ;;  %6857 = vmatprep.subr.mxu0 %v7512_v4 }
0x19a8   :  { %v6835_v50 = vpop.f32.mrb[101].mxu0 }
0x19a9   :  { %v5867_v50 = vld [vmem:[%s9076_s6 + $0xd0] sm:$0xff] }
0x19ae   :  { %6858 = vmatpush3.xpose.msk.msra.mxu0 %vm486_vm5, %v3621_v49  ;;  %v7307_v49 = vpack.c.bf16 %v5875_v48, %v5874_v46 }
0x19af   :  { %6883 = vmatprep.subr.mxu0 %v7512_v4 }
0x19b1   :  { %6860 = vmatmul.mubr.msk.f32.vlgmr.msra.gmra.mrb[102].mxu0 %vm486_vm5, %v8567_v26 }
0x19b2   :  { %6862 = vmatprep.mubr.msk.f32.mxu0 %vm7511_vm0, %v7512_v4  ;;  %6884 = vmatpush3.msra.mxu0 %v5858_v63 }
0x19b3   :  { %7297 = vmatprep.subr.bf16.mxu0 %v7510_v0 }
0x19b5   :  { %6863 = vmatmul.mubr.msk.f32.gmra.mrb[104].mxu0 %vm486_vm5, %v8570_v15 }
0x19b6   :  { %6865 = vmatprep.mubr.msk.f32.mxu0 %vm7511_vm0, %v7512_v4 }
0x19b9   :  { %6866 = vmatmul.mubr.msk.f32.gmra.mrb[106].mxu0 %vm486_vm5, %v8572_v9 }
0x19ba   :  { %6885 = vmatprep.mubr.msk.f32.mxu0 %vm7511_vm0, %v7512_v4 }
0x1a84   :  { %v3794_v22 = vpop.f32.mrb[102].mxu0 }
0x1a85   :  { %v3808_v51 = vmul.f32 0.35355338, %v3794_v22  ;;  %v6861_v52 = vpop.f32.mrb[103].mxu0  ;;  %v5868_v22 = vld [vmem:[%s9076_s6 + $0xd8] sm:$0xff] }
0x1a87   :  { %v3811_v26 = vadd.f32 %v8550_v18, %v3808_v51 }
0x1a88   :  { %v3799_v53 = vpop.f32.mrb[104].mxu0 }
0x1a89   :  { %v3809_v55 = vmul.f32 0.35355338, %v3799_v53  ;;  %v6864_v54 = vpop.f32.mrb[105].mxu0  ;;  %v3814_v57 = vsel %vm591_vm7, %v3811_v26, -inf }
0x1a8a   :  { %3815 = vmax.xlane.f32.xlu0 %v3814_v57  ;;  %v5879_v54 = vld [vmem:[%s9077_s8 + $0xc0] sm:$0xff]  ;;  %v5880_v57 = vld [vmem:[%s9077_s8 + $0xc8] sm:$0xff] }
0x1a8b   :  { %v3812_v15 = vadd.f32 %v8557_v36, %v3809_v55 }
0x1a8c   :  { %v3804_v60 = vpop.f32.mrb[106].mxu0 }
0x1a8d   :  { %v3810_v61 = vmul.f32 0.35355338, %v3804_v60  ;;  %v6867_v1 = vpop.f32.mrb[107].mxu0  ;;  %v3817_v9 = vsel %vm591_vm7, %v3812_v15, -inf }
0x1a8e   :  { %3818 = vmax.xlane.f32.xlu1 %v3817_v9  ;;  %v5881_v1 = vld [vmem:[%s9077_s8 + $0xd0] sm:$0xff]  ;;  %v5882_v9 = vld [vmem:[%s9077_s8 + $0xd8] sm:$0xff] }
0x1a8f   :  { %v3813_v2 = vadd.f32 %v8564_v39, %v3810_v61  ;;  %v7310_v61 = vpack.c.bf16 %v5880_v57, %v5879_v54 }
0x1a91   :  { %v3820_v3 = vsel %vm598_vm8, %v3813_v2, -inf }
0x1a92   :  { %3821 = vmax.xlane.f32.xlu0 %v3820_v3 }
0x1b17   :  { %v3816_v56 = vpop.xlane.xlu0 %3815 }
0x1b18   :  { %v3823_v7 = vsub.f32 %v3811_v26, %v3816_v56  ;;  %v7301_v26 = vpack.c.bf16 %v5868_v22, %v5867_v50  ;;  %v7313_v56 = vpack.c.bf16 %v5882_v9, %v5881_v1 }
0x1b1a   :  { %v3826_v59 = vmul.f32 1.442695, %v3823_v7 }
0x1b1b   :  { %v3819_v62 = vpop.xlane.xlu1 %3818 }
0x1b1c   :  { %7453 = vpow2.f32 %v3826_v59  ;;  %v3824_v11 = vsub.f32 %v3812_v15, %v3819_v62 }
0x1b1e   :  { %v3828_v19 = vmul.f32 1.442695, %v3824_v11 }
0x1b1f   :  { %v3822_v17 = vpop.xlane.xlu0 %3821 }
0x1b20   :  { %7455 = vpow2.f32 %v3828_v19  ;;  %v3825_v20 = vsub.f32 %v3813_v2, %v3822_v17 }
0x1b22   :  { %v3830_v25 = vmul.f32 1.442695, %v3825_v20 }
0x1b24   :  { %7457 = vpow2.f32 %v3830_v25 }
0x1b26   :  { %v7454_v8 = vpop.eup %7453 }
0x1b27   :  { %v3832_v58 = vsel %vm591_vm7, %v7454_v8, 0.0 }
0x1b28   :  { %3833 = vadd.xlane.f32.xlu1 %v3832_v58 }
0x1b2a   :  { %v7456_v10 = vpop.eup %7455 }
0x1b2b   :  { %v3835_v13 = vsel %vm591_vm7, %v7456_v10, 0.0 }
0x1b2c   :  { %3836 = vadd.xlane.f32.xlu0 %v3835_v13 }
0x1b2e   :  { %v7458_v30 = vpop.eup %7457 }
0x1b2f   :  { %v3838_v14 = vsel %vm598_vm8, %v7458_v30, 0.0 }
0x1b30   :  { %3839 = vadd.xlane.f32.xlu1 %v3838_v14 }
0x1bb5   :  { %v3834_v31 = vpop.xlane.xlu1 %3833 }
0x1bb6   :  { %7459 = vrcp.f32 %v3834_v31 }
0x1bb9   :  { %v3837_v32 = vpop.xlane.xlu0 %3836 }
0x1bba   :  { %7461 = vrcp.f32 %v3837_v32 }
0x1bbd   :  { %v3840_v33 = vpop.xlane.xlu1 %3839 }
0x1bbe   :  { %7463 = vrcp.f32 %v3840_v33 }
0x1bc0   :  { %v7460_v34 = vpop.eup %7459 }
0x1bc1   :  { %v3844_v35 = vmul.f32 %v7460_v34, %v7454_v8 }
0x1bc3   :  { %6875 = vmatmul.mubr.msk.f32.vlgmr.msra.gmra.mrb[108].mxu1 %vm591_vm7, %v3844_v35 }
0x1bc4   :  { %v7462_v27 = vpop.eup %7461  ;;  %6877 = vmatprep.mubr.msk.f32.mxu1 %vm7511_vm0, %v7512_v4  ;;  %6895 = vmatpush3.msra.mxu1 %v5826_v21 }
0x1bc5   :  { %v3845_v37 = vmul.f32 %v7462_v27, %v7456_v10  ;;  %7303 = vmatprep.subr.bf16.mxu1 %v7510_v0 }
0x1bc7   :  { %6878 = vmatmul.mubr.msk.f32.gmra.mrb[110].mxu1 %vm591_vm7, %v3845_v37 }
0x1bc8   :  { %v7464_v24 = vpop.eup %7463  ;;  %6880 = vmatprep.mubr.msk.f32.mxu1 %vm7511_vm0, %v7512_v4 }
0x1bc9   :  { %v3846_v38 = vmul.f32 %v7464_v24, %v7458_v30 }
0x1bcb   :  { %6881 = vmatmul.mubr.msk.f32.gmra.mrb[112].mxu1 %vm591_vm7, %v3846_v38 }
0x1bcc   :  { %6896 = vmatprep.mubr.msk.f32.mxu1 %vm7511_vm0, %v7512_v4 }
0x1bcf   :  { %6897 = vmatmul.mubr.msk.f32.vlgmr.msra.gmra.mrb[114].mxu1 %vm486_vm5, %v8615_v6  ;;  %v5865_v6 = vld [vmem:[%s9076_s6 + $0xc0] sm:$0xff] }
0x1bd0   :  { %6899 = vmatprep.mubr.msk.f32.mxu1 %vm7511_vm0, %v7512_v4  ;;  %7305 = vmatpush3.bf16.msra.mxu1 %v7304_v44 }
0x1bd1   :  { %7306 = vmatprep.subr.bf16.mxu1 %v7510_v0 }
0x1bd3   :  { %6900 = vmatmul.mubr.msk.f32.gmra.mrb[116].mxu1 %vm486_vm5, %v8617_v23  ;;  %v5866_v23 = vld [vmem:[%s9076_s6 + $0xc8] sm:$0xff] }
0x1bd4   :  { %6902 = vmatprep.mubr.msk.f32.mxu1 %vm7511_vm0, %v7512_v4  ;;  %7308 = vmatpush3.bf16.msra.mxu1 %v7307_v49 }
0x1bd5   :  { %7315 = vmatprep.subr.bf16.mxu1 %v7510_v0 }
0x1bd7   :  { %6903 = vmatmul.mubr.msk.f32.gmra.mrb[118].mxu1 %vm486_vm5, %v8619_v12  ;;  %v7298_v12 = vpack.c.bf16 %v5866_v23, %v5865_v6 }
0x1bd8   :  { %6930 = vmatprep.mubr.msk.f32.mxu1 %vm7511_vm0, %v7512_v4 }
0x1bdb   :  { %6931 = vmatmul.mubr.msk.f32.vlgmr.msra.gmra.mrb[120].mxu1 %vm165_vm2, %v8428_v28 }
0x1bdc   :  { %6933 = vmatprep.mubr.msk.f32.mxu1 %vm7511_vm0, %v7512_v4 }
0x1bdf   :  { %6934 = vmatmul.mubr.msk.f32.gmra.mrb[122].mxu1 %vm165_vm2, %v8444_v42 }
0x1be0   :  { %6936 = vmatprep.mubr.msk.f32.mxu1 %vm7511_vm0, %v7512_v4 }
0x1be3   :  { %6937 = vmatmul.mubr.msk.f32.gmra.mrb[124].mxu1 %vm165_vm2, %v8455_v5 }
0x1be4   :  { %6962 = vmatprep.mubr.msk.f32.mxu1 %vm7511_vm0, %v7512_v4 }
0x1c96   :  { %v3925_v51 = vpop.f32.mrb[108].mxu1 }
0x1c97   :  { %v6876_v52 = vpop.f32.mrb[109].mxu1  ;;  %6886 = vmatmul.mubr.msk.f32.vlgmr.msra.gmra.mrb[108].mxu0 %vm486_vm5, %v3925_v51 }
0x1c98   :  { %6888 = vmatprep.mubr.msk.f32.mxu0 %vm7511_vm0, %v7512_v4  ;;  %7299 = vmatpush3.bf16.msra.mxu0 %v7298_v12 }
0x1c99   :  { %7300 = vmatprep.subr.bf16.mxu0 %v7510_v0 }
0x1c9a   :  { %v3930_v53 = vpop.f32.mrb[110].mxu1 }
0x1c9b   :  { %v6879_v55 = vpop.f32.mrb[111].mxu1  ;;  %6889 = vmatmul.mubr.msk.f32.gmra.mrb[110].mxu0 %vm486_vm5, %v3930_v53 }
0x1c9c   :  { %6891 = vmatprep.mubr.msk.f32.mxu0 %vm7511_vm0, %v7512_v4  ;;  %7302 = vmatpush3.bf16.msra.mxu0 %v7301_v26 }
0x1c9d   :  { %7309 = vmatprep.subr.bf16.mxu0 %v7510_v0 }
0x1c9e   :  { %v3935_v15 = vpop.f32.mrb[112].mxu1 }
0x1c9f   :  { %v6882_v60 = vpop.f32.mrb[113].mxu1  ;;  %6892 = vmatmul.mubr.msk.f32.gmra.mrb[112].mxu0 %vm486_vm5, %v3935_v15 }
0x1ca0   :  { %6913 = vmatprep.mubr.msk.f32.mxu0 %vm7511_vm0, %v7512_v4 }
0x1ca2   :  { %v4105_v2 = vpop.f32.mrb[114].mxu1 }
0x1ca3   :  { %v6898_v3 = vpop.f32.mrb[115].mxu1  ;;  %6914 = vmatmul.mubr.msk.f32.vlgmr.msra.gmra.mrb[114].mxu0 %vm165_vm2, %v8428_v28 }
0x1ca4   :  { %6916 = vmatprep.mubr.msk.f32.mxu0 %vm7511_vm0, %v7512_v4  ;;  %7311 = vmatpush3.bf16.msra.mxu0 %v7310_v61 }
0x1ca5   :  { %7312 = vmatprep.subr.bf16.mxu0 %v7510_v0 }
0x1ca6   :  { %v4110_v7 = vpop.f32.mrb[116].mxu1 }
0x1ca7   :  { %v6901_v59 = vpop.f32.mrb[117].mxu1  ;;  %6917 = vmatmul.mubr.msk.f32.gmra.mrb[116].mxu0 %vm165_vm2, %v8444_v42 }
0x1ca8   :  { %6919 = vmatprep.mubr.msk.f32.mxu0 %vm7511_vm0, %v7512_v4  ;;  %7314 = vmatpush3.bf16.msra.mxu0 %v7313_v56 }
0x1ca9   :  { %7319 = vmatprep.subr.bf16.mxu0 %v7510_v0 }
0x1caa   :  { %v4115_v62 = vpop.f32.mrb[118].mxu1 }
0x1cab   :  { %v6904_v11 = vpop.f32.mrb[119].mxu1  ;;  %6920 = vmatmul.mubr.msk.f32.gmra.mrb[118].mxu0 %vm165_vm2, %v8455_v5 }
0x1cac   :  { %6947 = vmatprep.mubr.msk.f32.mxu0 %vm7511_vm0, %v7512_v4 }
0x1cae   :  { %v4275_v19 = vpop.f32.mrb[120].mxu1 }
0x1caf   :  { %v6932_v17 = vpop.f32.mrb[121].mxu1  ;;  %6948 = vmatmul.mubr.msk.f32.vlgmr.msra.gmra.mrb[120].mxu0 %vm165_vm2, %v8428_v28 }
0x1cb0   :  { %6950 = vmatprep.mubr.msk.f32.mxu0 %vm7511_vm0, %v7512_v4 }
0x1cb2   :  { %v4280_v20 = vpop.f32.mrb[122].mxu1 }
0x1cb3   :  { %v7316_v25 = vpack.c.bf16 %v4280_v20, %v4275_v19  ;;  %v6935_v8 = vpop.f32.mrb[123].mxu1  ;;  %6951 = vmatmul.mubr.msk.f32.gmra.mrb[122].mxu0 %vm165_vm2, %v8444_v42 }
0x1cb4   :  { %6953 = vmatprep.mubr.msk.f32.mxu0 %vm7511_vm0, %v7512_v4 }
0x1cb5   :  { %7318 = vmatpush3.bf16.xpose.msk.msra.mxu1 %vm7780_vm6, %v7316_v25 }
0x1cb6   :  { %v4285_v58 = vpop.f32.mrb[124].mxu1  ;;  %6960 = vmatprep.subr.mxu1 %v7512_v4 }
0x1cb7   :  { %v6938_v10 = vpop.f32.mrb[125].mxu1  ;;  %6954 = vmatmul.mubr.msk.f32.gmra.mrb[124].mxu0 %vm165_vm2, %v8455_v5 }
0x1cb8   :  { %6977 = vmatprep.mubr.msk.f32.mxu0 %vm7511_vm0, %v7512_v4 }
0x1cbd   :  { %6961 = vmatpush3.xpose.msk.msra.mxu1 %vm486_vm5, %v4285_v58 }
0x1cbe   :  { %6986 = vmatprep.subr.mxu1 %v7512_v4 }
0x1d6a   :  { %v4016_v13 = vpop.f32.mrb[108].mxu0 }
0x1d6b   :  { %v8768_v30 = vadd.f32 %v4105_v2, %v4016_v13  ;;  %v6887_v14 = vpop.f32.mrb[109].mxu0 }
0x1d6c   :  { %v5896_v14 = vld [vmem:[%s9082_s9 + $0x30] sm:$0xff] }
0x1d6e   :  { %v4021_v63 = vpop.f32.mrb[110].mxu0 }
0x1d6f   :  { %v8770_v31 = vadd.f32 %v4110_v7, %v4021_v63  ;;  %v6890_v32 = vpop.f32.mrb[111].mxu0 }
0x1d72   :  { %v4026_v33 = vpop.f32.mrb[112].mxu0 }
0x1d73   :  { %v8772_v34 = vadd.f32 %v4115_v62, %v4026_v33  ;;  %v6893_v35 = vpop.f32.mrb[113].mxu0 }
0x1d74   :  { %v5900_v35 = vld [vmem:[%s9076_s6 + $0xe0] sm:$0xff] }
0x1d76   :  { %v4190_v21 = vpop.f32.mrb[114].mxu0 }
0x1d77   :  { %v6915_v27 = vpop.f32.mrb[115].mxu0  ;;  %6963 = vmatmul.mubr.msk.f32.vlgmr.msra.gmra.mrb[126].mxu1 %vm486_vm5, %v4190_v21  ;;  %v5901_v21 = vld [vmem:[%s9076_s6 + $0xe8] sm:$0xff] }
0x1d78   :  { %6965 = vmatprep.mubr.msk.f32.mxu1 %vm7511_vm0, %v7512_v4  ;;  %6987 = vmatpush3.msra.mxu1 %v5896_v14 }
0x1d79   :  { %7328 = vmatprep.subr.bf16.mxu1 %v7510_v0 }
0x1d7a   :  { %v4195_v37 = vpop.f32.mrb[116].mxu0 }
0x1d7b   :  { %v6918_v24 = vpop.f32.mrb[117].mxu0  ;;  %6966 = vmatmul.mubr.msk.f32.gmra.mrb[128].mxu1 %vm486_vm5, %v4195_v37  ;;  %v7323_v37 = vpack.c.bf16 %v5901_v21, %v5900_v35 }
0x1d7c   :  { %6968 = vmatprep.mubr.msk.f32.mxu1 %vm7511_vm0, %v7512_v4 }
0x1d7e   :  { %v4200_v38 = vpop.f32.mrb[118].mxu0 }
0x1d7f   :  { %v6921_v29 = vpop.f32.mrb[119].mxu0  ;;  %6969 = vmatmul.mubr.msk.f32.gmra.mrb[130].mxu1 %vm486_vm5, %v4200_v38  ;;  %v5902_v38 = vld [vmem:[%s9076_s6 + $0xf0] sm:$0xff] }
0x1d80   :  { %6988 = vmatprep.mubr.msk.f32.mxu1 %vm7511_vm0, %v7512_v4  ;;  %v5903_v29 = vld [vmem:[%s9076_s6 + $0xf8] sm:$0xff] }
0x1d82   :  { %v4360_v41 = vpop.f32.mrb[120].mxu0 }
0x1d83   :  { %v6949_v44 = vpop.f32.mrb[121].mxu0 }
0x1d84   :  { %v7326_v44 = vpack.c.bf16 %v5903_v29, %v5902_v38 }
0x1d86   :  { %v4365_v46 = vpop.f32.mrb[122].mxu0 }
0x1d87   :  { %v7320_v48 = vpack.c.bf16 %v4365_v46, %v4360_v41  ;;  %v6952_v49 = vpop.f32.mrb[123].mxu0 }
0x1d89   :  { %7321 = vmatpush3.bf16.msra.mxu0 %v7320_v48 }
0x1d8a   :  { %v4370_v6 = vpop.f32.mrb[124].mxu0  ;;  %6975 = vmatprep.subr.mxu0 %v7512_v4 }
0x1d8b   :  { %v6955_v23 = vpop.f32.mrb[125].mxu0 }
0x1d8c   :  { %v5915_v23 = vld [vmem:[%s9077_s8 + $0xe8] sm:$0xff] }
0x1d8d   :  { %6976 = vmatpush3.msk.msra.mxu0 %vm635_vm4, %v4370_v6  ;;  %v5914_v6 = vld [vmem:[%s9077_s8 + $0xe0] sm:$0xff] }
0x1d8e   :  { %7322 = vmatprep.subr.bf16.mxu0 %v7510_v0 }
0x1e4a   :  { %v4458_v12 = vpop.f32.mrb[126].mxu1 }
0x1e4b   :  { %v4472_v50 = vmul.f32 0.35355338, %v4458_v12  ;;  %v6964_v22 = vpop.f32.mrb[127].mxu1  ;;  %v7335_v12 = vpack.c.bf16 %v5915_v23, %v5914_v6 }
0x1e4c   :  { %v5917_v22 = vld [vmem:[%s9077_s8 + $0xf8] sm:$0xff] }
0x1e4d   :  { %v4475_v51 = vadd.f32 %v8550_v18, %v4472_v50  ;;  %v5916_v50 = vld [vmem:[%s9077_s8 + $0xf0] sm:$0xff] }
0x1e4e   :  { %v4463_v52 = vpop.f32.mrb[128].mxu1 }
0x1e4f   :  { %v4473_v26 = vmul.f32 0.35355338, %v4463_v52  ;;  %v6967_v53 = vpop.f32.mrb[129].mxu1  ;;  %v4478_v55 = vsel %vm591_vm7, %v4475_v51, -inf  ;;  %v5907_v52 = vld [vmem:[%s9079_s7 + $0xe0] sm:$0xff] }
0x1e50   :  { %4479 = vmax.xlane.f32.xlu0 %v4478_v55  ;;  %v5909_v55 = vld [vmem:[%s9079_s7 + $0xf0] sm:$0xff] }
0x1e51   :  { %v4476_v54 = vadd.f32 %v8557_v36, %v4473_v26  ;;  %v5908_v26 = vld [vmem:[%s9079_s7 + $0xe8] sm:$0xff] }
0x1e52   :  { %v4468_v57 = vpop.f32.mrb[130].mxu1  ;;  %v7329_v53 = vpack.c.bf16 %v5908_v26, %v5907_v52 }
0x1e53   :  { %v4474_v15 = vmul.f32 0.35355338, %v4468_v57  ;;  %v6970_v60 = vpop.f32.mrb[131].mxu1  ;;  %v4481_v61 = vsel %vm591_vm7, %v4476_v54, -inf }
0x1e54   :  { %4482 = vmax.xlane.f32.xlu1 %v4481_v61 }
0x1e55   :  { %v4477_v1 = vadd.f32 %v8564_v39, %v4474_v15 }
0x1e57   :  { %v4484_v9 = vsel %vm598_vm8, %v4477_v1, -inf }
0x1e58   :  { %4485 = vmax.xlane.f32.xlu0 %v4484_v9 }
0x1edd   :  { %v4480_v2 = vpop.xlane.xlu0 %4479 }
0x1ede   :  { %v4487_v3 = vsub.f32 %v4475_v51, %v4480_v2  ;;  %v7338_v51 = vpack.c.bf16 %v5917_v22, %v5916_v50 }
0x1ee0   :  { %v4490_v56 = vmul.f32 1.442695, %v4487_v3 }
0x1ee1   :  { %v4483_v7 = vpop.xlane.xlu1 %4482 }
0x1ee2   :  { %7465 = vpow2.f32 %v4490_v56  ;;  %v4488_v59 = vsub.f32 %v4476_v54, %v4483_v7  ;;  %v5910_v54 = vld [vmem:[%s9079_s7 + $0xf8] sm:$0xff] }
0x1ee3   :  { %v7332_v60 = vpack.c.bf16 %v5910_v54, %v5909_v55 }
0x1ee4   :  { %v4492_v62 = vmul.f32 1.442695, %v4488_v59 }
0x1ee5   :  { %v4486_v11 = vpop.xlane.xlu0 %4485 }
0x1ee6   :  { %7467 = vpow2.f32 %v4492_v62  ;;  %v4489_v19 = vsub.f32 %v4477_v1, %v4486_v11 }
0x1ee8   :  { %v4494_v17 = vmul.f32 1.442695, %v4489_v19 }
0x1eea   :  { %7469 = vpow2.f32 %v4494_v17 }
0x1eec   :  { %v7466_v20 = vpop.eup %7465 }
0x1eed   :  { %v4496_v25 = vsel %vm591_vm7, %v7466_v20, 0.0 }
0x1eee   :  { %4497 = vadd.xlane.f32.xlu1 %v4496_v25 }
0x1ef0   :  { %v7468_v8 = vpop.eup %7467 }
0x1ef1   :  { %v4499_v58 = vsel %vm591_vm7, %v7468_v8, 0.0 }
0x1ef2   :  { %4500 = vadd.xlane.f32.xlu0 %v4499_v58 }
0x1ef4   :  { %v7470_v10 = vpop.eup %7469 }
0x1ef5   :  { %v4502_v13 = vsel %vm598_vm8, %v7470_v10, 0.0 }
0x1ef6   :  { %4503 = vadd.xlane.f32.xlu1 %v4502_v13 }
0x1f7b   :  { %v4498_v63 = vpop.xlane.xlu1 %4497 }
0x1f7c   :  { %7471 = vrcp.f32 %v4498_v63 }
0x1f7f   :  { %v4501_v32 = vpop.xlane.xlu0 %4500 }
0x1f80   :  { %7473 = vrcp.f32 %v4501_v32 }
0x1f83   :  { %v4504_v33 = vpop.xlane.xlu1 %4503 }
0x1f84   :  { %7475 = vrcp.f32 %v4504_v33 }
0x1f86   :  { %v7472_v27 = vpop.eup %7471 }
0x1f87   :  { %v4508_v24 = vmul.f32 %v7472_v27, %v7466_v20 }
0x1f89   :  { %6978 = vmatmul.mubr.msk.f32.vlgmr.msra.gmra.mrb[126].mxu0 %vm591_vm7, %v4508_v24 }
0x1f8a   :  { %v7474_v41 = vpop.eup %7473  ;;  %6980 = vmatprep.mubr.msk.f32.mxu0 %vm7511_vm0, %v7512_v4  ;;  %7324 = vmatpush3.bf16.msra.mxu0 %v7323_v37 }
0x1f8b   :  { %v4509_v46 = vmul.f32 %v7474_v41, %v7468_v8  ;;  %7325 = vmatprep.subr.bf16.mxu0 %v7510_v0 }
0x1f8d   :  { %6981 = vmatmul.mubr.msk.f32.gmra.mrb[128].mxu0 %vm591_vm7, %v4509_v46 }
0x1f8e   :  { %v7476_v48 = vpop.eup %7475  ;;  %6983 = vmatprep.mubr.msk.f32.mxu0 %vm7511_vm0, %v7512_v4  ;;  %7327 = vmatpush3.bf16.msra.mxu0 %v7326_v44 }
0x1f8f   :  { %v4510_v49 = vmul.f32 %v7476_v48, %v7470_v10  ;;  %7334 = vmatprep.subr.bf16.mxu0 %v7510_v0 }
0x1f91   :  { %6984 = vmatmul.mubr.msk.f32.gmra.mrb[130].mxu0 %vm591_vm7, %v4510_v49 }
0x1f92   :  { %7005 = vmatprep.mubr.msk.f32.mxu0 %vm7511_vm0, %v7512_v4 }
0x1f95   :  { %7006 = vmatmul.mubr.msk.f32.vlgmr.msra.gmra.mrb[132].mxu0 %vm165_vm2, %v8428_v28 }
0x1f96   :  { %7008 = vmatprep.mubr.msk.f32.mxu0 %vm7511_vm0, %v7512_v4  ;;  %7336 = vmatpush3.bf16.msra.mxu0 %v7335_v12 }
0x1f97   :  { %7337 = vmatprep.subr.bf16.mxu0 %v7510_v0 }
0x1f99   :  { %7009 = vmatmul.mubr.msk.f32.gmra.mrb[134].mxu0 %vm165_vm2, %v8444_v42 }
0x1f9a   :  { %7011 = vmatprep.mubr.msk.f32.mxu0 %vm7511_vm0, %v7512_v4  ;;  %7339 = vmatpush3.bf16.msra.mxu0 %v7338_v51 }
0x1f9b   :  { %7344 = vmatprep.subr.bf16.mxu0 %v7510_v0 }
0x1f9d   :  { %7012 = vmatmul.mubr.msk.f32.gmra.mrb[136].mxu0 %vm165_vm2, %v8455_v5 }
0x1f9e   :  { %7039 = vmatprep.mubr.msk.f32.mxu0 %vm7511_vm0, %v7512_v4 }
0x1fa1   :  { %7040 = vmatmul.mubr.msk.f32.vlgmr.msra.gmra.mrb[138].mxu0 %vm165_vm2, %v8428_v28 }
0x1fa2   :  { %7042 = vmatprep.mubr.msk.f32.mxu0 %vm7511_vm0, %v7512_v4 }
0x1fa5   :  { %7043 = vmatmul.mubr.msk.f32.gmra.mrb[140].mxu0 %vm165_vm2, %v8444_v42 }
0x1fa6   :  { %7045 = vmatprep.mubr.msk.f32.mxu0 %vm7511_vm0, %v7512_v4 }
0x1fa9   :  { %7046 = vmatmul.mubr.msk.f32.gmra.mrb[142].mxu0 %vm165_vm2, %v8455_v5 }
0x1faa   :  { %7069 = vmatprep.mubr.msk.f32.mxu0 %vm7511_vm0, %v7512_v4 }
0x205c   :  { %v4589_v57 = vpop.f32.mrb[126].mxu0 }
0x205d   :  { %v6979_v15 = vpop.f32.mrb[127].mxu0  ;;  %6989 = vmatmul.mubr.msk.f32.vlgmr.msra.gmra.mrb[132].mxu1 %vm486_vm5, %v4589_v57 }
0x205e   :  { %6991 = vmatprep.mubr.msk.f32.mxu1 %vm7511_vm0, %v7512_v4  ;;  %7330 = vmatpush3.bf16.msra.mxu1 %v7329_v53 }
0x205f   :  { %7331 = vmatprep.subr.bf16.mxu1 %v7510_v0 }
0x2060   :  { %v4594_v61 = vpop.f32.mrb[128].mxu0 }
0x2061   :  { %v6982_v1 = vpop.f32.mrb[129].mxu0  ;;  %6992 = vmatmul.mubr.msk.f32.gmra.mrb[134].mxu1 %vm486_vm5, %v4594_v61 }
0x2062   :  { %6994 = vmatprep.mubr.msk.f32.mxu1 %vm7511_vm0, %v7512_v4  ;;  %7333 = vmatpush3.bf16.msra.mxu1 %v7332_v60 }
0x2063   :  { %7340 = vmatprep.subr.bf16.mxu1 %v7510_v0 }
0x2064   :  { %v4599_v9 = vpop.f32.mrb[130].mxu0 }
0x2065   :  { %v6985_v2 = vpop.f32.mrb[131].mxu0  ;;  %6995 = vmatmul.mubr.msk.f32.gmra.mrb[136].mxu1 %vm486_vm5, %v4599_v9 }
0x2066   :  { %7022 = vmatprep.mubr.msk.f32.mxu1 %vm7511_vm0, %v7512_v4 }
0x2068   :  { %v4768_v3 = vpop.f32.mrb[132].mxu0 }
0x2069   :  { %v7007_v56 = vpop.f32.mrb[133].mxu0  ;;  %7023 = vmatmul.mubr.msk.f32.vlgmr.msra.gmra.mrb[138].mxu1 %vm165_vm2, %v8428_v28 }
0x206a   :  { %7025 = vmatprep.mubr.msk.f32.mxu1 %vm7511_vm0, %v7512_v4  ;;  %v5931_v56 = vld [vmem:[%s9082_s9 + $0x38] sm:$0xff] }
0x206c   :  { %v4773_v7 = vpop.f32.mrb[134].mxu0 }
0x206d   :  { %v7010_v59 = vpop.f32.mrb[135].mxu0  ;;  %7026 = vmatmul.mubr.msk.f32.gmra.mrb[140].mxu1 %vm165_vm2, %v8444_v42 }
0x206e   :  { %7028 = vmatprep.mubr.msk.f32.mxu1 %vm7511_vm0, %v7512_v4 }
0x2070   :  { %v4778_v62 = vpop.f32.mrb[136].mxu0 }
0x2071   :  { %v7013_v11 = vpop.f32.mrb[137].mxu0  ;;  %7029 = vmatmul.mubr.msk.f32.gmra.mrb[142].mxu1 %vm165_vm2, %v8455_v5 }
0x2072   :  { %7054 = vmatprep.mubr.msk.f32.mxu1 %vm7511_vm0, %v7512_v4 }
0x2074   :  { %v4938_v28 = vpop.f32.mrb[138].mxu0 }
0x2075   :  { %v7041_v19 = vpop.f32.mrb[139].mxu0 }
0x2078   :  { %v4943_v17 = vpop.f32.mrb[140].mxu0 }
0x2079   :  { %v7345_v20 = vpack.c.bf16 %v4943_v17, %v4938_v28  ;;  %v7044_v25 = vpop.f32.mrb[141].mxu0 }
0x207b   :  { %7346 = vmatpush3.bf16.msra.mxu0 %v7345_v20 }
0x207c   :  { %v4948_v8 = vpop.f32.mrb[142].mxu0  ;;  %7067 = vmatprep.subr.mxu0 %v7512_v4 }
0x207d   :  { %v7047_v42 = vpop.f32.mrb[143].mxu0 }
0x207f   :  { %7068 = vmatpush3.msk.msra.mxu0 %vm635_vm4, %v4948_v8 }
0x2080   :  { %7347 = vmatprep.subr.bf16.mxu0 %v7510_v0 }
0x2130   :  { %v4680_v58 = vpop.f32.mrb[132].mxu1 }
0x2131   :  { %v8899_v5 = vadd.f32 %v4680_v58, %v8768_v30  ;;  %v6990_v10 = vpop.f32.mrb[133].mxu1 }
0x2134   :  { %v4685_v13 = vpop.f32.mrb[134].mxu1 }
0x2135   :  { %v8902_v14 = vadd.f32 %v4685_v13, %v8770_v31  ;;  %v6993_v63 = vpop.f32.mrb[135].mxu1 }
0x2138   :  { %v4690_v32 = vpop.f32.mrb[136].mxu1 }
0x2139   :  { %v8905_v33 = vadd.f32 %v4690_v32, %v8772_v34  ;;  %v6996_v35 = vpop.f32.mrb[137].mxu1 }
0x213c   :  { %v4853_v21 = vpop.f32.mrb[138].mxu1 }
0x213d   :  { %v7024_v27 = vpop.f32.mrb[139].mxu1 }
0x213e   :  { %v5936_v27 = vld [vmem:[%s9083_s10 + $0x1] ss:$0 sm:$0xff] }
0x2140   :  { %v4858_v37 = vpop.f32.mrb[140].mxu1 }
0x2141   :  { %v7341_v24 = vpack.c.bf16 %v4858_v37, %v4853_v21  ;;  %v7027_v38 = vpop.f32.mrb[141].mxu1 }
0x2143   :  { %7343 = vmatpush3.bf16.xpose.msk.msra.mxu1 %vm7780_vm6, %v7341_v24 }
0x2144   :  { %v4863_v30 = vpop.f32.mrb[142].mxu1  ;;  %7052 = vmatprep.subr.mxu1 %v7512_v4 }
0x2145   :  { %v7030_v29 = vpop.f32.mrb[143].mxu1 }
0x214b   :  { %7053 = vmatpush3.xpose.msk.msra.mxu1 %vm486_vm5, %v4863_v30 }
0x214c   :  { %7078 = vmatprep.subr.mxu1 %v7512_v4 }
0x214e   :  { %7055 = vmatmul.mubr.msk.f32.vlgmr.msra.gmra.mrb[144].mxu1 %vm486_vm5, %v4768_v3 }
0x214f   :  { %7057 = vmatprep.mubr.msk.f32.mxu1 %vm7511_vm0, %v7512_v4  ;;  %7079 = vmatpush3.msra.mxu1 %v5931_v56 }
0x2150   :  { %7353 = vmatprep.subr.bf16.mxu1 %v7510_v0 }
0x2152   :  { %7058 = vmatmul.mubr.msk.f32.gmra.mrb[146].mxu1 %vm486_vm5, %v4773_v7 }
0x2153   :  { %7060 = vmatprep.mubr.msk.f32.mxu1 %vm7511_vm0, %v7512_v4 }
0x2156   :  { %7061 = vmatmul.mubr.msk.f32.gmra.mrb[148].mxu1 %vm486_vm5, %v4778_v62 }
0x2157   :  { %7080 = vmatprep.mubr.msk.f32.mxu1 %vm7511_vm0, %v7512_v4 }
0x2221   :  { %v5036_v45 = vpop.f32.mrb[144].mxu1 }
0x2222   :  { %v5050_v31 = vmul.f32 0.35355338, %v5036_v45  ;;  %v7056_v34 = vpop.f32.mrb[145].mxu1 }
0x2224   :  { %v5053_v41 = vadd.f32 %v8550_v18, %v5050_v31 }
0x2225   :  { %v5041_v44 = vpop.f32.mrb[146].mxu1 }
0x2226   :  { %v5051_v46 = vmul.f32 0.35355338, %v5041_v44  ;;  %v7059_v48 = vpop.f32.mrb[147].mxu1  ;;  %v5056_v49 = vsel %vm591_vm7, %v5053_v41, -inf }
0x2227   :  { %5057 = vmax.xlane.f32.xlu0 %v5056_v49 }
0x2228   :  { %v5054_v6 = vadd.f32 %v8557_v36, %v5051_v46 }
0x2229   :  { %v5046_v23 = vpop.f32.mrb[148].mxu1 }
0x222a   :  { %v5052_v12 = vmul.f32 0.35355338, %v5046_v23  ;;  %v7062_v50 = vpop.f32.mrb[149].mxu1  ;;  %v5059_v22 = vsel %vm591_vm7, %v5054_v6, -inf }
0x222b   :  { %5060 = vmax.xlane.f32.xlu1 %v5059_v22 }
0x222c   :  { %v5055_v51 = vadd.f32 %v8564_v39, %v5052_v12 }
0x222e   :  { %v5062_v52 = vsel %vm598_vm8, %v5055_v51, -inf }
0x222f   :  { %5063 = vmax.xlane.f32.xlu0 %v5062_v52 }
0x22b4   :  { %v5058_v18 = vpop.xlane.xlu0 %5057 }
0x22b5   :  { %v5065_v26 = vsub.f32 %v5053_v41, %v5058_v18 }
0x22b7   :  { %v5068_v53 = vmul.f32 1.442695, %v5065_v26 }
0x22b8   :  { %v5061_v55 = vpop.xlane.xlu1 %5060 }
0x22b9   :  { %7477 = vpow2.f32 %v5068_v53  ;;  %v5066_v54 = vsub.f32 %v5054_v6, %v5061_v55 }
0x22bb   :  { %v5070_v57 = vmul.f32 1.442695, %v5066_v54  ;;  %v5941_v54 = vld [vmem:[%s9084_s13 + $0x20] sm:$0xff] }
0x22bc   :  { %v5064_v15 = vpop.xlane.xlu0 %5063 }
0x22bd   :  { %7479 = vpow2.f32 %v5070_v57  ;;  %v5067_v36 = vsub.f32 %v5055_v51, %v5064_v15  ;;  %v5942_v57 = vld [vmem:[%s9084_s13 + $0x28] sm:$0xff] }
0x22be   :  { %v7348_v15 = vpack.c.bf16 %v5942_v57, %v5941_v54 }
0x22bf   :  { %v5072_v60 = vmul.f32 1.442695, %v5067_v36  ;;  %v5943_v36 = vld [vmem:[%s9084_s13 + $0x30] sm:$0xff] }
0x22c1   :  { %7481 = vpow2.f32 %v5072_v60  ;;  %v5944_v60 = vld [vmem:[%s9084_s13 + $0x38] sm:$0xff] }
0x22c3   :  { %v7478_v61 = vpop.eup %7477 }
0x22c4   :  { %v5074_v1 = vsel %vm591_vm7, %v7478_v61, 0.0 }
0x22c5   :  { %5075 = vadd.xlane.f32.xlu1 %v5074_v1 }
0x22c7   :  { %v7480_v39 = vpop.eup %7479 }
0x22c8   :  { %v5077_v9 = vsel %vm591_vm7, %v7480_v39, 0.0 }
0x22c9   :  { %5078 = vadd.xlane.f32.xlu0 %v5077_v9 }
0x22cb   :  { %v7482_v2 = vpop.eup %7481 }
0x22cc   :  { %v5080_v3 = vsel %vm598_vm8, %v7482_v2, 0.0 }
0x22cd   :  { %5081 = vadd.xlane.f32.xlu1 %v5080_v3 }
0x2352   :  { %v5076_v7 = vpop.xlane.xlu1 %5075 }
0x2353   :  { %7483 = vrcp.f32 %v5076_v7 }
0x2356   :  { %v5079_v59 = vpop.xlane.xlu0 %5078 }
0x2357   :  { %7485 = vrcp.f32 %v5079_v59 }
0x235a   :  { %v5082_v62 = vpop.xlane.xlu1 %5081 }
0x235b   :  { %7487 = vrcp.f32 %v5082_v62 }
0x235d   :  { %v7484_v11 = vpop.eup %7483 }
0x235e   :  { %v5086_v28 = vmul.f32 %v7484_v11, %v7478_v61  ;;  %v7351_v61 = vpack.c.bf16 %v5944_v60, %v5943_v36 }
0x2360   :  { %7070 = vmatmul.mubr.msk.f32.vlgmr.msra.gmra.mrb[144].mxu0 %vm591_vm7, %v5086_v28  ;;  %v5939_v28 = vld [vmem:[%s9085_s11 + $0x1] ss:$0 sm:$0xff] }
0x2361   :  { %v7486_v19 = vpop.eup %7485  ;;  %7072 = vmatprep.mubr.msk.f32.mxu0 %vm7511_vm0, %v7512_v4  ;;  %7349 = vmatpush3.bf16.msra.mxu0 %v7348_v15 }
0x2362   :  { %v5087_v17 = vmul.f32 %v7486_v19, %v7480_v39  ;;  %7350 = vmatprep.subr.bf16.mxu0 %v7510_v0 }
0x2364   :  { %7073 = vmatmul.mubr.msk.f32.gmra.mrb[146].mxu0 %vm591_vm7, %v5087_v17  ;;  %v5940_v17 = vld [vmem:[%s9086_s12 + $0x1] ss:$0 sm:$0xff] }
0x2365   :  { %v7488_v20 = vpop.eup %7487  ;;  %7075 = vmatprep.mubr.msk.f32.mxu0 %vm7511_vm0, %v7512_v4  ;;  %7352 = vmatpush3.bf16.msra.mxu0 %v7351_v61 }
0x2366   :  { %v5088_v25 = vmul.f32 %v7488_v20, %v7482_v2 }
0x2368   :  { %7076 = vmatmul.mubr.msk.f32.gmra.mrb[148].mxu0 %vm591_vm7, %v5088_v25 }
0x2369   :  { %7097 = vmatprep.mubr.msk.f32.mxu0 %vm7511_vm0, %v7512_v4 }
0x2433   :  { %v5167_v8 = vpop.f32.mrb[144].mxu0 }
0x2434   :  { %v7071_v42 = vpop.f32.mrb[145].mxu0  ;;  %7081 = vmatmul.mubr.msk.f32.vlgmr.msra.gmra.mrb[150].mxu1 %vm486_vm5, %v5167_v8 }
0x2435   :  { %7083 = vmatprep.mubr.msk.f32.mxu1 %vm7511_vm0, %v7512_v4 }
0x2437   :  { %v5172_v58 = vpop.f32.mrb[146].mxu0 }
0x2438   :  { %v7074_v10 = vpop.f32.mrb[147].mxu0  ;;  %7084 = vmatmul.mubr.msk.f32.gmra.mrb[152].mxu1 %vm486_vm5, %v5172_v58 }
0x2439   :  { %7086 = vmatprep.mubr.msk.f32.mxu1 %vm7511_vm0, %v7512_v4 }
0x243b   :  { %v5177_v13 = vpop.f32.mrb[148].mxu0 }
0x243c   :  { %v7077_v63 = vpop.f32.mrb[149].mxu0  ;;  %7087 = vmatmul.mubr.msk.f32.gmra.mrb[154].mxu1 %vm486_vm5, %v5177_v13 }
0x243d   :  { %7114 = vmatprep.mubr.msk.f32.mxu1 %vm7511_vm0, %v7512_v4 }
0x2507   :  { %v5258_v32 = vpop.f32.mrb[150].mxu1 }
0x2508   :  { %v5272_v35 = vadd.f32 %v5258_v32, %v8899_v5  ;;  %v7082_v21 = vpop.f32.mrb[151].mxu1 }
0x2509   :  { %v5950_v21 = vld [vmem:[%s9087_s15 + $0x20] sm:$0xff] }
0x250a   :  { %v5275_v37 = vadd.f32 %v5272_v35, %v8368_v40 }
0x250b   :  { %v5263_v24 = vpop.f32.mrb[152].mxu1 }
0x250c   :  { %v8957_v38 = vadd.f32 %v5936_v27, %v5275_v37  ;;  %v5273_v30 = vadd.f32 %v5263_v24, %v8902_v14  ;;  %v7085_v29 = vpop.f32.mrb[153].mxu1  ;;  %v5952_v24 = vld [vmem:[%s9087_s15 + $0x30] sm:$0xff] }
0x250e   :  { %v5276_v45 = vadd.f32 %v5273_v30, %v8373_v43  ;;  %v5293_v31 = vsel %vm165_vm2, %v8957_v38, 0.0  ;;  %v5953_v30 = vld [vmem:[%s9087_s15 + $0x38] sm:$0xff] }
0x250f   :  { %5294 = vadd.xlane.f32.xlu0 %v5293_v31  ;;  %v5268_v5 = vpop.f32.mrb[154].mxu1  ;;  %v7357_v29 = vpack.c.bf16 %v5953_v30, %v5952_v24 }
0x2510   :  { %v8963_v34 = vadd.f32 %v5936_v27, %v5276_v45  ;;  %v5274_v41 = vadd.f32 %v5268_v5, %v8905_v33  ;;  %v7088_v44 = vpop.f32.mrb[155].mxu1  ;;  %v5946_v45 = vld [vmem:[%s9088_s14 + $0x1] ss:$0 sm:$0xff] }
0x2512   :  { %v5277_v40 = vadd.f32 %v5274_v41, %v8378_v47  ;;  %v5296_v46 = vsel %vm165_vm2, %v8963_v34, 0.0 }
0x2513   :  { %5297 = vadd.xlane.f32.xlu1 %v5296_v46 }
0x2514   :  { %v8969_v14 = vadd.f32 %v5936_v27, %v5277_v40  ;;  %v5951_v27 = vld [vmem:[%s9087_s15 + $0x28] sm:$0xff] }
0x2515   :  { %v7354_v37 = vpack.c.bf16 %v5951_v27, %v5950_v21 }
0x2516   :  { %v5299_v43 = vsel %vm172_vm3, %v8969_v14, 0.0 }
0x2517   :  { %5300 = vadd.xlane.f32.xlu0 %v5299_v43  ;;  %7355 = vmatpush3.bf16.msra.mxu1 %v7354_v37 }
0x2518   :  { %7356 = vmatprep.subr.bf16.mxu1 %v7510_v0 }
0x251b   :  { %7358 = vmatpush3.bf16.msra.mxu1 %v7357_v29 }
0x259c   :  { %v5295_v48 = vpop.xlane.xlu0 %5294 }
0x259d   :  { %v5302_v49 = vmul.f32 0.03125, %v5295_v48 }
0x259f   :  { %v5305_v6 = vsub.f32 %v8957_v38, %v5302_v49 }
0x25a0   :  { %v5298_v23 = vpop.xlane.xlu1 %5297 }
0x25a1   :  { %v5303_v12 = vmul.f32 0.03125, %v5298_v23  ;;  %v5308_v33 = vmul.f32 %v5305_v6, %v5305_v6 }
0x25a3   :  { %v5306_v50 = vsub.f32 %v8963_v34, %v5303_v12  ;;  %v5311_v47 = vsel %vm165_vm2, %v5308_v33, 0.0 }
0x25a4   :  { %5312 = vadd.xlane.f32.xlu1 %v5311_v47  ;;  %v5301_v22 = vpop.xlane.xlu0 %5300 }
0x25a5   :  { %v5304_v51 = vmul.f32 0.03125, %v5301_v22  ;;  %v5309_v52 = vmul.f32 %v5306_v50, %v5306_v50 }
0x25a7   :  { %v5307_v18 = vsub.f32 %v8969_v14, %v5304_v51  ;;  %v5314_v26 = vsel %vm165_vm2, %v5309_v52, 0.0 }
0x25a8   :  { %5315 = vadd.xlane.f32.xlu0 %v5314_v26 }
0x25a9   :  { %v5310_v53 = vmul.f32 %v5307_v18, %v5307_v18 }
0x25ab   :  { %v5317_v55 = vsel %vm172_vm3, %v5310_v53, 0.0 }
0x25ac   :  { %5318 = vadd.xlane.f32.xlu1 %v5317_v55 }
0x2631   :  { %v5313_v1 = vpop.xlane.xlu1 %5312 }
0x2632   :  { %v5320_v39 = vmul.f32 0.03125, %v5313_v1 }
0x2634   :  { %v5323_v9 = vadd.f32 1e-05, %v5320_v39 }
0x2635   :  { %v5316_v2 = vpop.xlane.xlu0 %5315 }
0x2636   :  { %7489 = vrsqrt.f32 %v5323_v9  ;;  %v5321_v3 = vmul.f32 0.03125, %v5316_v2 }
0x2638   :  { %v5324_v56 = vadd.f32 1e-05, %v5321_v3 }
0x2639   :  { %v5319_v7 = vpop.xlane.xlu1 %5318 }
0x263a   :  { %7491 = vrsqrt.f32 %v5324_v56  ;;  %v5322_v59 = vmul.f32 0.03125, %v5319_v7 }
0x263c   :  { %v5325_v62 = vadd.f32 1e-05, %v5322_v59 }
0x263e   :  { %7493 = vrsqrt.f32 %v5325_v62 }
0x2640   :  { %v7490_v11 = vpop.eup %7489 }
0x2641   :  { %v5329_v19 = vmul.f32 %v7490_v11, %v5305_v6 }
0x2643   :  { %v5338_v20 = vmul.f32 %v5939_v28, %v5329_v19 }
0x2644   :  { %v7492_v25 = vpop.eup %7491 }
0x2645   :  { %v5347_v8 = vadd.f32 %v5940_v17, %v5338_v20  ;;  %v5330_v42 = vmul.f32 %v7492_v25, %v5306_v50 }
0x2647   :  { %7098 = vmatmul.mubr.msk.f32.vlgmr.msra.gmra.mrb[150].mxu0 %vm165_vm2, %v5347_v8  ;;  %v5339_v58 = vmul.f32 %v5939_v28, %v5330_v42 }
0x2648   :  { %v7494_v10 = vpop.eup %7493  ;;  %7100 = vmatprep.mubr.msk.f32.mxu0 %vm7511_vm0, %v7512_v4 }
0x2649   :  { %v5348_v13 = vadd.f32 %v5940_v17, %v5339_v58  ;;  %v5331_v63 = vmul.f32 %v7494_v10, %v5307_v18 }
0x264b   :  { %7101 = vmatmul.mubr.msk.f32.gmra.mrb[152].mxu0 %vm165_vm2, %v5348_v13  ;;  %v5340_v32 = vmul.f32 %v5939_v28, %v5331_v63 }
0x264c   :  { %7103 = vmatprep.mubr.msk.f32.mxu0 %vm7511_vm0, %v7512_v4 }
0x264d   :  { %v5349_v35 = vadd.f32 %v5940_v17, %v5340_v32 }
0x264f   :  { %7104 = vmatmul.mubr.msk.f32.gmra.mrb[154].mxu0 %vm165_vm2, %v5349_v35 }
0x271a   :  { %v5438_v31 = vpop.f32.mrb[150].mxu0 }
0x271b   :  { %v9021_v5 = vadd.f32 %v5946_v45, %v5438_v31  ;;  %v7099_v41 = vpop.f32.mrb[151].mxu0 }
0x271d   :  { %v9024_v0 = vmul.f32 0.70710677, %v9021_v5 }
0x271e   :  { %v5443_v44 = vpop.f32.mrb[152].mxu0 }
0x271f   :  { %v5464_v40 = vand.u32 2147483647, %v9024_v0  ;;  %v9027_v46 = vadd.f32 %v5946_v45, %v5443_v44  ;;  %v7102_v43 = vpop.f32.mrb[153].mxu0  ;;  %vm5458_vm12 = vcmp.ge.f32.partialorder %v9024_v0, 0.0 }
0x2720   :  { %v5461_v44 = vsel %vm5458_vm12, 1.0, %v7513_v16 }
0x2721   :  { %v5467_v48 = vmul.f32 0.3275911, %v5464_v40  ;;  %v9030_v49 = vmul.f32 0.70710677, %v9027_v46  ;;  %v5506_v26 = vsub.f32 0.0, %v5464_v40 }
0x2722   :  { %v5448_v6 = vpop.f32.mrb[154].mxu0 }
0x2723   :  { %v5470_v23 = vadd.f32 1.0, %v5467_v48  ;;  %v5465_v12 = vand.u32 2147483647, %v9030_v49  ;;  %v7105_v33 = vpop.f32.mrb[155].mxu0  ;;  %v9033_v50 = vadd.f32 %v5946_v45, %v5448_v6  ;;  %v5509_v54 = vmul.f32 %v5506_v26, %v5464_v40 }
0x2724   :  { %vm5459_vm13 = vcmp.ge.f32.partialorder %v9030_v49, 0.0 }
0x2725   :  { %7495 = vrcp.f32 %v5470_v23  ;;  %v5468_v47 = vmul.f32 0.3275911, %v5465_v12  ;;  %v9036_v22 = vmul.f32 0.70710677, %v9033_v50  ;;  %v5507_v57 = vsub.f32 0.0, %v5465_v12 }
0x2726   :  { %v5512_v61 = vmul.f32 1.442695, %v5509_v54  ;;  %v5452_v23 = vmul.f32 0.5, %v9021_v5  ;;  %v5462_v0 = vsel %vm5459_vm13, 1.0, %v7513_v16 }
0x2727   :  { %v5471_v51 = vadd.f32 1.0, %v5468_v47  ;;  %v5466_v52 = vand.u32 2147483647, %v9036_v22  ;;  %v5510_v1 = vmul.f32 %v5507_v57, %v5465_v12  ;;  %vm5460_vm14 = vcmp.ge.f32.partialorder %v9036_v22, 0.0 }
0x2728   :  { %v5463_v54 = vsel %vm5460_vm14, 1.0, %v7513_v16 }
0x2729   :  { %7497 = vrcp.f32 %v5471_v51  ;;  %v5469_v18 = vmul.f32 0.3275911, %v5466_v52  ;;  %v5508_v2 = vsub.f32 0.0, %v5466_v52  ;;  %v5514_v7 = vmul.f32 1.442695, %v5510_v1 }
0x272b   :  { %v5472_v53 = vadd.f32 1.0, %v5469_v18  ;;  %v5511_v28 = vmul.f32 %v5508_v2, %v5466_v52 }
0x272d   :  { %7499 = vrcp.f32 %v5472_v53  ;;  %v5516_v58 = vmul.f32 1.442695, %v5511_v28  ;;  %v5453_v53 = vmul.f32 0.5, %v9027_v46 }
0x272e   :  { %7501 = vpow2.f32 %v5512_v61 }
0x272f   :  { %v7496_v55 = vpop.eup %7495  ;;  %7503 = vpow2.f32 %v5514_v7 }
0x2730   :  { %v5479_v15 = vmul.f32 1.0614054, %v7496_v55  ;;  %7505 = vpow2.f32 %v5516_v58 }
0x2732   :  { %v5482_v36 = vadd.f32 -1.4531521, %v5479_v15  ;;  %v5454_v15 = vmul.f32 0.5, %v9033_v50 }
0x2733   :  { %v7498_v60 = vpop.eup %7497 }
0x2734   :  { %v5485_v39 = vmul.f32 %v7496_v55, %v5482_v36  ;;  %v5480_v9 = vmul.f32 1.0614054, %v7498_v60 }
0x2736   :  { %v5488_v3 = vadd.f32 1.4214138, %v5485_v39  ;;  %v5483_v56 = vadd.f32 -1.4531521, %v5480_v9 }
0x2737   :  { %v7500_v59 = vpop.eup %7499 }
0x2738   :  { %v5491_v62 = vmul.f32 %v7496_v55, %v5488_v3  ;;  %v5486_v11 = vmul.f32 %v7498_v60, %v5483_v56  ;;  %v5481_v19 = vmul.f32 1.0614054, %v7500_v59  ;;  %v7502_v27 = vpop.eup %7501 }
0x2739   :  { %v7504_v41 = vpop.eup %7503 }
0x273a   :  { %v5494_v17 = vadd.f32 -0.28449672, %v5491_v62  ;;  %v5489_v20 = vadd.f32 1.4214138, %v5486_v11  ;;  %v5484_v25 = vadd.f32 -1.4531521, %v5481_v19  ;;  %v7506_v51 = vpop.eup %7505 }
0x273c   :  { %v5497_v8 = vmul.f32 %v7496_v55, %v5494_v17  ;;  %v5492_v42 = vmul.f32 %v7498_v60, %v5489_v20  ;;  %v5487_v10 = vmul.f32 %v7500_v59, %v5484_v25 }
0x273e   :  { %v5500_v13 = vadd.f32 0.2548296, %v5497_v8  ;;  %v5495_v63 = vadd.f32 -0.28449672, %v5492_v42  ;;  %v5490_v32 = vadd.f32 1.4214138, %v5487_v10 }
0x2740   :  { %v5503_v35 = vmul.f32 %v7496_v55, %v5500_v13  ;;  %v5498_v21 = vmul.f32 %v7498_v60, %v5495_v63  ;;  %v5493_v37 = vmul.f32 %v7500_v59, %v5490_v32 }
0x2742   :  { %v5518_v24 = vmul.f32 %v7502_v27, %v5503_v35  ;;  %v5501_v30 = vadd.f32 0.2548296, %v5498_v21  ;;  %v5496_v29 = vadd.f32 -0.28449672, %v5493_v37 }
0x2744   :  { %v5521_v45 = vsub.f32 1.0, %v5518_v24  ;;  %v5504_v31 = vmul.f32 %v7498_v60, %v5501_v30  ;;  %v5499_v40 = vmul.f32 %v7500_v59, %v5496_v29  ;;  %v5958_v60 = vld [vmem:[%s9089_s16 + $0x1] ss:$0 sm:$0xff] }
0x2746   :  { %v5524_v43 = vmul.f32 %v5521_v45, %v5461_v44  ;;  %v5519_v48 = vmul.f32 %v7504_v41, %v5504_v31  ;;  %v5502_v6 = vadd.f32 0.2548296, %v5499_v40 }
0x2748   :  { %v5527_v12 = vadd.f32 1.0, %v5524_v43  ;;  %v5522_v33 = vsub.f32 1.0, %v5519_v48  ;;  %v5505_v47 = vmul.f32 %v7500_v59, %v5502_v6 }
0x274a   :  { %v5530_v52 = vmul.f32 %v5527_v12, %v5452_v23  ;;  %v5525_v18 = vmul.f32 %v5522_v33, %v5462_v0  ;;  %v5520_v26 = vmul.f32 %v7506_v51, %v5505_v47 }
0x274c   :  { %v5528_v55 = vadd.f32 1.0, %v5525_v18  ;;  %7115 = vmatmul.mubr.msk.f32.vlgmr.msra.gmra.mrb[156].mxu1 %vm165_vm2, %v5530_v52  ;;  %v5523_v49 = vsub.f32 1.0, %v5520_v26 }
0x274d   :  { %7117 = vmatprep.mubr.msk.f32.mxu1 %vm7511_vm0, %v7512_v4 }
0x274e   :  { %v5531_v5 = vmul.f32 %v5528_v55, %v5453_v53  ;;  %v5526_v57 = vmul.f32 %v5523_v49, %v5463_v54 }
0x2750   :  { %7118 = vmatmul.mubr.msk.f32.gmra.mrb[158].mxu1 %vm165_vm2, %v5531_v5  ;;  %v5529_v36 = vadd.f32 1.0, %v5526_v57 }
0x2751   :  { %7120 = vmatprep.mubr.msk.f32.mxu1 %vm7511_vm0, %v7512_v4 }
0x2752   :  { %v5532_v46 = vmul.f32 %v5529_v36, %v5454_v15 }
0x2754   :  { %7121 = vmatmul.mubr.msk.f32.gmra.mrb[160].mxu1 %vm165_vm2, %v5532_v46 }
0x281f   :  { %v5613_v22 = vpop.f32.mrb[156].mxu1 }
0x2820   :  { %v5627_v61 = vadd.f32 %v5613_v22, %v8957_v38  ;;  %v7116_v16 = vpop.f32.mrb[157].mxu1 }
0x2822   :  { %v5638_v1 = vadd.f32 %v5958_v60, %v5627_v61 }
0x2823   :  { %v5618_v39 = vpop.f32.mrb[158].mxu1 }
0x2824   :  { %5641 = vst.msk [vmem:[%s9090_s17] sm:$0xff] %vm165_vm2, %v5638_v1  ;;  %v5628_v4 = vadd.f32 %v5618_v39, %v8963_v34  ;;  %v7119_v50 = vpop.f32.mrb[159].mxu1 }
0x2826   :  { %v5639_v9 = vadd.f32 %v5958_v60, %v5628_v4 }
0x2827   :  { %v5623_v2 = vpop.f32.mrb[160].mxu1 }
0x2828   :  { %5642 = vst.msk [vmem:[%s9090_s17 + $0x8] sm:$0xff] %vm165_vm2, %v5639_v9  ;;  %v5629_v38 = vadd.f32 %v5623_v2, %v8969_v14  ;;  %v7122_v3 = vpop.f32.mrb[161].mxu1 }
0x282a   :  { %v5640_v56 = vadd.f32 %v5958_v60, %v5629_v38 }
0x282c   :  { %5643 = vst.msk [vmem:[%s9090_s17 + $0x10] sm:$0x3] %vm172_vm3, %v5640_v56 }

</bundles_post_ra>
